<compile_context>
chip_gen: v6e
topology: v6e:2x2x1
jax: 0.10.0
libtpu: 0.0.40
codegen_flags: <defaults>
</compile_context>

<pallas_src>
import jax
import jax.numpy as jnp
from jax.experimental import pallas as pl
from jax.experimental.pallas import tpu as pltpu

_VMEM_LIMIT = 32 * 1024 * 1024
_EPS = 1e-5


# ----------------------------------------------------------------------------
# Tiling helpers
# ----------------------------------------------------------------------------
def _ceil_to(x, m):
    return ((x + m - 1) // m) * m


def _default_row_tile():
    # 128-wide M tiles on v5e (4x128x128 MXU), 256 on v6e / v7x.
    try:
        kind = jax.devices()[0].device_kind.lower()
        return 128 if "v5" in kind else 256
    except Exception:
        return 256


_ROW_TILE = _default_row_tile()


def _row_tile(m):
    # Largest 8-aligned row tile <= _ROW_TILE; partial last tiles are handled by
    # Pallas (OOB output writes are dropped), so no explicit zero-pad copy of M.
    return min(_ROW_TILE, _ceil_to(m, 8))


def _k_plan(k_used, c_alloc):
    """K extent swept by the grid (Kp) and its tile (tk).

    When the input is the channel-padded feature buffer (k_used < c_alloc,
    c_alloc % 128 == 0), only ceil(k_used/128)*128 columns are ever DMA'd; the
    padded tail never leaves HBM.  Padded columns are real zeros, so with
    zero-padded scale/offset/weights they contribute exactly 0.
    """
    if k_used == c_alloc:
        kp = k_used
    else:
        assert c_alloc % 128 == 0 and k_used < c_alloc
        kp = min(_ceil_to(k_used, 128), c_alloc)
    if kp <= 512 or kp % 128 != 0:
        return kp, kp                      # single K step, full-width block
    return kp, (256 if kp % 256 == 0 else 128)


def _n_plan(n):
    if n <= 512:
        return n, n
    np_ = _ceil_to(n, 128)
    return np_, (256 if np_ % 256 == 0 else 128)


def _compiler_params(sem):
    return pltpu.CompilerParams(dimension_semantics=sem,
                                vmem_limit_bytes=_VMEM_LIMIT)


# ----------------------------------------------------------------------------
# Kernel A: tiled matmul with optional fused BN+ReLU prologue on the A operand
# ----------------------------------------------------------------------------
def _mm_bn_kernel(x_ref, s_ref, o_ref, w_ref, out_ref, acc_ref):
    @pl.when(pl.program_id(2) == 0)
    def _init():
        acc_ref[...] = jnp.zeros_like(acc_ref)

    # BN + ReLU in f32 on the VPU, then bf16 feed to the MXU.
    a = jnp.maximum(x_ref[...] * s_ref[...] + o_ref[...], 0.0)
    acc_ref[...] += jnp.dot(a.astype(jnp.bfloat16), w_ref[...],
                            preferred_element_type=jnp.float32)

    @pl.when(pl.program_id(2) == pl.num_programs(2) - 1)
    def _done():
        out_ref[...] = acc_ref[...]


def _mm_plain_kernel(x_ref, w_ref, out_ref, acc_ref):
    @pl.when(pl.program_id(2) == 0)
    def _init():
        acc_ref[...] = jnp.zeros_like(acc_ref)

    acc_ref[...] += jnp.dot(x_ref[...].astype(jnp.bfloat16), w_ref[...],
                            preferred_element_type=jnp.float32)

    @pl.when(pl.program_id(2) == pl.num_programs(2) - 1)
    def _done():
        out_ref[...] = acc_ref[...]


def fused_matmul(x2d, w_kn, scale=None, offset=None):
    """out = relu(x*scale + offset)[:, :K] @ W  (plain x @ W when scale is None).

    x2d may be wider than K (channel-padded buffer); only the needed K tiles are
    swept.  Weights are fed to the MXU as bf16, accumulation is f32 in VMEM.
    """
    m, c_alloc = x2d.shape
    k, n = w_kn.shape
    kp, tk = _k_plan(k, c_alloc)
    np_, tn = _n_plan(n)
    tm = _row_tile(m)
    grid = (pl.cdiv(m, tm), np_ // tn, kp // tk)

    w_p = w_kn
    if kp != k or np_ != n:
        w_p = jnp.pad(w_kn, ((0, kp - k), (0, np_ - n)))
    w_p = w_p.astype(jnp.bfloat16)

    x_spec = pl.BlockSpec((tm, tk), lambda i, j, kk: (i, kk))
    w_spec = pl.BlockSpec((tk, tn), lambda i, j, kk: (kk, j))
    out_spec = pl.BlockSpec((tm, tn), lambda i, j, kk: (i, j))
    cparams = _compiler_params(("parallel", "parallel", "arbitrary"))
    scratch = [pltpu.VMEM((tm, tn), jnp.float32)]
    out_shape = jax.ShapeDtypeStruct((m, np_), jnp.float32)

    if scale is not None:
        s = scale.astype(jnp.float32)
        o = offset.astype(jnp.float32)
        if kp != k:
            s = jnp.pad(s, (0, kp - k))
            o = jnp.pad(o, (0, kp - k))
        so_spec = pl.BlockSpec((1, tk), lambda i, j, kk: (0, kk))
        out = pl.pallas_call(
            _mm_bn_kernel,
            out_shape=out_shape,
            grid=grid,
            in_specs=[x_spec, so_spec, so_spec, w_spec],
            out_specs=out_spec,
            scratch_shapes=scratch,
            compiler_params=cparams,
        )(x2d, s.reshape(1, kp), o.reshape(1, kp), w_p)
    else:
        out = pl.pallas_call(
            _mm_plain_kernel,
            out_shape=out_shape,
            grid=grid,
            in_specs=[x_spec, w_spec],
            out_specs=out_spec,
            scratch_shapes=scratch,
            compiler_params=cparams,
        )(x2d, w_p)
    return out if np_ == n else out[:, :n]


# ----------------------------------------------------------------------------
# Kernel B: per-channel sum / sum-of-squares reduction (BatchNorm statistics)
# ----------------------------------------------------------------------------
def bn_stats(x2d, k_used):
    m, c_alloc = x2d.shape
    kp, tk = _k_plan(k_used, c_alloc)
    tm = _row_tile(m)
    n_row = pl.cdiv(m, tm)

    def kernel(x_ref, sum_ref, sq_ref):
        i = pl.program_id(1)

        @pl.when(i == 0)
        def _init():
            sum_ref[...] = jnp.zeros_like(sum_ref)
            sq_ref[...] = jnp.zeros_like(sq_ref)

        # Mask rows of the (possibly partial) last row tile.
        rows = jax.lax.broadcasted_iota(jnp.int32, x_ref.shape, 0)
        x = jnp.where(rows < (m - i * tm), x_ref[...], 0.0)
        sum_ref[...] += jnp.sum(x, axis=0, keepdims=True)
        sq_ref[...] += jnp.sum(x * x, axis=0, keepdims=True)

    s, ss = pl.pallas_call(
        kernel,
        out_shape=(jax.ShapeDtypeStruct((1, kp), jnp.float32),
                   jax.ShapeDtypeStruct((1, kp), jnp.float32)),
        grid=(kp // tk, n_row),                 # rows (reduction) last
        in_specs=[pl.BlockSpec((tm, tk), lambda j, i: (i, j))],
        out_specs=(pl.BlockSpec((1, tk), lambda j, i: (0, j)),
                   pl.BlockSpec((1, tk), lambda j, i: (0, j))),
        compiler_params=_compiler_params(("parallel", "arbitrary")),
    )(x2d)
    return s[0, :k_used], ss[0, :k_used]


def _bn_scale_offset(x2d, k_used, gamma, beta):
    """Training-mode BatchNorm folded into a per-channel (scale, offset)."""
    m = x2d.shape[0]
    s, ss = bn_stats(x2d, k_used)
    mean = s / m
    var = jnp.maximum(ss / m - mean * mean, 0.0)   # biased variance (normalization)
    scale = gamma * jax.lax.rsqrt(var + _EPS)
    offset = beta - mean * scale
    return scale, offset


# ----------------------------------------------------------------------------
# Kernel C: standalone fused BN + ReLU (norm0, norm5 + final F.relu)
# ----------------------------------------------------------------------------
def _bn_relu_kernel(x_ref, s_ref, o_ref, out_ref):
    out_ref[...] = jnp.maximum(x_ref[...] * s_ref[...] + o_ref[...], 0.0)


def bn_relu_apply(x2d, scale, offset, k_used):
    m, c_alloc = x2d.shape
    kp, tk = _k_plan(k_used, c_alloc)
    tm = _row_tile(m)
    s = scale.astype(jnp.float32)
    o = offset.astype(jnp.float32)
    if kp != k_used:
        s = jnp.pad(s, (0, kp - k_used))
        o = jnp.pad(o, (0, kp - k_used))
    out = pl.pallas_call(
        _bn_relu_kernel,
        out_shape=jax.ShapeDtypeStruct((m, kp), jnp.float32),
        grid=(pl.cdiv(m, tm), kp // tk),
        in_specs=[pl.BlockSpec((tm, tk), lambda i, j: (i, j)),
                  pl.BlockSpec((1, tk), lambda i, j: (0, j)),
                  pl.BlockSpec((1, tk), lambda i, j: (0, j))],
        out_specs=pl.BlockSpec((tm, tk), lambda i, j: (i, j)),
        compiler_params=_compiler_params(("parallel", "parallel")),
    )(x2d, s.reshape(1, kp), o.reshape(1, kp))
    return out[:, :k_used] if kp != k_used else out


# ----------------------------------------------------------------------------
# Kernel D: fused BN+ReLU + 3x3 conv (stride 1, pad 1), no im2col in HBM
# ----------------------------------------------------------------------------
def conv3x3_bn_relu(x_nhwc, w_oihw, scale, offset):
    n, h, w, cin = x_nhwc.shape
    cout = w_oihw.shape[0]
    w3 = jnp.transpose(w_oihw, (2, 3, 1, 0)).reshape(9, cin, cout)
    w3 = w3.astype(jnp.bfloat16)
    s = scale.astype(jnp.float32).reshape(1, 1, cin)
    o = offset.astype(jnp.float32).reshape(1, 1, cin)

    def kernel(x_ref, s_ref, o_ref, w_ref, out_ref, ypad_ref):
        # BN + ReLU on the whole image tile (f32), then build the zero-padded
        # halo tile directly in VMEM scratch.
        y = jnp.maximum(x_ref[0] * s_ref[...] + o_ref[...], 0.0)
        ypad_ref[...] = jnp.zeros_like(ypad_ref)
        ypad_ref[1:h + 1, 1:w + 1, :] = y
        # 9 shifted-window matmuls accumulated in f32.
        acc = jnp.zeros((h * w, cout), jnp.float32)
        for kh in range(3):
            for kw in range(3):
                a = ypad_ref[kh:kh + h, kw:kw + w, :].reshape(h * w, cin)
                acc = acc + jnp.dot(a.astype(jnp.bfloat16), w_ref[kh * 3 + kw],
                                    preferred_element_type=jnp.float32)
        out_ref[0] = acc.reshape(h, w, cout)

    return pl.pallas_call(
        kernel,
        out_shape=jax.ShapeDtypeStruct((n, h, w, cout), jnp.float32),
        grid=(n,),
        in_specs=[pl.BlockSpec((1, h, w, cin), lambda b: (b, 0, 0, 0)),
                  pl.BlockSpec((1, 1, cin), lambda b: (0, 0, 0)),
                  pl.BlockSpec((1, 1, cin), lambda b: (0, 0, 0)),
                  pl.BlockSpec((9, cin, cout), lambda b: (0, 0, 0))],
        out_specs=pl.BlockSpec((1, h, w, cout), lambda b: (b, 0, 0, 0)),
        scratch_shapes=[pltpu.VMEM((h + 2, w + 2, cin), jnp.float32)],
        compiler_params=_compiler_params(("parallel",)),
    )(x_nhwc, s, o, w3)


# ----------------------------------------------------------------------------
# conv0 (3x3, stride 2, pad 1) and pooling glue
# ----------------------------------------------------------------------------
def conv0_stride2(x_nhwc, w_oihw):
    """Single stride-2 stem conv; im2col is tiny here (9 * num_in channels)."""
    n, h, w, cin = x_nhwc.shape
    cout = w_oihw.shape[0]
    wmat = jnp.transpose(w_oihw, (2, 3, 1, 0)).reshape(9 * cin, cout)
    ho = (h + 2 - 3) // 2 + 1
    wo = (w + 2 - 3) // 2 + 1
    xp = jnp.pad(x_nhwc, ((0, 0), (1, 1), (1, 1), (0, 0)))
    cols = []
    for kh in range(3):
        for kw in range(3):
            cols.append(xp[:, kh:kh + 2 * ho:2, kw:kw + 2 * wo:2, :])
    patches = jnp.concatenate(cols, axis=-1).reshape(n * ho * wo, 9 * cin)
    y = fused_matmul(patches, wmat)
    return y.reshape(n, ho, wo, cout)


def maxpool_2x2(x):
    """nn.MaxPool2d(kernel_size=2, stride=2)."""
    n, h, w, c = x.shape
    ho, wo = h // 2, w // 2
    x = x[:, :ho * 2, :wo * 2, :]
    return jnp.maximum(jnp.maximum(x[:, 0::2, 0::2], x[:, 0::2, 1::2]),
                       jnp.maximum(x[:, 1::2, 0::2], x[:, 1::2, 1::2]))


def avgpool_transition(x):
    """nn.AvgPool2d((2,2), stride=(2,1), padding=(0,1)), count_include_pad=True."""
    n, h, w, c = x.shape
    xp = jnp.pad(x, ((0, 0), (0, 0), (1, 1), (0, 0)))
    ho = (h - 2) // 2 + 1
    wo = w + 1
    s = (xp[:, 0:2 * ho:2, 0:wo] + xp[:, 0:2 * ho:2, 1:wo + 1]
         + xp[:, 1:2 * ho:2, 0:wo] + xp[:, 1:2 * ho:2, 1:wo + 1])
    return s * 0.25


# ----------------------------------------------------------------------------
# Parameter init (deterministic, mirrors the PyTorch __init__)
# ----------------------------------------------------------------------------
def _kaiming_normal(key, shape_oihw):
    cout, cin, kh, kw = shape_oihw
    fan_in = cin * kh * kw
    std = (2.0 / fan_in) ** 0.5
    return std * jax.random.normal(key, shape_oihw, dtype=jnp.float32)


def init_densenet_params(key, num_in, growth_rate, block_config,
                         num_init_features, bn_size):
    keys = iter(jax.random.split(key, 1024))

    def conv_w(cout, cin, k):
        return _kaiming_normal(next(keys), (cout, cin, k, k))

    def bn(c):
        return (jnp.ones((c,), jnp.float32), jnp.zeros((c,), jnp.float32))

    params = {
        'conv0': conv_w(num_init_features, num_in, 3),
        'norm0': bn(num_init_features),
        'blocks': [],
    }
    num_features = num_init_features
    for i, num_layers in enumerate(block_config):
        layers = []
        for l in range(num_layers):
            nif = num_features + l * growth_rate
            layers.append({
                'norm1': bn(nif),
                'conv1': conv_w(bn_size * growth_rate, nif, 1),
                'norm2': bn(bn_size * growth_rate),
                'conv2': conv_w(growth_rate, bn_size * growth_rate, 3),
            })
        block = {'layers': layers}
        num_features += num_layers * growth_rate
        if i != len(block_config) - 1:
            assert i < 4, 'There are maximal 4 blocks.'
            block['trans_norm'] = bn(num_features)
            block['trans_conv'] = conv_w(num_features // 2, num_features, 1)
            num_features //= 2
        params['blocks'].append(block)
    params['norm5'] = bn(num_features)
    return params, num_features


# ----------------------------------------------------------------------------
# DenseNet forward
# ----------------------------------------------------------------------------
def densenet_forward(params, x_nchw):
    x = jnp.transpose(x_nchw, (0, 2, 3, 1)).astype(jnp.float32)   # -> NHWC

    # conv0 / norm0 / relu0 / pool0
    x = conv0_stride2(x, params['conv0'])
    n, h, w, c = x.shape
    x2 = x.reshape(n * h * w, c)
    s0, o0 = _bn_scale_offset(x2, c, *params['norm0'])
    x = bn_relu_apply(x2, s0, o0, c).reshape(n, h, w, c)
    x = maxpool_2x2(x)

    for block in params['blocks']:
        n, h, w, c = x.shape
        m = n * h * w
        growth = block['layers'][0]['conv2'].shape[0]
        c_final = c + len(block['layers']) * growth
        c_pad = _ceil_to(c_final, 128)          # lane-dense, 128-aligned channels
        buf = jax.lax.dynamic_update_slice(
            jnp.zeros((n, h, w, c_pad), jnp.float32), x, (0, 0, 0, 0))
        for layer in block['layers']:
            buf2d = buf.reshape(m, c_pad)
            s1, o1 = _bn_scale_offset(buf2d, c, *layer['norm1'])
            w1 = jnp.transpose(layer['conv1'][:, :, 0, 0])         # (Cin, Cmid)
            h1 = fused_matmul(buf2d, w1, s1, o1)                   # relu(bn(x)) @ W1
            cmid = h1.shape[1]
            s2, o2 = _bn_scale_offset(h1, cmid, *layer['norm2'])
            h2 = conv3x3_bn_relu(h1.reshape(n, h, w, cmid),
                                 layer['conv2'], s2, o2)           # (N,H,W,growth)
            # TODO(synk): F.dropout for drop_rate > 0 not implemented (module default drop_rate=0).
            buf = jax.lax.dynamic_update_slice(buf, h2, (0, 0, 0, c))
            c += growth
        if 'trans_conv' in block:
            buf2d = buf.reshape(m, c_pad)
            st, ot = _bn_scale_offset(buf2d, c, *block['trans_norm'])
            wt = jnp.transpose(block['trans_conv'][:, :, 0, 0])
            y = fused_matmul(buf2d, wt, st, ot)                    # (M, c//2)
            x = avgpool_transition(y.reshape(n, h, w, c // 2))
        else:
            x = buf                                                # padded buffer

    # norm5 followed by the final F.relu (fused in the Pallas BN+ReLU kernel)
    n, h, w, c_alloc = x.shape
    m = n * h * w
    c = params['norm5'][0].shape[0]
    x2 = x.reshape(m, c_alloc)
    s5, o5 = _bn_scale_offset(x2, c, *params['norm5'])
    y = bn_relu_apply(x2, s5, o5, c)[:, :c].reshape(n, h, w, c)
    return jnp.transpose(y, (0, 3, 1, 2))                          # back to NCHW


if __name__ == "__main__":
    key = jax.random.PRNGKey(0)
    kx, kparam = jax.random.split(key)

    # Small config consistent with the module's constructor parameters.
    num_in, growth_rate, block_config = 4, 8, (2, 2)
    num_init_features, bn_size = 16, 2

    x = jax.random.normal(kx, (2, num_in, 16, 16), dtype=jnp.float32)  # NCHW

    params, num_features = init_densenet_params(
        kparam, num_in=num_in, growth_rate=growth_rate,
        block_config=block_config, num_init_features=num_init_features,
        bn_size=bn_size)

    forward = jax.jit(densenet_forward)
    out = jax.block_until_ready(forward(params, x))

    # 16x16 -> conv0(s2) 8x8 -> maxpool 4x4 -> transition avgpool 2x5
    assert out.shape == (2, num_features, 2, 5), out.shape
    assert bool(jnp.all(out >= 0.0))  # final ReLU
    print("KERNEL_OK")
</pallas_src>

<mosaic_0001>
module attributes {stable_mosaic.version = 11 : i64} {
  func.func @_mm_plain_kernel(%arg0: i32, %arg1: i32, %arg2: i32, %arg3: memref<128x36xf32, #tpu.memory_space<vmem>>, %arg4: memref<36x16xbf16, #tpu.memory_space<vmem>>, %arg5: memref<128x16xf32, #tpu.memory_space<vmem>>, %arg6: memref<128x16xf32, #tpu.memory_space<vmem>>) attributes {dimension_semantics = [#tpu.dimension_semantics<parallel>, #tpu.dimension_semantics<parallel>, #tpu.dimension_semantics<arbitrary>], iteration_bounds = array<i64: 1, 1, 1>, scalar_prefetch = 0 : i64, scratch_operands = 1 : i64, tpu.core_type = #tpu.core_type<tc>, window_params = [{transform_indices = @transform_0, window_bounds = array<i64: 128, 36>}, {transform_indices = @transform_1, window_bounds = array<i64: 36, 16>}, {transform_indices = @transform_2, window_bounds = array<i64: 128, 16>}]} {
    %c0_i32 = arith.constant 0 : i32
    %0 = arith.cmpi eq, %arg2, %c0_i32 : i32
    %1 = arith.extui %0 : i1 to i32
    %c0_i32_0 = arith.constant 0 : i32
    %2 = arith.cmpi ne, %1, %c0_i32_0 : i32
    scf.if %2 {
      %cst_10 = arith.constant 0.000000e+00 : f32
      %13 = vector.broadcast %cst_10 : f32 to vector<128x16xf32>
      %c0_11 = arith.constant 0 : index
      %c0_12 = arith.constant 0 : index
      %14 = vector.load %arg6[%c0_11, %c0_12] : memref<128x16xf32, #tpu.memory_space<vmem>>, vector<128x16xf32>
      tpu.vector_store %arg6[%c0_11, %c0_12], %13 {strides = array<i32>} : memref<128x16xf32, #tpu.memory_space<vmem>>, vector<128x16xf32>,
    } else {
    }
    %c0 = arith.constant 0 : index
    %c0_1 = arith.constant 0 : index
    %3 = vector.load %arg6[%c0, %c0_1] : memref<128x16xf32, #tpu.memory_space<vmem>>, vector<128x16xf32>
    %c0_2 = arith.constant 0 : index
    %c0_3 = arith.constant 0 : index
    %4 = vector.load %arg3[%c0_2, %c0_3] : memref<128x36xf32, #tpu.memory_space<vmem>>, vector<128x36xf32>
    %5 = arith.truncf %4 : vector<128x36xf32> to vector<128x36xbf16>
    %c0_4 = arith.constant 0 : index
    %c0_5 = arith.constant 0 : index
    %6 = vector.load %arg4[%c0_4, %c0_5] : memref<36x16xbf16, #tpu.memory_space<vmem>>, vector<36x16xbf16>
    %cst = arith.constant dense<0.000000e+00> : vector<128x16xf32>
    %7 = tpu.matmul %5, %6, %cst {dimension_numbers = #tpu.dot_dimension_numbers<[1], [0], [0], [1], [0, 0, 1, 1], [], []>} : vector<128x36xbf16>, vector<36x16xbf16>, vector<128x16xf32> -> vector<128x16xf32>
    %8 = arith.addf %3, %7 : vector<128x16xf32>
    %c0_6 = arith.constant 0 : index
    %c0_7 = arith.constant 0 : index
    %9 = vector.load %arg6[%c0_6, %c0_7] : memref<128x16xf32, #tpu.memory_space<vmem>>, vector<128x16xf32>
    tpu.vector_store %arg6[%c0_6, %c0_7], %8 {strides = array<i32>} : memref<128x16xf32, #tpu.memory_space<vmem>>, vector<128x16xf32>,
    %c0_i32_8 = arith.constant 0 : i32
    %10 = arith.cmpi eq, %arg2, %c0_i32_8 : i32
    %11 = arith.extui %10 : i1 to i32
    %c0_i32_9 = arith.constant 0 : i32
    %12 = arith.cmpi ne, %11, %c0_i32_9 : i32
    scf.if %12 {
      %c0_10 = arith.constant 0 : index
      %c0_11 = arith.constant 0 : index
      %13 = vector.load %arg6[%c0_10, %c0_11] : memref<128x16xf32, #tpu.memory_space<vmem>>, vector<128x16xf32>
      %c0_12 = arith.constant 0 : index
      %c0_13 = arith.constant 0 : index
      %14 = vector.load %arg5[%c0_12, %c0_13] : memref<128x16xf32, #tpu.memory_space<vmem>>, vector<128x16xf32>
      tpu.vector_store %arg5[%c0_12, %c0_13], %13 {strides = array<i32>} : memref<128x16xf32, #tpu.memory_space<vmem>>, vector<128x16xf32>,
    } else {
    }
    return
  }
  func.func @transform_0(%arg0: i32, %arg1: i32, %arg2: i32) -> (i32, i32) {
    %c0_i32 = arith.constant 0 : i32
    return %arg0, %arg2 : i32, i32
  }
  func.func @transform_1(%arg0: i32, %arg1: i32, %arg2: i32) -> (i32, i32) {
    %c0_i32 = arith.constant 0 : i32
    return %arg2, %arg1 : i32, i32
  }
  func.func @transform_2(%arg0: i32, %arg1: i32, %arg2: i32) -> (i32, i32) {
    %c0_i32 = arith.constant 0 : i32
    return %arg0, %arg1 : i32, i32
  }
}

module attributes {stable_mosaic.version = 11 : i64} {
  func.func @kernel(%arg0: i32, %arg1: i32, %arg2: memref<128x16xf32, #tpu.memory_space<vmem>>, %arg3: memref<1x16xf32, #tpu.memory_space<vmem>>, %arg4: memref<1x16xf32, #tpu.memory_space<vmem>>) attributes {dimension_semantics = [#tpu.dimension_semantics<parallel>, #tpu.dimension_semantics<arbitrary>], iteration_bounds = array<i64: 1, 1>, scalar_prefetch = 0 : i64, scratch_operands = 0 : i64, tpu.core_type = #tpu.core_type<tc>, window_params = [{transform_indices = @transform_0, window_bounds = array<i64: 128, 16>}, {transform_indices = @transform_1, window_bounds = array<i64: 1, 16>}, {transform_indices = @transform_2, window_bounds = array<i64: 1, 16>}]} {
    %c0_i32 = arith.constant 0 : i32
    %0 = arith.cmpi eq, %arg1, %c0_i32 : i32
    %1 = arith.extui %0 : i1 to i32
    %c0_i32_0 = arith.constant 0 : i32
    %2 = arith.cmpi ne, %1, %c0_i32_0 : i32
    scf.if %2 {
      %cst_13 = arith.constant 0.000000e+00 : f32
      %22 = vector.broadcast %cst_13 : f32 to vector<1x16xf32>
      %c0_14 = arith.constant 0 : index
      %c0_15 = arith.constant 0 : index
      %23 = vector.load %arg3[%c0_14, %c0_15] : memref<1x16xf32, #tpu.memory_space<vmem>>, vector<1x16xf32>
      tpu.vector_store %arg3[%c0_14, %c0_15], %22 {strides = array<i32>} : memref<1x16xf32, #tpu.memory_space<vmem>>, vector<1x16xf32>,
      %cst_16 = arith.constant 0.000000e+00 : f32
      %24 = vector.broadcast %cst_16 : f32 to vector<1x16xf32>
      %c0_17 = arith.constant 0 : index
      %c0_18 = arith.constant 0 : index
      %25 = vector.load %arg4[%c0_17, %c0_18] : memref<1x16xf32, #tpu.memory_space<vmem>>, vector<1x16xf32>
      tpu.vector_store %arg4[%c0_17, %c0_18], %24 {strides = array<i32>} : memref<1x16xf32, #tpu.memory_space<vmem>>, vector<1x16xf32>,
    } else {
    }
    %3 = tpu.iota {dimensions = array<i32: 0>} : vector<128x16xi32>
    %c128_i32 = arith.constant 128 : i32
    %4 = arith.muli %arg1, %c128_i32 : i32
    %c128_i32_1 = arith.constant 128 : i32
    %5 = arith.subi %c128_i32_1, %4 : i32
    %6 = vector.broadcast %5 : i32 to vector<128x16xi32>
    %7 = arith.cmpi slt, %3, %6 : vector<128x16xi32>
    %c0 = arith.constant 0 : index
    %c0_2 = arith.constant 0 : index
    %8 = vector.load %arg2[%c0, %c0_2] : memref<128x16xf32, #tpu.memory_space<vmem>>, vector<128x16xf32>
    %cst = arith.constant 0.000000e+00 : f32
    %9 = vector.broadcast %cst : f32 to vector<128x16xf32>
    %10 = arith.select %7, %8, %9 : vector<128x16xi1>, vector<128x16xf32>
    %c0_3 = arith.constant 0 : index
    %c0_4 = arith.constant 0 : index
    %11 = vector.load %arg3[%c0_3, %c0_4] : memref<1x16xf32, #tpu.memory_space<vmem>>, vector<1x16xf32>
    %cst_5 = arith.constant dense<0.000000e+00> : vector<16xf32>
    %12 = vector.multi_reduction <add>, %10, %cst_5 [0] : vector<128x16xf32> to vector<16xf32>
    %13 = vector.shape_cast %12 : vector<16xf32> to vector<1x16xf32>
    %14 = arith.addf %11, %13 : vector<1x16xf32>
    %c0_6 = arith.constant 0 : index
    %c0_7 = arith.constant 0 : index
    %15 = vector.load %arg3[%c0_6, %c0_7] : memref<1x16xf32, #tpu.memory_space<vmem>>, vector<1x16xf32>
    tpu.vector_store %arg3[%c0_6, %c0_7], %14 {strides = array<i32>} : memref<1x16xf32, #tpu.memory_space<vmem>>, vector<1x16xf32>,
    %c0_8 = arith.constant 0 : index
    %c0_9 = arith.constant 0 : index
    %16 = vector.load %arg4[%c0_8, %c0_9] : memref<1x16xf32, #tpu.memory_space<vmem>>, vector<1x16xf32>
    %17 = arith.mulf %10, %10 : vector<128x16xf32>
    %cst_10 = arith.constant dense<0.000000e+00> : vector<16xf32>
    %18 = vector.multi_reduction <add>, %17, %cst_10 [0] : vector<128x16xf32> to vector<16xf32>
    %19 = vector.shape_cast %18 : vector<16xf32> to vector<1x16xf32>
    %20 = arith.addf %16, %19 : vector<1x16xf32>
    %c0_11 = arith.constant 0 : index
    %c0_12 = arith.constant 0 : index
    %21 = vector.load %arg4[%c0_11, %c0_12] : memref<1x16xf32, #tpu.memory_space<vmem>>, vector<1x16xf32>
    tpu.vector_store %arg4[%c0_11, %c0_12], %20 {strides = array<i32>} : memref<1x16xf32, #tpu.memory_space<vmem>>, vector<1x16xf32>,
    return
  }
  func.func @transform_0(%arg0: i32, %arg1: i32) -> (i32, i32) {
    %c0_i32 = arith.constant 0 : i32
    return %arg1, %arg0 : i32, i32
  }
  func.func @transform_1(%arg0: i32, %arg1: i32) -> (i32, i32) {
    %c0_i32 = arith.constant 0 : i32
    %c0_i32_0 = arith.constant 0 : i32
    return %c0_i32, %arg0 : i32, i32
  }
  func.func @transform_2(%arg0: i32, %arg1: i32) -> (i32, i32) {
    %c0_i32 = arith.constant 0 : i32
    %c0_i32_0 = arith.constant 0 : i32
    return %c0_i32, %arg0 : i32, i32
  }
}

module attributes {stable_mosaic.version = 11 : i64} {
  func.func @_bn_relu_kernel(%arg0: i32, %arg1: i32, %arg2: memref<128x16xf32, #tpu.memory_space<vmem>>, %arg3: memref<1x16xf32, #tpu.memory_space<vmem>>, %arg4: memref<1x16xf32, #tpu.memory_space<vmem>>, %arg5: memref<128x16xf32, #tpu.memory_space<vmem>>) attributes {dimension_semantics = [#tpu.dimension_semantics<parallel>, #tpu.dimension_semantics<parallel>], iteration_bounds = array<i64: 1, 1>, scalar_prefetch = 0 : i64, scratch_operands = 0 : i64, tpu.core_type = #tpu.core_type<tc>, window_params = [{transform_indices = @transform_0, window_bounds = array<i64: 128, 16>}, {transform_indices = @transform_1, window_bounds = array<i64: 1, 16>}, {transform_indices = @transform_2, window_bounds = array<i64: 1, 16>}, {transform_indices = @transform_3, window_bounds = array<i64: 128, 16>}]} {
    %c0 = arith.constant 0 : index
    %c0_0 = arith.constant 0 : index
    %0 = vector.load %arg2[%c0, %c0_0] : memref<128x16xf32, #tpu.memory_space<vmem>>, vector<128x16xf32>
    %c0_1 = arith.constant 0 : index
    %c0_2 = arith.constant 0 : index
    %1 = vector.load %arg3[%c0_1, %c0_2] : memref<1x16xf32, #tpu.memory_space<vmem>>, vector<1x16xf32>
    %2 = vector.broadcast %1 : vector<1x16xf32> to vector<128x16xf32>
    %3 = arith.mulf %0, %2 : vector<128x16xf32>
    %c0_3 = arith.constant 0 : index
    %c0_4 = arith.constant 0 : index
    %4 = vector.load %arg4[%c0_3, %c0_4] : memref<1x16xf32, #tpu.memory_space<vmem>>, vector<1x16xf32>
    %5 = vector.broadcast %4 : vector<1x16xf32> to vector<128x16xf32>
    %6 = arith.addf %3, %5 : vector<128x16xf32>
    %cst = arith.constant 0.000000e+00 : f32
    %7 = vector.broadcast %cst : f32 to vector<128x16xf32>
    %8 = arith.maximumf %6, %7 : vector<128x16xf32>
    %c0_5 = arith.constant 0 : index
    %c0_6 = arith.constant 0 : index
    %9 = vector.load %arg5[%c0_5, %c0_6] : memref<128x16xf32, #tpu.memory_space<vmem>>, vector<128x16xf32>
    tpu.vector_store %arg5[%c0_5, %c0_6], %8 {strides = array<i32>} : memref<128x16xf32, #tpu.memory_space<vmem>>, vector<128x16xf32>,
    return
  }
  func.func @transform_0(%arg0: i32, %arg1: i32) -> (i32, i32) {
    %c0_i32 = arith.constant 0 : i32
    return %arg0, %arg1 : i32, i32
  }
  func.func @transform_1(%arg0: i32, %arg1: i32) -> (i32, i32) {
    %c0_i32 = arith.constant 0 : i32
    %c0_i32_0 = arith.constant 0 : i32
    return %c0_i32, %arg1 : i32, i32
  }
  func.func @transform_2(%arg0: i32, %arg1: i32) -> (i32, i32) {
    %c0_i32 = arith.constant 0 : i32
    %c0_i32_0 = arith.constant 0 : i32
    return %c0_i32, %arg1 : i32, i32
  }
  func.func @transform_3(%arg0: i32, %arg1: i32) -> (i32, i32) {
    %c0_i32 = arith.constant 0 : i32
    return %arg0, %arg1 : i32, i32
  }
}

module attributes {stable_mosaic.version = 11 : i64} {
  func.func @kernel(%arg0: i32, %arg1: i32, %arg2: memref<32x128xf32, #tpu.memory_space<vmem>>, %arg3: memref<1x128xf32, #tpu.memory_space<vmem>>, %arg4: memref<1x128xf32, #tpu.memory_space<vmem>>) attributes {dimension_semantics = [#tpu.dimension_semantics<parallel>, #tpu.dimension_semantics<arbitrary>], iteration_bounds = array<i64: 1, 1>, scalar_prefetch = 0 : i64, scratch_operands = 0 : i64, tpu.core_type = #tpu.core_type<tc>, window_params = [{transform_indices = @transform_0, window_bounds = array<i64: 32, 128>}, {transform_indices = @transform_1, window_bounds = array<i64: 1, 128>}, {transform_indices = @transform_2, window_bounds = array<i64: 1, 128>}]} {
    %c0_i32 = arith.constant 0 : i32
    %0 = arith.cmpi eq, %arg1, %c0_i32 : i32
    %1 = arith.extui %0 : i1 to i32
    %c0_i32_0 = arith.constant 0 : i32
    %2 = arith.cmpi ne, %1, %c0_i32_0 : i32
    scf.if %2 {
      %cst_13 = arith.constant 0.000000e+00 : f32
      %22 = vector.broadcast %cst_13 : f32 to vector<1x128xf32>
      %c0_14 = arith.constant 0 : index
      %c0_15 = arith.constant 0 : index
      %23 = vector.load %arg3[%c0_14, %c0_15] : memref<1x128xf32, #tpu.memory_space<vmem>>, vector<1x128xf32>
      tpu.vector_store %arg3[%c0_14, %c0_15], %22 {strides = array<i32>} : memref<1x128xf32, #tpu.memory_space<vmem>>, vector<1x128xf32>,
      %cst_16 = arith.constant 0.000000e+00 : f32
      %24 = vector.broadcast %cst_16 : f32 to vector<1x128xf32>
      %c0_17 = arith.constant 0 : index
      %c0_18 = arith.constant 0 : index
      %25 = vector.load %arg4[%c0_17, %c0_18] : memref<1x128xf32, #tpu.memory_space<vmem>>, vector<1x128xf32>
      tpu.vector_store %arg4[%c0_17, %c0_18], %24 {strides = array<i32>} : memref<1x128xf32, #tpu.memory_space<vmem>>, vector<1x128xf32>,
    } else {
    }
    %3 = tpu.iota {dimensions = array<i32: 0>} : vector<32x128xi32>
    %c32_i32 = arith.constant 32 : i32
    %4 = arith.muli %arg1, %c32_i32 : i32
    %c32_i32_1 = arith.constant 32 : i32
    %5 = arith.subi %c32_i32_1, %4 : i32
    %6 = vector.broadcast %5 : i32 to vector<32x128xi32>
    %7 = arith.cmpi slt, %3, %6 : vector<32x128xi32>
    %c0 = arith.constant 0 : index
    %c0_2 = arith.constant 0 : index
    %8 = vector.load %arg2[%c0, %c0_2] : memref<32x128xf32, #tpu.memory_space<vmem>>, vector<32x128xf32>
    %cst = arith.constant 0.000000e+00 : f32
    %9 = vector.broadcast %cst : f32 to vector<32x128xf32>
    %10 = arith.select %7, %8, %9 : vector<32x128xi1>, vector<32x128xf32>
    %c0_3 = arith.constant 0 : index
    %c0_4 = arith.constant 0 : index
    %11 = vector.load %arg3[%c0_3, %c0_4] : memref<1x128xf32, #tpu.memory_space<vmem>>, vector<1x128xf32>
    %cst_5 = arith.constant dense<0.000000e+00> : vector<128xf32>
    %12 = vector.multi_reduction <add>, %10, %cst_5 [0] : vector<32x128xf32> to vector<128xf32>
    %13 = vector.shape_cast %12 : vector<128xf32> to vector<1x128xf32>
    %14 = arith.addf %11, %13 : vector<1x128xf32>
    %c0_6 = arith.constant 0 : index
    %c0_7 = arith.constant 0 : index
    %15 = vector.load %arg3[%c0_6, %c0_7] : memref<1x128xf32, #tpu.memory_space<vmem>>, vector<1x128xf32>
    tpu.vector_store %arg3[%c0_6, %c0_7], %14 {strides = array<i32>} : memref<1x128xf32, #tpu.memory_space<vmem>>, vector<1x128xf32>,
    %c0_8 = arith.constant 0 : index
    %c0_9 = arith.constant 0 : index
    %16 = vector.load %arg4[%c0_8, %c0_9] : memref<1x128xf32, #tpu.memory_space<vmem>>, vector<1x128xf32>
    %17 = arith.mulf %10, %10 : vector<32x128xf32>
    %cst_10 = arith.constant dense<0.000000e+00> : vector<128xf32>
    %18 = vector.multi_reduction <add>, %17, %cst_10 [0] : vector<32x128xf32> to vector<128xf32>
    %19 = vector.shape_cast %18 : vector<128xf32> to vector<1x128xf32>
    %20 = arith.addf %16, %19 : vector<1x128xf32>
    %c0_11 = arith.constant 0 : index
    %c0_12 = arith.constant 0 : index
    %21 = vector.load %arg4[%c0_11, %c0_12] : memref<1x128xf32, #tpu.memory_space<vmem>>, vector<1x128xf32>
    tpu.vector_store %arg4[%c0_11, %c0_12], %20 {strides = array<i32>} : memref<1x128xf32, #tpu.memory_space<vmem>>, vector<1x128xf32>,
    return
  }
  func.func @transform_0(%arg0: i32, %arg1: i32) -> (i32, i32) {
    %c0_i32 = arith.constant 0 : i32
    return %arg1, %arg0 : i32, i32
  }
  func.func @transform_1(%arg0: i32, %arg1: i32) -> (i32, i32) {
    %c0_i32 = arith.constant 0 : i32
    %c0_i32_0 = arith.constant 0 : i32
    return %c0_i32, %arg0 : i32, i32
  }
  func.func @transform_2(%arg0: i32, %arg1: i32) -> (i32, i32) {
    %c0_i32 = arith.constant 0 : i32
    %c0_i32_0 = arith.constant 0 : i32
    return %c0_i32, %arg0 : i32, i32
  }
}

module attributes {stable_mosaic.version = 11 : i64} {
  func.func @kernel(%arg0: i32, %arg1: i32, %arg2: memref<32x16xf32, #tpu.memory_space<vmem>>, %arg3: memref<1x16xf32, #tpu.memory_space<vmem>>, %arg4: memref<1x16xf32, #tpu.memory_space<vmem>>) attributes {dimension_semantics = [#tpu.dimension_semantics<parallel>, #tpu.dimension_semantics<arbitrary>], iteration_bounds = array<i64: 1, 1>, scalar_prefetch = 0 : i64, scratch_operands = 0 : i64, tpu.core_type = #tpu.core_type<tc>, window_params = [{transform_indices = @transform_0, window_bounds = array<i64: 32, 16>}, {transform_indices = @transform_1, window_bounds = array<i64: 1, 16>}, {transform_indices = @transform_2, window_bounds = array<i64: 1, 16>}]} {
    %c0_i32 = arith.constant 0 : i32
    %0 = arith.cmpi eq, %arg1, %c0_i32 : i32
    %1 = arith.extui %0 : i1 to i32
    %c0_i32_0 = arith.constant 0 : i32
    %2 = arith.cmpi ne, %1, %c0_i32_0 : i32
    scf.if %2 {
      %cst_13 = arith.constant 0.000000e+00 : f32
      %22 = vector.broadcast %cst_13 : f32 to vector<1x16xf32>
      %c0_14 = arith.constant 0 : index
      %c0_15 = arith.constant 0 : index
      %23 = vector.load %arg3[%c0_14, %c0_15] : memref<1x16xf32, #tpu.memory_space<vmem>>, vector<1x16xf32>
      tpu.vector_store %arg3[%c0_14, %c0_15], %22 {strides = array<i32>} : memref<1x16xf32, #tpu.memory_space<vmem>>, vector<1x16xf32>,
      %cst_16 = arith.constant 0.000000e+00 : f32
      %24 = vector.broadcast %cst_16 : f32 to vector<1x16xf32>
      %c0_17 = arith.constant 0 : index
      %c0_18 = arith.constant 0 : index
      %25 = vector.load %arg4[%c0_17, %c0_18] : memref<1x16xf32, #tpu.memory_space<vmem>>, vector<1x16xf32>
      tpu.vector_store %arg4[%c0_17, %c0_18], %24 {strides = array<i32>} : memref<1x16xf32, #tpu.memory_space<vmem>>, vector<1x16xf32>,
    } else {
    }
    %3 = tpu.iota {dimensions = array<i32: 0>} : vector<32x16xi32>
    %c32_i32 = arith.constant 32 : i32
    %4 = arith.muli %arg1, %c32_i32 : i32
    %c32_i32_1 = arith.constant 32 : i32
    %5 = arith.subi %c32_i32_1, %4 : i32
    %6 = vector.broadcast %5 : i32 to vector<32x16xi32>
    %7 = arith.cmpi slt, %3, %6 : vector<32x16xi32>
    %c0 = arith.constant 0 : index
    %c0_2 = arith.constant 0 : index
    %8 = vector.load %arg2[%c0, %c0_2] : memref<32x16xf32, #tpu.memory_space<vmem>>, vector<32x16xf32>
    %cst = arith.constant 0.000000e+00 : f32
    %9 = vector.broadcast %cst : f32 to vector<32x16xf32>
    %10 = arith.select %7, %8, %9 : vector<32x16xi1>, vector<32x16xf32>
    %c0_3 = arith.constant 0 : index
    %c0_4 = arith.constant 0 : index
    %11 = vector.load %arg3[%c0_3, %c0_4] : memref<1x16xf32, #tpu.memory_space<vmem>>, vector<1x16xf32>
    %cst_5 = arith.constant dense<0.000000e+00> : vector<16xf32>
    %12 = vector.multi_reduction <add>, %10, %cst_5 [0] : vector<32x16xf32> to vector<16xf32>
    %13 = vector.shape_cast %12 : vector<16xf32> to vector<1x16xf32>
    %14 = arith.addf %11, %13 : vector<1x16xf32>
    %c0_6 = arith.constant 0 : index
    %c0_7 = arith.constant 0 : index
    %15 = vector.load %arg3[%c0_6, %c0_7] : memref<1x16xf32, #tpu.memory_space<vmem>>, vector<1x16xf32>
    tpu.vector_store %arg3[%c0_6, %c0_7], %14 {strides = array<i32>} : memref<1x16xf32, #tpu.memory_space<vmem>>, vector<1x16xf32>,
    %c0_8 = arith.constant 0 : index
    %c0_9 = arith.constant 0 : index
    %16 = vector.load %arg4[%c0_8, %c0_9] : memref<1x16xf32, #tpu.memory_space<vmem>>, vector<1x16xf32>
    %17 = arith.mulf %10, %10 : vector<32x16xf32>
    %cst_10 = arith.constant dense<0.000000e+00> : vector<16xf32>
    %18 = vector.multi_reduction <add>, %17, %cst_10 [0] : vector<32x16xf32> to vector<16xf32>
    %19 = vector.shape_cast %18 : vector<16xf32> to vector<1x16xf32>
    %20 = arith.addf %16, %19 : vector<1x16xf32>
    %c0_11 = arith.constant 0 : index
    %c0_12 = arith.constant 0 : index
    %21 = vector.load %arg4[%c0_11, %c0_12] : memref<1x16xf32, #tpu.memory_space<vmem>>, vector<1x16xf32>
    tpu.vector_store %arg4[%c0_11, %c0_12], %20 {strides = array<i32>} : memref<1x16xf32, #tpu.memory_space<vmem>>, vector<1x16xf32>,
    return
  }
  func.func @transform_0(%arg0: i32, %arg1: i32) -> (i32, i32) {
    %c0_i32 = arith.constant 0 : i32
    return %arg1, %arg0 : i32, i32
  }
  func.func @transform_1(%arg0: i32, %arg1: i32) -> (i32, i32) {
    %c0_i32 = arith.constant 0 : i32
    %c0_i32_0 = arith.constant 0 : i32
    return %c0_i32, %arg0 : i32, i32
  }
  func.func @transform_2(%arg0: i32, %arg1: i32) -> (i32, i32) {
    %c0_i32 = arith.constant 0 : i32
    %c0_i32_0 = arith.constant 0 : i32
    return %c0_i32, %arg0 : i32, i32
  }
}

module attributes {stable_mosaic.version = 11 : i64} {
  func.func @_mm_bn_kernel(%arg0: i32, %arg1: i32, %arg2: i32, %arg3: memref<32x128xf32, #tpu.memory_space<vmem>>, %arg4: memref<1x128xf32, #tpu.memory_space<vmem>>, %arg5: memref<1x128xf32, #tpu.memory_space<vmem>>, %arg6: memref<128x16xbf16, #tpu.memory_space<vmem>>, %arg7: memref<32x16xf32, #tpu.memory_space<vmem>>, %arg8: memref<32x16xf32, #tpu.memory_space<vmem>>) attributes {dimension_semantics = [#tpu.dimension_semantics<parallel>, #tpu.dimension_semantics<parallel>, #tpu.dimension_semantics<arbitrary>], iteration_bounds = array<i64: 1, 1, 1>, scalar_prefetch = 0 : i64, scratch_operands = 1 : i64, tpu.core_type = #tpu.core_type<tc>, window_params = [{transform_indices = @transform_0, window_bounds = array<i64: 32, 128>}, {transform_indices = @transform_1, window_bounds = array<i64: 1, 128>}, {transform_indices = @transform_2, window_bounds = array<i64: 1, 128>}, {transform_indices = @transform_3, window_bounds = array<i64: 128, 16>}, {transform_indices = @transform_4, window_bounds = array<i64: 32, 16>}]} {
    %c0_i32 = arith.constant 0 : i32
    %0 = arith.cmpi eq, %arg2, %c0_i32 : i32
    %1 = arith.extui %0 : i1 to i32
    %c0_i32_0 = arith.constant 0 : i32
    %2 = arith.cmpi ne, %1, %c0_i32_0 : i32
    scf.if %2 {
      %cst_15 = arith.constant 0.000000e+00 : f32
      %21 = vector.broadcast %cst_15 : f32 to vector<32x16xf32>
      %c0_16 = arith.constant 0 : index
      %c0_17 = arith.constant 0 : index
      %22 = vector.load %arg8[%c0_16, %c0_17] : memref<32x16xf32, #tpu.memory_space<vmem>>, vector<32x16xf32>
      tpu.vector_store %arg8[%c0_16, %c0_17], %21 {strides = array<i32>} : memref<32x16xf32, #tpu.memory_space<vmem>>, vector<32x16xf32>,
    } else {
    }
    %c0 = arith.constant 0 : index
    %c0_1 = arith.constant 0 : index
    %3 = vector.load %arg3[%c0, %c0_1] : memref<32x128xf32, #tpu.memory_space<vmem>>, vector<32x128xf32>
    %c0_2 = arith.constant 0 : index
    %c0_3 = arith.constant 0 : index
    %4 = vector.load %arg4[%c0_2, %c0_3] : memref<1x128xf32, #tpu.memory_space<vmem>>, vector<1x128xf32>
    %5 = vector.broadcast %4 : vector<1x128xf32> to vector<32x128xf32>
    %6 = arith.mulf %3, %5 : vector<32x128xf32>
    %c0_4 = arith.constant 0 : index
    %c0_5 = arith.constant 0 : index
    %7 = vector.load %arg5[%c0_4, %c0_5] : memref<1x128xf32, #tpu.memory_space<vmem>>, vector<1x128xf32>
    %8 = vector.broadcast %7 : vector<1x128xf32> to vector<32x128xf32>
    %9 = arith.addf %6, %8 : vector<32x128xf32>
    %cst = arith.constant 0.000000e+00 : f32
    %10 = vector.broadcast %cst : f32 to vector<32x128xf32>
    %11 = arith.maximumf %9, %10 : vector<32x128xf32>
    %c0_6 = arith.constant 0 : index
    %c0_7 = arith.constant 0 : index
    %12 = vector.load %arg8[%c0_6, %c0_7] : memref<32x16xf32, #tpu.memory_space<vmem>>, vector<32x16xf32>
    %13 = arith.truncf %11 : vector<32x128xf32> to vector<32x128xbf16>
    %c0_8 = arith.constant 0 : index
    %c0_9 = arith.constant 0 : index
    %14 = vector.load %arg6[%c0_8, %c0_9] : memref<128x16xbf16, #tpu.memory_space<vmem>>, vector<128x16xbf16>
    %cst_10 = arith.constant dense<0.000000e+00> : vector<32x16xf32>
    %15 = tpu.matmul %13, %14, %cst_10 {dimension_numbers = #tpu.dot_dimension_numbers<[1], [0], [0], [1], [0, 0, 1, 1], [], []>} : vector<32x128xbf16>, vector<128x16xbf16>, vector<32x16xf32> -> vector<32x16xf32>
    %16 = arith.addf %12, %15 : vector<32x16xf32>
    %c0_11 = arith.constant 0 : index
    %c0_12 = arith.constant 0 : index
    %17 = vector.load %arg8[%c0_11, %c0_12] : memref<32x16xf32, #tpu.memory_space<vmem>>, vector<32x16xf32>
    tpu.vector_store %arg8[%c0_11, %c0_12], %16 {strides = array<i32>} : memref<32x16xf32, #tpu.memory_space<vmem>>, vector<32x16xf32>,
    %c0_i32_13 = arith.constant 0 : i32
    %18 = arith.cmpi eq, %arg2, %c0_i32_13 : i32
    %19 = arith.extui %18 : i1 to i32
    %c0_i32_14 = arith.constant 0 : i32
    %20 = arith.cmpi ne, %19, %c0_i32_14 : i32
    scf.if %20 {
      %c0_15 = arith.constant 0 : index
      %c0_16 = arith.constant 0 : index
      %21 = vector.load %arg8[%c0_15, %c0_16] : memref<32x16xf32, #tpu.memory_space<vmem>>, vector<32x16xf32>
      %c0_17 = arith.constant 0 : index
      %c0_18 = arith.constant 0 : index
      %22 = vector.load %arg7[%c0_17, %c0_18] : memref<32x16xf32, #tpu.memory_space<vmem>>, vector<32x16xf32>
      tpu.vector_store %arg7[%c0_17, %c0_18], %21 {strides = array<i32>} : memref<32x16xf32, #tpu.memory_space<vmem>>, vector<32x16xf32>,
    } else {
    }
    return
  }
  func.func @transform_0(%arg0: i32, %arg1: i32, %arg2: i32) -> (i32, i32) {
    %c0_i32 = arith.constant 0 : i32
    return %arg0, %arg2 : i32, i32
  }
  func.func @transform_1(%arg0: i32, %arg1: i32, %arg2: i32) -> (i32, i32) {
    %c0_i32 = arith.constant 0 : i32
    %c0_i32_0 = arith.constant 0 : i32
    return %c0_i32, %arg2 : i32, i32
  }
  func.func @transform_2(%arg0: i32, %arg1: i32, %arg2: i32) -> (i32, i32) {
    %c0_i32 = arith.constant 0 : i32
    %c0_i32_0 = arith.constant 0 : i32
    return %c0_i32, %arg2 : i32, i32
  }
  func.func @transform_3(%arg0: i32, %arg1: i32, %arg2: i32) -> (i32, i32) {
    %c0_i32 = arith.constant 0 : i32
    return %arg2, %arg1 : i32, i32
  }
  func.func @transform_4(%arg0: i32, %arg1: i32, %arg2: i32) -> (i32, i32) {
    %c0_i32 = arith.constant 0 : i32
    return %arg0, %arg1 : i32, i32
  }
}

module attributes {stable_mosaic.version = 11 : i64} {
  func.func @kernel(%arg0: i32, %arg1: memref<1x4x4x16xf32, #tpu.memory_space<vmem>>, %arg2: memref<1x1x16xf32, #tpu.memory_space<vmem>>, %arg3: memref<1x1x16xf32, #tpu.memory_space<vmem>>, %arg4: memref<9x16x8xbf16, #tpu.memory_space<vmem>>, %arg5: memref<1x4x4x8xf32, #tpu.memory_space<vmem>>, %arg6: memref<6x6x16xf32, #tpu.memory_space<vmem>>) attributes {dimension_semantics = [#tpu.dimension_semantics<parallel>], iteration_bounds = array<i64: 2>, scalar_prefetch = 0 : i64, scratch_operands = 1 : i64, tpu.core_type = #tpu.core_type<tc>, window_params = [{transform_indices = @transform_0, window_bounds = array<i64: 1, 4, 4, 16>}, {pipeline_mode = #tpu.pipeline_mode<synchronous>, transform_indices = @transform_1, window_bounds = array<i64: 1, 1, 16>}, {pipeline_mode = #tpu.pipeline_mode<synchronous>, transform_indices = @transform_2, window_bounds = array<i64: 1, 1, 16>}, {pipeline_mode = #tpu.pipeline_mode<synchronous>, transform_indices = @transform_3, window_bounds = array<i64: 9, 16, 8>}, {transform_indices = @transform_4, window_bounds = array<i64: 1, 4, 4, 8>}]} {
    %c0 = arith.constant 0 : index
    %c0_0 = arith.constant 0 : index
    %c0_1 = arith.constant 0 : index
    %c0_2 = arith.constant 0 : index
    %0 = vector.load %arg1[%c0, %c0_0, %c0_1, %c0_2] : memref<1x4x4x16xf32, #tpu.memory_space<vmem>>, vector<1x4x4x16xf32>
    %1 = vector.shape_cast %0 : vector<1x4x4x16xf32> to vector<4x4x16xf32>
    %c0_3 = arith.constant 0 : index
    %c0_4 = arith.constant 0 : index
    %c0_5 = arith.constant 0 : index
    %2 = vector.load %arg2[%c0_3, %c0_4, %c0_5] : memref<1x1x16xf32, #tpu.memory_space<vmem>>, vector<1x1x16xf32>
    %3 = vector.broadcast %2 : vector<1x1x16xf32> to vector<4x4x16xf32>
    %4 = arith.mulf %1, %3 : vector<4x4x16xf32>
    %c0_6 = arith.constant 0 : index
    %c0_7 = arith.constant 0 : index
    %c0_8 = arith.constant 0 : index
    %5 = vector.load %arg3[%c0_6, %c0_7, %c0_8] : memref<1x1x16xf32, #tpu.memory_space<vmem>>, vector<1x1x16xf32>
    %6 = vector.broadcast %5 : vector<1x1x16xf32> to vector<4x4x16xf32>
    %7 = arith.addf %4, %6 : vector<4x4x16xf32>
    %cst = arith.constant 0.000000e+00 : f32
    %8 = vector.broadcast %cst : f32 to vector<4x4x16xf32>
    %9 = arith.maximumf %7, %8 : vector<4x4x16xf32>
    %cst_9 = arith.constant 0.000000e+00 : f32
    %10 = vector.broadcast %cst_9 : f32 to vector<6x6x16xf32>
    %c0_10 = arith.constant 0 : index
    %c0_11 = arith.constant 0 : index
    %c0_12 = arith.constant 0 : index
    %11 = vector.load %arg6[%c0_10, %c0_11, %c0_12] : memref<6x6x16xf32, #tpu.memory_space<vmem>>, vector<6x6x16xf32>
    tpu.vector_store %arg6[%c0_10, %c0_11, %c0_12], %10 {strides = array<i32>} : memref<6x6x16xf32, #tpu.memory_space<vmem>>, vector<6x6x16xf32>,
    %c1 = arith.constant 1 : index
    %c1_13 = arith.constant 1 : index
    %c0_14 = arith.constant 0 : index
    %12 = vector.load %arg6[%c1, %c1_13, %c0_14] : memref<6x6x16xf32, #tpu.memory_space<vmem>>, vector<4x4x16xf32>
    tpu.vector_store %arg6[%c1, %c1_13, %c0_14], %9 {strides = array<i32>} : memref<6x6x16xf32, #tpu.memory_space<vmem>>, vector<4x4x16xf32>,
    %cst_15 = arith.constant 0.000000e+00 : f32
    %13 = vector.broadcast %cst_15 : f32 to vector<16x8xf32>
    %c0_16 = arith.constant 0 : index
    %c0_17 = arith.constant 0 : index
    %c0_18 = arith.constant 0 : index
    %14 = vector.load %arg6[%c0_16, %c0_17, %c0_18] : memref<6x6x16xf32, #tpu.memory_space<vmem>>, vector<4x4x16xf32>
    %15 = vector.shape_cast %14 : vector<4x4x16xf32> to vector<16x16xf32>
    %16 = arith.truncf %15 : vector<16x16xf32> to vector<16x16xbf16>
    %c0_19 = arith.constant 0 : index
    %c0_20 = arith.constant 0 : index
    %c0_21 = arith.constant 0 : index
    %17 = vector.load %arg4[%c0_19, %c0_20, %c0_21] : memref<9x16x8xbf16, #tpu.memory_space<vmem>>, vector<1x16x8xbf16>
    %18 = vector.shape_cast %17 : vector<1x16x8xbf16> to vector<16x8xbf16>
    %cst_22 = arith.constant dense<0.000000e+00> : vector<16x8xf32>
    %19 = tpu.matmul %16, %18, %cst_22 {dimension_numbers = #tpu.dot_dimension_numbers<[1], [0], [0], [1], [0, 0, 1, 1], [], []>} : vector<16x16xbf16>, vector<16x8xbf16>, vector<16x8xf32> -> vector<16x8xf32>
    %20 = arith.addf %13, %19 : vector<16x8xf32>
    %c0_23 = arith.constant 0 : index
    %c1_24 = arith.constant 1 : index
    %c0_25 = arith.constant 0 : index
    %21 = vector.load %arg6[%c0_23, %c1_24, %c0_25] : memref<6x6x16xf32, #tpu.memory_space<vmem>>, vector<4x4x16xf32>
    %22 = vector.shape_cast %21 : vector<4x4x16xf32> to vector<16x16xf32>
    %23 = arith.truncf %22 : vector<16x16xf32> to vector<16x16xbf16>
    %c1_26 = arith.constant 1 : index
    %c0_27 = arith.constant 0 : index
    %c0_28 = arith.constant 0 : index
    %24 = vector.load %arg4[%c1_26, %c0_27, %c0_28] : memref<9x16x8xbf16, #tpu.memory_space<vmem>>, vector<1x16x8xbf16>
    %25 = vector.shape_cast %24 : vector<1x16x8xbf16> to vector<16x8xbf16>
    %cst_29 = arith.constant dense<0.000000e+00> : vector<16x8xf32>
    %26 = tpu.matmul %23, %25, %cst_29 {dimension_numbers = #tpu.dot_dimension_numbers<[1], [0], [0], [1], [0, 0, 1, 1], [], []>} : vector<16x16xbf16>, vector<16x8xbf16>, vector<16x8xf32> -> vector<16x8xf32>
    %27 = arith.addf %20, %26 : vector<16x8xf32>
    %c0_30 = arith.constant 0 : index
    %c2 = arith.constant 2 : index
    %c0_31 = arith.constant 0 : index
    %28 = vector.load %arg6[%c0_30, %c2, %c0_31] : memref<6x6x16xf32, #tpu.memory_space<vmem>>, vector<4x4x16xf32>
    %29 = vector.shape_cast %28 : vector<4x4x16xf32> to vector<16x16xf32>
    %30 = arith.truncf %29 : vector<16x16xf32> to vector<16x16xbf16>
    %c2_32 = arith.constant 2 : index
    %c0_33 = arith.constant 0 : index
    %c0_34 = arith.constant 0 : index
    %31 = vector.load %arg4[%c2_32, %c0_33, %c0_34] : memref<9x16x8xbf16, #tpu.memory_space<vmem>>, vector<1x16x8xbf16>
    %32 = vector.shape_cast %31 : vector<1x16x8xbf16> to vector<16x8xbf16>
    %cst_35 = arith.constant dense<0.000000e+00> : vector<16x8xf32>
    %33 = tpu.matmul %30, %32, %cst_35 {dimension_numbers = #tpu.dot_dimension_numbers<[1], [0], [0], [1], [0, 0, 1, 1], [], []>} : vector<16x16xbf16>, vector<16x8xbf16>, vector<16x8xf32> -> vector<16x8xf32>
    %34 = arith.addf %27, %33 : vector<16x8xf32>
    %c1_36 = arith.constant 1 : index
    %c0_37 = arith.constant 0 : index
    %c0_38 = arith.constant 0 : index
    %35 = vector.load %arg6[%c1_36, %c0_37, %c0_38] : memref<6x6x16xf32, #tpu.memory_space<vmem>>, vector<4x4x16xf32>
    %36 = vector.shape_cast %35 : vector<4x4x16xf32> to vector<16x16xf32>
    %37 = arith.truncf %36 : vector<16x16xf32> to vector<16x16xbf16>
    %c3 = arith.constant 3 : index
    %c0_39 = arith.constant 0 : index
    %c0_40 = arith.constant 0 : index
    %38 = vector.load %arg4[%c3, %c0_39, %c0_40] : memref<9x16x8xbf16, #tpu.memory_space<vmem>>, vector<1x16x8xbf16>
    %39 = vector.shape_cast %38 : vector<1x16x8xbf16> to vector<16x8xbf16>
    %cst_41 = arith.constant dense<0.000000e+00> : vector<16x8xf32>
    %40 = tpu.matmul %37, %39, %cst_41 {dimension_numbers = #tpu.dot_dimension_numbers<[1], [0], [0], [1], [0, 0, 1, 1], [], []>} : vector<16x16xbf16>, vector<16x8xbf16>, vector<16x8xf32> -> vector<16x8xf32>
    %41 = arith.addf %34, %40 : vector<16x8xf32>
    %c1_42 = arith.constant 1 : index
    %c1_43 = arith.constant 1 : index
    %c0_44 = arith.constant 0 : index
    %42 = vector.load %arg6[%c1_42, %c1_43, %c0_44] : memref<6x6x16xf32, #tpu.memory_space<vmem>>, vector<4x4x16xf32>
    %43 = vector.shape_cast %42 : vector<4x4x16xf32> to vector<16x16xf32>
    %44 = arith.truncf %43 : vector<16x16xf32> to vector<16x16xbf16>
    %c4 = arith.constant 4 : index
    %c0_45 = arith.constant 0 : index
    %c0_46 = arith.constant 0 : index
    %45 = vector.load %arg4[%c4, %c0_45, %c0_46] : memref<9x16x8xbf16, #tpu.memory_space<vmem>>, vector<1x16x8xbf16>
    %46 = vector.shape_cast %45 : vector<1x16x8xbf16> to vector<16x8xbf16>
    %cst_47 = arith.constant dense<0.000000e+00> : vector<16x8xf32>
    %47 = tpu.matmul %44, %46, %cst_47 {dimension_numbers = #tpu.dot_dimension_numbers<[1], [0], [0], [1], [0, 0, 1, 1], [], []>} : vector<16x16xbf16>, vector<16x8xbf16>, vector<16x8xf32> -> vector<16x8xf32>
    %48 = arith.addf %41, %47 : vector<16x8xf32>
    %c1_48 = arith.constant 1 : index
    %c2_49 = arith.constant 2 : index
    %c0_50 = arith.constant 0 : index
    %49 = vector.load %arg6[%c1_48, %c2_49, %c0_50] : memref<6x6x16xf32, #tpu.memory_space<vmem>>, vector<4x4x16xf32>
    %50 = vector.shape_cast %49 : vector<4x4x16xf32> to vector<16x16xf32>
    %51 = arith.truncf %50 : vector<16x16xf32> to vector<16x16xbf16>
    %c5 = arith.constant 5 : index
    %c0_51 = arith.constant 0 : index
    %c0_52 = arith.constant 0 : index
    %52 = vector.load %arg4[%c5, %c0_51, %c0_52] : memref<9x16x8xbf16, #tpu.memory_space<vmem>>, vector<1x16x8xbf16>
    %53 = vector.shape_cast %52 : vector<1x16x8xbf16> to vector<16x8xbf16>
    %cst_53 = arith.constant dense<0.000000e+00> : vector<16x8xf32>
    %54 = tpu.matmul %51, %53, %cst_53 {dimension_numbers = #tpu.dot_dimension_numbers<[1], [0], [0], [1], [0, 0, 1, 1], [], []>} : vector<16x16xbf16>, vector<16x8xbf16>, vector<16x8xf32> -> vector<16x8xf32>
    %55 = arith.addf %48, %54 : vector<16x8xf32>
    %c2_54 = arith.constant 2 : index
    %c0_55 = arith.constant 0 : index
    %c0_56 = arith.constant 0 : index
    %56 = vector.load %arg6[%c2_54, %c0_55, %c0_56] : memref<6x6x16xf32, #tpu.memory_space<vmem>>, vector<4x4x16xf32>
    %57 = vector.shape_cast %56 : vector<4x4x16xf32> to vector<16x16xf32>
    %58 = arith.truncf %57 : vector<16x16xf32> to vector<16x16xbf16>
    %c6 = arith.constant 6 : index
    %c0_57 = arith.constant 0 : index
    %c0_58 = arith.constant 0 : index
    %59 = vector.load %arg4[%c6, %c0_57, %c0_58] : memref<9x16x8xbf16, #tpu.memory_space<vmem>>, vector<1x16x8xbf16>
    %60 = vector.shape_cast %59 : vector<1x16x8xbf16> to vector<16x8xbf16>
    %cst_59 = arith.constant dense<0.000000e+00> : vector<16x8xf32>
    %61 = tpu.matmul %58, %60, %cst_59 {dimension_numbers = #tpu.dot_dimension_numbers<[1], [0], [0], [1], [0, 0, 1, 1], [], []>} : vector<16x16xbf16>, vector<16x8xbf16>, vector<16x8xf32> -> vector<16x8xf32>
    %62 = arith.addf %55, %61 : vector<16x8xf32>
    %c2_60 = arith.constant 2 : index
    %c1_61 = arith.constant 1 : index
    %c0_62 = arith.constant 0 : index
    %63 = vector.load %arg6[%c2_60, %c1_61, %c0_62] : memref<6x6x16xf32, #tpu.memory_space<vmem>>, vector<4x4x16xf32>
    %64 = vector.shape_cast %63 : vector<4x4x16xf32> to vector<16x16xf32>
    %65 = arith.truncf %64 : vector<16x16xf32> to vector<16x16xbf16>
    %c7 = arith.constant 7 : index
    %c0_63 = arith.constant 0 : index
    %c0_64 = arith.constant 0 : index
    %66 = vector.load %arg4[%c7, %c0_63, %c0_64] : memref<9x16x8xbf16, #tpu.memory_space<vmem>>, vector<1x16x8xbf16>
    %67 = vector.shape_cast %66 : vector<1x16x8xbf16> to vector<16x8xbf16>
    %cst_65 = arith.constant dense<0.000000e+00> : vector<16x8xf32>
    %68 = tpu.matmul %65, %67, %cst_65 {dimension_numbers = #tpu.dot_dimension_numbers<[1], [0], [0], [1], [0, 0, 1, 1], [], []>} : vector<16x16xbf16>, vector<16x8xbf16>, vector<16x8xf32> -> vector<16x8xf32>
    %69 = arith.addf %62, %68 : vector<16x8xf32>
    %c2_66 = arith.constant 2 : index
    %c2_67 = arith.constant 2 : index
    %c0_68 = arith.constant 0 : index
    %70 = vector.load %arg6[%c2_66, %c2_67, %c0_68] : memref<6x6x16xf32, #tpu.memory_space<vmem>>, vector<4x4x16xf32>
    %71 = vector.shape_cast %70 : vector<4x4x16xf32> to vector<16x16xf32>
    %72 = arith.truncf %71 : vector<16x16xf32> to vector<16x16xbf16>
    %c8 = arith.constant 8 : index
    %c0_69 = arith.constant 0 : index
    %c0_70 = arith.constant 0 : index
    %73 = vector.load %arg4[%c8, %c0_69, %c0_70] : memref<9x16x8xbf16, #tpu.memory_space<vmem>>, vector<1x16x8xbf16>
    %74 = vector.shape_cast %73 : vector<1x16x8xbf16> to vector<16x8xbf16>
    %cst_71 = arith.constant dense<0.000000e+00> : vector<16x8xf32>
    %75 = tpu.matmul %72, %74, %cst_71 {dimension_numbers = #tpu.dot_dimension_numbers<[1], [0], [0], [1], [0, 0, 1, 1], [], []>} : vector<16x16xbf16>, vector<16x8xbf16>, vector<16x8xf32> -> vector<16x8xf32>
    %76 = arith.addf %69, %75 : vector<16x8xf32>
    %77 = vector.shape_cast %76 : vector<16x8xf32> to vector<4x4x8xf32>
    %c0_72 = arith.constant 0 : index
    %c0_73 = arith.constant 0 : index
    %c0_74 = arith.constant 0 : index
    %c0_75 = arith.constant 0 : index
    %78 = vector.load %arg5[%c0_72, %c0_73, %c0_74, %c0_75] : memref<1x4x4x8xf32, #tpu.memory_space<vmem>>, vector<1x4x4x8xf32>
    %79 = vector.shape_cast %78 : vector<1x4x4x8xf32> to vector<4x4x8xf32>
    %80 = vector.shape_cast %77 : vector<4x4x8xf32> to vector<1x4x4x8xf32>
    tpu.vector_store %arg5[%c0_72, %c0_73, %c0_74, %c0_75], %80 {strides = array<i32>} : memref<1x4x4x8xf32, #tpu.memory_space<vmem>>, vector<1x4x4x8xf32>,
    return
  }
  func.func @transform_0(%arg0: i32) -> (i32, i32, i32, i32) {
    %c0_i32 = arith.constant 0 : i32
    %c0_i32_0 = arith.constant 0 : i32
    %c0_i32_1 = arith.constant 0 : i32
    %c0_i32_2 = arith.constant 0 : i32
    return %arg0, %c0_i32, %c0_i32_0, %c0_i32_1 : i32, i32, i32, i32
  }
  func.func @transform_1(%arg0: i32) -> (i32, i32, i32) {
    %c0_i32 = arith.constant 0 : i32
    %c0_i32_0 = arith.constant 0 : i32
    %c0_i32_1 = arith.constant 0 : i32
    %c0_i32_2 = arith.constant 0 : i32
    return %c0_i32, %c0_i32_0, %c0_i32_1 : i32, i32, i32
  }
  func.func @transform_2(%arg0: i32) -> (i32, i32, i32) {
    %c0_i32 = arith.constant 0 : i32
    %c0_i32_0 = arith.constant 0 : i32
    %c0_i32_1 = arith.constant 0 : i32
    %c0_i32_2 = arith.constant 0 : i32
    return %c0_i32, %c0_i32_0, %c0_i32_1 : i32, i32, i32
  }
  func.func @transform_3(%arg0: i32) -> (i32, i32, i32) {
    %c0_i32 = arith.constant 0 : i32
    %c0_i32_0 = arith.constant 0 : i32
    %c0_i32_1 = arith.constant 0 : i32
    %c0_i32_2 = arith.constant 0 : i32
    return %c0_i32, %c0_i32_0, %c0_i32_1 : i32, i32, i32
  }
  func.func @transform_4(%arg0: i32) -> (i32, i32, i32, i32) {
    %c0_i32 = arith.constant 0 : i32
    %c0_i32_0 = arith.constant 0 : i32
    %c0_i32_1 = arith.constant 0 : i32
    %c0_i32_2 = arith.constant 0 : i32
    return %arg0, %c0_i32, %c0_i32_0, %c0_i32_1 : i32, i32, i32, i32
  }
}

module attributes {stable_mosaic.version = 11 : i64} {
  func.func @kernel(%arg0: i32, %arg1: i32, %arg2: memref<24x128xf32, #tpu.memory_space<vmem>>, %arg3: memref<1x128xf32, #tpu.memory_space<vmem>>, %arg4: memref<1x128xf32, #tpu.memory_space<vmem>>) attributes {dimension_semantics = [#tpu.dimension_semantics<parallel>, #tpu.dimension_semantics<arbitrary>], iteration_bounds = array<i64: 1, 1>, scalar_prefetch = 0 : i64, scratch_operands = 0 : i64, tpu.core_type = #tpu.core_type<tc>, window_params = [{transform_indices = @transform_0, window_bounds = array<i64: 24, 128>}, {transform_indices = @transform_1, window_bounds = array<i64: 1, 128>}, {transform_indices = @transform_2, window_bounds = array<i64: 1, 128>}]} {
    %c0_i32 = arith.constant 0 : i32
    %0 = arith.cmpi eq, %arg1, %c0_i32 : i32
    %1 = arith.extui %0 : i1 to i32
    %c0_i32_0 = arith.constant 0 : i32
    %2 = arith.cmpi ne, %1, %c0_i32_0 : i32
    scf.if %2 {
      %cst_12 = arith.constant 0.000000e+00 : f32
      %22 = vector.broadcast %cst_12 : f32 to vector<1x128xf32>
      %c0_13 = arith.constant 0 : index
      %c0_14 = arith.constant 0 : index
      %23 = vector.load %arg3[%c0_13, %c0_14] : memref<1x128xf32, #tpu.memory_space<vmem>>, vector<1x128xf32>
      tpu.vector_store %arg3[%c0_13, %c0_14], %22 {strides = array<i32>} : memref<1x128xf32, #tpu.memory_space<vmem>>, vector<1x128xf32>,
      %cst_15 = arith.constant 0.000000e+00 : f32
      %24 = vector.broadcast %cst_15 : f32 to vector<1x128xf32>
      %c0_16 = arith.constant 0 : index
      %c0_17 = arith.constant 0 : index
      %25 = vector.load %arg4[%c0_16, %c0_17] : memref<1x128xf32, #tpu.memory_space<vmem>>, vector<1x128xf32>
      tpu.vector_store %arg4[%c0_16, %c0_17], %24 {strides = array<i32>} : memref<1x128xf32, #tpu.memory_space<vmem>>, vector<1x128xf32>,
    } else {
    }
    %3 = tpu.iota {dimensions = array<i32: 0>} : vector<24x128xi32>
    %c24_i32 = arith.constant 24 : i32
    %4 = arith.muli %arg1, %c24_i32 : i32
    %c20_i32 = arith.constant 20 : i32
    %5 = arith.subi %c20_i32, %4 : i32
    %6 = vector.broadcast %5 : i32 to vector<24x128xi32>
    %7 = arith.cmpi slt, %3, %6 : vector<24x128xi32>
    %c0 = arith.constant 0 : index
    %c0_1 = arith.constant 0 : index
    %8 = vector.load %arg2[%c0, %c0_1] : memref<24x128xf32, #tpu.memory_space<vmem>>, vector<24x128xf32>
    %cst = arith.constant 0.000000e+00 : f32
    %9 = vector.broadcast %cst : f32 to vector<24x128xf32>
    %10 = arith.select %7, %8, %9 : vector<24x128xi1>, vector<24x128xf32>
    %c0_2 = arith.constant 0 : index
    %c0_3 = arith.constant 0 : index
    %11 = vector.load %arg3[%c0_2, %c0_3] : memref<1x128xf32, #tpu.memory_space<vmem>>, vector<1x128xf32>
    %cst_4 = arith.constant dense<0.000000e+00> : vector<128xf32>
    %12 = vector.multi_reduction <add>, %10, %cst_4 [0] : vector<24x128xf32> to vector<128xf32>
    %13 = vector.shape_cast %12 : vector<128xf32> to vector<1x128xf32>
    %14 = arith.addf %11, %13 : vector<1x128xf32>
    %c0_5 = arith.constant 0 : index
    %c0_6 = arith.constant 0 : index
    %15 = vector.load %arg3[%c0_5, %c0_6] : memref<1x128xf32, #tpu.memory_space<vmem>>, vector<1x128xf32>
    tpu.vector_store %arg3[%c0_5, %c0_6], %14 {strides = array<i32>} : memref<1x128xf32, #tpu.memory_space<vmem>>, vector<1x128xf32>,
    %c0_7 = arith.constant 0 : index
    %c0_8 = arith.constant 0 : index
    %16 = vector.load %arg4[%c0_7, %c0_8] : memref<1x128xf32, #tpu.memory_space<vmem>>, vector<1x128xf32>
    %17 = arith.mulf %10, %10 : vector<24x128xf32>
    %cst_9 = arith.constant dense<0.000000e+00> : vector<128xf32>
    %18 = vector.multi_reduction <add>, %17, %cst_9 [0] : vector<24x128xf32> to vector<128xf32>
    %19 = vector.shape_cast %18 : vector<128xf32> to vector<1x128xf32>
    %20 = arith.addf %16, %19 : vector<1x128xf32>
    %c0_10 = arith.constant 0 : index
    %c0_11 = arith.constant 0 : index
    %21 = vector.load %arg4[%c0_10, %c0_11] : memref<1x128xf32, #tpu.memory_space<vmem>>, vector<1x128xf32>
    tpu.vector_store %arg4[%c0_10, %c0_11], %20 {strides = array<i32>} : memref<1x128xf32, #tpu.memory_space<vmem>>, vector<1x128xf32>,
    return
  }
  func.func @transform_0(%arg0: i32, %arg1: i32) -> (i32, i32) {
    %c0_i32 = arith.constant 0 : i32
    return %arg1, %arg0 : i32, i32
  }
  func.func @transform_1(%arg0: i32, %arg1: i32) -> (i32, i32) {
    %c0_i32 = arith.constant 0 : i32
    %c0_i32_0 = arith.constant 0 : i32
    return %c0_i32, %arg0 : i32, i32
  }
  func.func @transform_2(%arg0: i32, %arg1: i32) -> (i32, i32) {
    %c0_i32 = arith.constant 0 : i32
    %c0_i32_0 = arith.constant 0 : i32
    return %c0_i32, %arg0 : i32, i32
  }
}

module attributes {stable_mosaic.version = 11 : i64} {
  func.func @kernel(%arg0: i32, %arg1: i32, %arg2: memref<24x16xf32, #tpu.memory_space<vmem>>, %arg3: memref<1x16xf32, #tpu.memory_space<vmem>>, %arg4: memref<1x16xf32, #tpu.memory_space<vmem>>) attributes {dimension_semantics = [#tpu.dimension_semantics<parallel>, #tpu.dimension_semantics<arbitrary>], iteration_bounds = array<i64: 1, 1>, scalar_prefetch = 0 : i64, scratch_operands = 0 : i64, tpu.core_type = #tpu.core_type<tc>, window_params = [{transform_indices = @transform_0, window_bounds = array<i64: 24, 16>}, {transform_indices = @transform_1, window_bounds = array<i64: 1, 16>}, {transform_indices = @transform_2, window_bounds = array<i64: 1, 16>}]} {
    %c0_i32 = arith.constant 0 : i32
    %0 = arith.cmpi eq, %arg1, %c0_i32 : i32
    %1 = arith.extui %0 : i1 to i32
    %c0_i32_0 = arith.constant 0 : i32
    %2 = arith.cmpi ne, %1, %c0_i32_0 : i32
    scf.if %2 {
      %cst_12 = arith.constant 0.000000e+00 : f32
      %22 = vector.broadcast %cst_12 : f32 to vector<1x16xf32>
      %c0_13 = arith.constant 0 : index
      %c0_14 = arith.constant 0 : index
      %23 = vector.load %arg3[%c0_13, %c0_14] : memref<1x16xf32, #tpu.memory_space<vmem>>, vector<1x16xf32>
      tpu.vector_store %arg3[%c0_13, %c0_14], %22 {strides = array<i32>} : memref<1x16xf32, #tpu.memory_space<vmem>>, vector<1x16xf32>,
      %cst_15 = arith.constant 0.000000e+00 : f32
      %24 = vector.broadcast %cst_15 : f32 to vector<1x16xf32>
      %c0_16 = arith.constant 0 : index
      %c0_17 = arith.constant 0 : index
      %25 = vector.load %arg4[%c0_16, %c0_17] : memref<1x16xf32, #tpu.memory_space<vmem>>, vector<1x16xf32>
      tpu.vector_store %arg4[%c0_16, %c0_17], %24 {strides = array<i32>} : memref<1x16xf32, #tpu.memory_space<vmem>>, vector<1x16xf32>,
    } else {
    }
    %3 = tpu.iota {dimensions = array<i32: 0>} : vector<24x16xi32>
    %c24_i32 = arith.constant 24 : i32
    %4 = arith.muli %arg1, %c24_i32 : i32
    %c20_i32 = arith.constant 20 : i32
    %5 = arith.subi %c20_i32, %4 : i32
    %6 = vector.broadcast %5 : i32 to vector<24x16xi32>
    %7 = arith.cmpi slt, %3, %6 : vector<24x16xi32>
    %c0 = arith.constant 0 : index
    %c0_1 = arith.constant 0 : index
    %8 = vector.load %arg2[%c0, %c0_1] : memref<24x16xf32, #tpu.memory_space<vmem>>, vector<24x16xf32>
    %cst = arith.constant 0.000000e+00 : f32
    %9 = vector.broadcast %cst : f32 to vector<24x16xf32>
    %10 = arith.select %7, %8, %9 : vector<24x16xi1>, vector<24x16xf32>
    %c0_2 = arith.constant 0 : index
    %c0_3 = arith.constant 0 : index
    %11 = vector.load %arg3[%c0_2, %c0_3] : memref<1x16xf32, #tpu.memory_space<vmem>>, vector<1x16xf32>
    %cst_4 = arith.constant dense<0.000000e+00> : vector<16xf32>
    %12 = vector.multi_reduction <add>, %10, %cst_4 [0] : vector<24x16xf32> to vector<16xf32>
    %13 = vector.shape_cast %12 : vector<16xf32> to vector<1x16xf32>
    %14 = arith.addf %11, %13 : vector<1x16xf32>
    %c0_5 = arith.constant 0 : index
    %c0_6 = arith.constant 0 : index
    %15 = vector.load %arg3[%c0_5, %c0_6] : memref<1x16xf32, #tpu.memory_space<vmem>>, vector<1x16xf32>
    tpu.vector_store %arg3[%c0_5, %c0_6], %14 {strides = array<i32>} : memref<1x16xf32, #tpu.memory_space<vmem>>, vector<1x16xf32>,
    %c0_7 = arith.constant 0 : index
    %c0_8 = arith.constant 0 : index
    %16 = vector.load %arg4[%c0_7, %c0_8] : memref<1x16xf32, #tpu.memory_space<vmem>>, vector<1x16xf32>
    %17 = arith.mulf %10, %10 : vector<24x16xf32>
    %cst_9 = arith.constant dense<0.000000e+00> : vector<16xf32>
    %18 = vector.multi_reduction <add>, %17, %cst_9 [0] : vector<24x16xf32> to vector<16xf32>
    %19 = vector.shape_cast %18 : vector<16xf32> to vector<1x16xf32>
    %20 = arith.addf %16, %19 : vector<1x16xf32>
    %c0_10 = arith.constant 0 : index
    %c0_11 = arith.constant 0 : index
    %21 = vector.load %arg4[%c0_10, %c0_11] : memref<1x16xf32, #tpu.memory_space<vmem>>, vector<1x16xf32>
    tpu.vector_store %arg4[%c0_10, %c0_11], %20 {strides = array<i32>} : memref<1x16xf32, #tpu.memory_space<vmem>>, vector<1x16xf32>,
    return
  }
  func.func @transform_0(%arg0: i32, %arg1: i32) -> (i32, i32) {
    %c0_i32 = arith.constant 0 : i32
    return %arg1, %arg0 : i32, i32
  }
  func.func @transform_1(%arg0: i32, %arg1: i32) -> (i32, i32) {
    %c0_i32 = arith.constant 0 : i32
    %c0_i32_0 = arith.constant 0 : i32
    return %c0_i32, %arg0 : i32, i32
  }
  func.func @transform_2(%arg0: i32, %arg1: i32) -> (i32, i32) {
    %c0_i32 = arith.constant 0 : i32
    %c0_i32_0 = arith.constant 0 : i32
    return %c0_i32, %arg0 : i32, i32
  }
}

module attributes {stable_mosaic.version = 11 : i64} {
  func.func @_mm_bn_kernel(%arg0: i32, %arg1: i32, %arg2: i32, %arg3: memref<24x128xf32, #tpu.memory_space<vmem>>, %arg4: memref<1x128xf32, #tpu.memory_space<vmem>>, %arg5: memref<1x128xf32, #tpu.memory_space<vmem>>, %arg6: memref<128x16xbf16, #tpu.memory_space<vmem>>, %arg7: memref<24x16xf32, #tpu.memory_space<vmem>>, %arg8: memref<24x16xf32, #tpu.memory_space<vmem>>) attributes {dimension_semantics = [#tpu.dimension_semantics<parallel>, #tpu.dimension_semantics<parallel>, #tpu.dimension_semantics<arbitrary>], iteration_bounds = array<i64: 1, 1, 1>, scalar_prefetch = 0 : i64, scratch_operands = 1 : i64, tpu.core_type = #tpu.core_type<tc>, window_params = [{transform_indices = @transform_0, window_bounds = array<i64: 24, 128>}, {transform_indices = @transform_1, window_bounds = array<i64: 1, 128>}, {transform_indices = @transform_2, window_bounds = array<i64: 1, 128>}, {transform_indices = @transform_3, window_bounds = array<i64: 128, 16>}, {transform_indices = @transform_4, window_bounds = array<i64: 24, 16>}]} {
    %c0_i32 = arith.constant 0 : i32
    %0 = arith.cmpi eq, %arg2, %c0_i32 : i32
    %1 = arith.extui %0 : i1 to i32
    %c0_i32_0 = arith.constant 0 : i32
    %2 = arith.cmpi ne, %1, %c0_i32_0 : i32
    scf.if %2 {
      %cst_15 = arith.constant 0.000000e+00 : f32
      %21 = vector.broadcast %cst_15 : f32 to vector<24x16xf32>
      %c0_16 = arith.constant 0 : index
      %c0_17 = arith.constant 0 : index
      %22 = vector.load %arg8[%c0_16, %c0_17] : memref<24x16xf32, #tpu.memory_space<vmem>>, vector<24x16xf32>
      tpu.vector_store %arg8[%c0_16, %c0_17], %21 {strides = array<i32>} : memref<24x16xf32, #tpu.memory_space<vmem>>, vector<24x16xf32>,
    } else {
    }
    %c0 = arith.constant 0 : index
    %c0_1 = arith.constant 0 : index
    %3 = vector.load %arg3[%c0, %c0_1] : memref<24x128xf32, #tpu.memory_space<vmem>>, vector<24x128xf32>
    %c0_2 = arith.constant 0 : index
    %c0_3 = arith.constant 0 : index
    %4 = vector.load %arg4[%c0_2, %c0_3] : memref<1x128xf32, #tpu.memory_space<vmem>>, vector<1x128xf32>
    %5 = vector.broadcast %4 : vector<1x128xf32> to vector<24x128xf32>
    %6 = arith.mulf %3, %5 : vector<24x128xf32>
    %c0_4 = arith.constant 0 : index
    %c0_5 = arith.constant 0 : index
    %7 = vector.load %arg5[%c0_4, %c0_5] : memref<1x128xf32, #tpu.memory_space<vmem>>, vector<1x128xf32>
    %8 = vector.broadcast %7 : vector<1x128xf32> to vector<24x128xf32>
    %9 = arith.addf %6, %8 : vector<24x128xf32>
    %cst = arith.constant 0.000000e+00 : f32
    %10 = vector.broadcast %cst : f32 to vector<24x128xf32>
    %11 = arith.maximumf %9, %10 : vector<24x128xf32>
    %c0_6 = arith.constant 0 : index
    %c0_7 = arith.constant 0 : index
    %12 = vector.load %arg8[%c0_6, %c0_7] : memref<24x16xf32, #tpu.memory_space<vmem>>, vector<24x16xf32>
    %13 = arith.truncf %11 : vector<24x128xf32> to vector<24x128xbf16>
    %c0_8 = arith.constant 0 : index
    %c0_9 = arith.constant 0 : index
    %14 = vector.load %arg6[%c0_8, %c0_9] : memref<128x16xbf16, #tpu.memory_space<vmem>>, vector<128x16xbf16>
    %cst_10 = arith.constant dense<0.000000e+00> : vector<24x16xf32>
    %15 = tpu.matmul %13, %14, %cst_10 {dimension_numbers = #tpu.dot_dimension_numbers<[1], [0], [0], [1], [0, 0, 1, 1], [], []>} : vector<24x128xbf16>, vector<128x16xbf16>, vector<24x16xf32> -> vector<24x16xf32>
    %16 = arith.addf %12, %15 : vector<24x16xf32>
    %c0_11 = arith.constant 0 : index
    %c0_12 = arith.constant 0 : index
    %17 = vector.load %arg8[%c0_11, %c0_12] : memref<24x16xf32, #tpu.memory_space<vmem>>, vector<24x16xf32>
    tpu.vector_store %arg8[%c0_11, %c0_12], %16 {strides = array<i32>} : memref<24x16xf32, #tpu.memory_space<vmem>>, vector<24x16xf32>,
    %c0_i32_13 = arith.constant 0 : i32
    %18 = arith.cmpi eq, %arg2, %c0_i32_13 : i32
    %19 = arith.extui %18 : i1 to i32
    %c0_i32_14 = arith.constant 0 : i32
    %20 = arith.cmpi ne, %19, %c0_i32_14 : i32
    scf.if %20 {
      %c0_15 = arith.constant 0 : index
      %c0_16 = arith.constant 0 : index
      %21 = vector.load %arg8[%c0_15, %c0_16] : memref<24x16xf32, #tpu.memory_space<vmem>>, vector<24x16xf32>
      %c0_17 = arith.constant 0 : index
      %c0_18 = arith.constant 0 : index
      %22 = vector.load %arg7[%c0_17, %c0_18] : memref<24x16xf32, #tpu.memory_space<vmem>>, vector<24x16xf32>
      tpu.vector_store %arg7[%c0_17, %c0_18], %21 {strides = array<i32>} : memref<24x16xf32, #tpu.memory_space<vmem>>, vector<24x16xf32>,
    } else {
    }
    return
  }
  func.func @transform_0(%arg0: i32, %arg1: i32, %arg2: i32) -> (i32, i32) {
    %c0_i32 = arith.constant 0 : i32
    return %arg0, %arg2 : i32, i32
  }
  func.func @transform_1(%arg0: i32, %arg1: i32, %arg2: i32) -> (i32, i32) {
    %c0_i32 = arith.constant 0 : i32
    %c0_i32_0 = arith.constant 0 : i32
    return %c0_i32, %arg2 : i32, i32
  }
  func.func @transform_2(%arg0: i32, %arg1: i32, %arg2: i32) -> (i32, i32) {
    %c0_i32 = arith.constant 0 : i32
    %c0_i32_0 = arith.constant 0 : i32
    return %c0_i32, %arg2 : i32, i32
  }
  func.func @transform_3(%arg0: i32, %arg1: i32, %arg2: i32) -> (i32, i32) {
    %c0_i32 = arith.constant 0 : i32
    return %arg2, %arg1 : i32, i32
  }
  func.func @transform_4(%arg0: i32, %arg1: i32, %arg2: i32) -> (i32, i32) {
    %c0_i32 = arith.constant 0 : i32
    return %arg0, %arg1 : i32, i32
  }
}

module attributes {stable_mosaic.version = 11 : i64} {
  func.func @kernel(%arg0: i32, %arg1: memref<1x2x5x16xf32, #tpu.memory_space<vmem>>, %arg2: memref<1x1x16xf32, #tpu.memory_space<vmem>>, %arg3: memref<1x1x16xf32, #tpu.memory_space<vmem>>, %arg4: memref<9x16x8xbf16, #tpu.memory_space<vmem>>, %arg5: memref<1x2x5x8xf32, #tpu.memory_space<vmem>>, %arg6: memref<4x7x16xf32, #tpu.memory_space<vmem>>) attributes {dimension_semantics = [#tpu.dimension_semantics<parallel>], iteration_bounds = array<i64: 2>, scalar_prefetch = 0 : i64, scratch_operands = 1 : i64, tpu.core_type = #tpu.core_type<tc>, window_params = [{transform_indices = @transform_0, window_bounds = array<i64: 1, 2, 5, 16>}, {pipeline_mode = #tpu.pipeline_mode<synchronous>, transform_indices = @transform_1, window_bounds = array<i64: 1, 1, 16>}, {pipeline_mode = #tpu.pipeline_mode<synchronous>, transform_indices = @transform_2, window_bounds = array<i64: 1, 1, 16>}, {pipeline_mode = #tpu.pipeline_mode<synchronous>, transform_indices = @transform_3, window_bounds = array<i64: 9, 16, 8>}, {transform_indices = @transform_4, window_bounds = array<i64: 1, 2, 5, 8>}]} {
    %c0 = arith.constant 0 : index
    %c0_0 = arith.constant 0 : index
    %c0_1 = arith.constant 0 : index
    %c0_2 = arith.constant 0 : index
    %0 = vector.load %arg1[%c0, %c0_0, %c0_1, %c0_2] : memref<1x2x5x16xf32, #tpu.memory_space<vmem>>, vector<1x2x5x16xf32>
    %1 = vector.shape_cast %0 : vector<1x2x5x16xf32> to vector<2x5x16xf32>
    %c0_3 = arith.constant 0 : index
    %c0_4 = arith.constant 0 : index
    %c0_5 = arith.constant 0 : index
    %2 = vector.load %arg2[%c0_3, %c0_4, %c0_5] : memref<1x1x16xf32, #tpu.memory_space<vmem>>, vector<1x1x16xf32>
    %3 = vector.broadcast %2 : vector<1x1x16xf32> to vector<2x5x16xf32>
    %4 = arith.mulf %1, %3 : vector<2x5x16xf32>
    %c0_6 = arith.constant 0 : index
    %c0_7 = arith.constant 0 : index
    %c0_8 = arith.constant 0 : index
    %5 = vector.load %arg3[%c0_6, %c0_7, %c0_8] : memref<1x1x16xf32, #tpu.memory_space<vmem>>, vector<1x1x16xf32>
    %6 = vector.broadcast %5 : vector<1x1x16xf32> to vector<2x5x16xf32>
    %7 = arith.addf %4, %6 : vector<2x5x16xf32>
    %cst = arith.constant 0.000000e+00 : f32
    %8 = vector.broadcast %cst : f32 to vector<2x5x16xf32>
    %9 = arith.maximumf %7, %8 : vector<2x5x16xf32>
    %cst_9 = arith.constant 0.000000e+00 : f32
    %10 = vector.broadcast %cst_9 : f32 to vector<4x7x16xf32>
    %c0_10 = arith.constant 0 : index
    %c0_11 = arith.constant 0 : index
    %c0_12 = arith.constant 0 : index
    %11 = vector.load %arg6[%c0_10, %c0_11, %c0_12] : memref<4x7x16xf32, #tpu.memory_space<vmem>>, vector<4x7x16xf32>
    tpu.vector_store %arg6[%c0_10, %c0_11, %c0_12], %10 {strides = array<i32>} : memref<4x7x16xf32, #tpu.memory_space<vmem>>, vector<4x7x16xf32>,
    %c1 = arith.constant 1 : index
    %c1_13 = arith.constant 1 : index
    %c0_14 = arith.constant 0 : index
    %12 = vector.load %arg6[%c1, %c1_13, %c0_14] : memref<4x7x16xf32, #tpu.memory_space<vmem>>, vector<2x5x16xf32>
    tpu.vector_store %arg6[%c1, %c1_13, %c0_14], %9 {strides = array<i32>} : memref<4x7x16xf32, #tpu.memory_space<vmem>>, vector<2x5x16xf32>,
    %cst_15 = arith.constant 0.000000e+00 : f32
    %13 = vector.broadcast %cst_15 : f32 to vector<10x8xf32>
    %c0_16 = arith.constant 0 : index
    %c0_17 = arith.constant 0 : index
    %c0_18 = arith.constant 0 : index
    %14 = vector.load %arg6[%c0_16, %c0_17, %c0_18] : memref<4x7x16xf32, #tpu.memory_space<vmem>>, vector<2x5x16xf32>
    %15 = vector.shape_cast %14 : vector<2x5x16xf32> to vector<10x16xf32>
    %16 = arith.truncf %15 : vector<10x16xf32> to vector<10x16xbf16>
    %c0_19 = arith.constant 0 : index
    %c0_20 = arith.constant 0 : index
    %c0_21 = arith.constant 0 : index
    %17 = vector.load %arg4[%c0_19, %c0_20, %c0_21] : memref<9x16x8xbf16, #tpu.memory_space<vmem>>, vector<1x16x8xbf16>
    %18 = vector.shape_cast %17 : vector<1x16x8xbf16> to vector<16x8xbf16>
    %cst_22 = arith.constant dense<0.000000e+00> : vector<10x8xf32>
    %19 = tpu.matmul %16, %18, %cst_22 {dimension_numbers = #tpu.dot_dimension_numbers<[1], [0], [0], [1], [0, 0, 1, 1], [], []>} : vector<10x16xbf16>, vector<16x8xbf16>, vector<10x8xf32> -> vector<10x8xf32>
    %20 = arith.addf %13, %19 : vector<10x8xf32>
    %c0_23 = arith.constant 0 : index
    %c1_24 = arith.constant 1 : index
    %c0_25 = arith.constant 0 : index
    %21 = vector.load %arg6[%c0_23, %c1_24, %c0_25] : memref<4x7x16xf32, #tpu.memory_space<vmem>>, vector<2x5x16xf32>
    %22 = vector.shape_cast %21 : vector<2x5x16xf32> to vector<10x16xf32>
    %23 = arith.truncf %22 : vector<10x16xf32> to vector<10x16xbf16>
    %c1_26 = arith.constant 1 : index
    %c0_27 = arith.constant 0 : index
    %c0_28 = arith.constant 0 : index
    %24 = vector.load %arg4[%c1_26, %c0_27, %c0_28] : memref<9x16x8xbf16, #tpu.memory_space<vmem>>, vector<1x16x8xbf16>
    %25 = vector.shape_cast %24 : vector<1x16x8xbf16> to vector<16x8xbf16>
    %cst_29 = arith.constant dense<0.000000e+00> : vector<10x8xf32>
    %26 = tpu.matmul %23, %25, %cst_29 {dimension_numbers = #tpu.dot_dimension_numbers<[1], [0], [0], [1], [0, 0, 1, 1], [], []>} : vector<10x16xbf16>, vector<16x8xbf16>, vector<10x8xf32> -> vector<10x8xf32>
    %27 = arith.addf %20, %26 : vector<10x8xf32>
    %c0_30 = arith.constant 0 : index
    %c2 = arith.constant 2 : index
    %c0_31 = arith.constant 0 : index
    %28 = vector.load %arg6[%c0_30, %c2, %c0_31] : memref<4x7x16xf32, #tpu.memory_space<vmem>>, vector<2x5x16xf32>
    %29 = vector.shape_cast %28 : vector<2x5x16xf32> to vector<10x16xf32>
    %30 = arith.truncf %29 : vector<10x16xf32> to vector<10x16xbf16>
    %c2_32 = arith.constant 2 : index
    %c0_33 = arith.constant 0 : index
    %c0_34 = arith.constant 0 : index
    %31 = vector.load %arg4[%c2_32, %c0_33, %c0_34] : memref<9x16x8xbf16, #tpu.memory_space<vmem>>, vector<1x16x8xbf16>
    %32 = vector.shape_cast %31 : vector<1x16x8xbf16> to vector<16x8xbf16>
    %cst_35 = arith.constant dense<0.000000e+00> : vector<10x8xf32>
    %33 = tpu.matmul %30, %32, %cst_35 {dimension_numbers = #tpu.dot_dimension_numbers<[1], [0], [0], [1], [0, 0, 1, 1], [], []>} : vector<10x16xbf16>, vector<16x8xbf16>, vector<10x8xf32> -> vector<10x8xf32>
    %34 = arith.addf %27, %33 : vector<10x8xf32>
    %c1_36 = arith.constant 1 : index
    %c0_37 = arith.constant 0 : index
    %c0_38 = arith.constant 0 : index
    %35 = vector.load %arg6[%c1_36, %c0_37, %c0_38] : memref<4x7x16xf32, #tpu.memory_space<vmem>>, vector<2x5x16xf32>
    %36 = vector.shape_cast %35 : vector<2x5x16xf32> to vector<10x16xf32>
    %37 = arith.truncf %36 : vector<10x16xf32> to vector<10x16xbf16>
    %c3 = arith.constant 3 : index
    %c0_39 = arith.constant 0 : index
    %c0_40 = arith.constant 0 : index
    %38 = vector.load %arg4[%c3, %c0_39, %c0_40] : memref<9x16x8xbf16, #tpu.memory_space<vmem>>, vector<1x16x8xbf16>
    %39 = vector.shape_cast %38 : vector<1x16x8xbf16> to vector<16x8xbf16>
    %cst_41 = arith.constant dense<0.000000e+00> : vector<10x8xf32>
    %40 = tpu.matmul %37, %39, %cst_41 {dimension_numbers = #tpu.dot_dimension_numbers<[1], [0], [0], [1], [0, 0, 1, 1], [], []>} : vector<10x16xbf16>, vector<16x8xbf16>, vector<10x8xf32> -> vector<10x8xf32>
    %41 = arith.addf %34, %40 : vector<10x8xf32>
    %c1_42 = arith.constant 1 : index
    %c1_43 = arith.constant 1 : index
    %c0_44 = arith.constant 0 : index
    %42 = vector.load %arg6[%c1_42, %c1_43, %c0_44] : memref<4x7x16xf32, #tpu.memory_space<vmem>>, vector<2x5x16xf32>
    %43 = vector.shape_cast %42 : vector<2x5x16xf32> to vector<10x16xf32>
    %44 = arith.truncf %43 : vector<10x16xf32> to vector<10x16xbf16>
    %c4 = arith.constant 4 : index
    %c0_45 = arith.constant 0 : index
    %c0_46 = arith.constant 0 : index
    %45 = vector.load %arg4[%c4, %c0_45, %c0_46] : memref<9x16x8xbf16, #tpu.memory_space<vmem>>, vector<1x16x8xbf16>
    %46 = vector.shape_cast %45 : vector<1x16x8xbf16> to vector<16x8xbf16>
    %cst_47 = arith.constant dense<0.000000e+00> : vector<10x8xf32>
    %47 = tpu.matmul %44, %46, %cst_47 {dimension_numbers = #tpu.dot_dimension_numbers<[1], [0], [0], [1], [0, 0, 1, 1], [], []>} : vector<10x16xbf16>, vector<16x8xbf16>, vector<10x8xf32> -> vector<10x8xf32>
    %48 = arith.addf %41, %47 : vector<10x8xf32>
    %c1_48 = arith.constant 1 : index
    %c2_49 = arith.constant 2 : index
    %c0_50 = arith.constant 0 : index
    %49 = vector.load %arg6[%c1_48, %c2_49, %c0_50] : memref<4x7x16xf32, #tpu.memory_space<vmem>>, vector<2x5x16xf32>
    %50 = vector.shape_cast %49 : vector<2x5x16xf32> to vector<10x16xf32>
    %51 = arith.truncf %50 : vector<10x16xf32> to vector<10x16xbf16>
    %c5 = arith.constant 5 : index
    %c0_51 = arith.constant 0 : index
    %c0_52 = arith.constant 0 : index
    %52 = vector.load %arg4[%c5, %c0_51, %c0_52] : memref<9x16x8xbf16, #tpu.memory_space<vmem>>, vector<1x16x8xbf16>
    %53 = vector.shape_cast %52 : vector<1x16x8xbf16> to vector<16x8xbf16>
    %cst_53 = arith.constant dense<0.000000e+00> : vector<10x8xf32>
    %54 = tpu.matmul %51, %53, %cst_53 {dimension_numbers = #tpu.dot_dimension_numbers<[1], [0], [0], [1], [0, 0, 1, 1], [], []>} : vector<10x16xbf16>, vector<16x8xbf16>, vector<10x8xf32> -> vector<10x8xf32>
    %55 = arith.addf %48, %54 : vector<10x8xf32>
    %c2_54 = arith.constant 2 : index
    %c0_55 = arith.constant 0 : index
    %c0_56 = arith.constant 0 : index
    %56 = vector.load %arg6[%c2_54, %c0_55, %c0_56] : memref<4x7x16xf32, #tpu.memory_space<vmem>>, vector<2x5x16xf32>
    %57 = vector.shape_cast %56 : vector<2x5x16xf32> to vector<10x16xf32>
    %58 = arith.truncf %57 : vector<10x16xf32> to vector<10x16xbf16>
    %c6 = arith.constant 6 : index
    %c0_57 = arith.constant 0 : index
    %c0_58 = arith.constant 0 : index
    %59 = vector.load %arg4[%c6, %c0_57, %c0_58] : memref<9x16x8xbf16, #tpu.memory_space<vmem>>, vector<1x16x8xbf16>
    %60 = vector.shape_cast %59 : vector<1x16x8xbf16> to vector<16x8xbf16>
    %cst_59 = arith.constant dense<0.000000e+00> : vector<10x8xf32>
    %61 = tpu.matmul %58, %60, %cst_59 {dimension_numbers = #tpu.dot_dimension_numbers<[1], [0], [0], [1], [0, 0, 1, 1], [], []>} : vector<10x16xbf16>, vector<16x8xbf16>, vector<10x8xf32> -> vector<10x8xf32>
    %62 = arith.addf %55, %61 : vector<10x8xf32>
    %c2_60 = arith.constant 2 : index
    %c1_61 = arith.constant 1 : index
    %c0_62 = arith.constant 0 : index
    %63 = vector.load %arg6[%c2_60, %c1_61, %c0_62] : memref<4x7x16xf32, #tpu.memory_space<vmem>>, vector<2x5x16xf32>
    %64 = vector.shape_cast %63 : vector<2x5x16xf32> to vector<10x16xf32>
    %65 = arith.truncf %64 : vector<10x16xf32> to vector<10x16xbf16>
    %c7 = arith.constant 7 : index
    %c0_63 = arith.constant 0 : index
    %c0_64 = arith.constant 0 : index
    %66 = vector.load %arg4[%c7, %c0_63, %c0_64] : memref<9x16x8xbf16, #tpu.memory_space<vmem>>, vector<1x16x8xbf16>
    %67 = vector.shape_cast %66 : vector<1x16x8xbf16> to vector<16x8xbf16>
    %cst_65 = arith.constant dense<0.000000e+00> : vector<10x8xf32>
    %68 = tpu.matmul %65, %67, %cst_65 {dimension_numbers = #tpu.dot_dimension_numbers<[1], [0], [0], [1], [0, 0, 1, 1], [], []>} : vector<10x16xbf16>, vector<16x8xbf16>, vector<10x8xf32> -> vector<10x8xf32>
    %69 = arith.addf %62, %68 : vector<10x8xf32>
    %c2_66 = arith.constant 2 : index
    %c2_67 = arith.constant 2 : index
    %c0_68 = arith.constant 0 : index
    %70 = vector.load %arg6[%c2_66, %c2_67, %c0_68] : memref<4x7x16xf32, #tpu.memory_space<vmem>>, vector<2x5x16xf32>
    %71 = vector.shape_cast %70 : vector<2x5x16xf32> to vector<10x16xf32>
    %72 = arith.truncf %71 : vector<10x16xf32> to vector<10x16xbf16>
    %c8 = arith.constant 8 : index
    %c0_69 = arith.constant 0 : index
    %c0_70 = arith.constant 0 : index
    %73 = vector.load %arg4[%c8, %c0_69, %c0_70] : memref<9x16x8xbf16, #tpu.memory_space<vmem>>, vector<1x16x8xbf16>
    %74 = vector.shape_cast %73 : vector<1x16x8xbf16> to vector<16x8xbf16>
    %cst_71 = arith.constant dense<0.000000e+00> : vector<10x8xf32>
    %75 = tpu.matmul %72, %74, %cst_71 {dimension_numbers = #tpu.dot_dimension_numbers<[1], [0], [0], [1], [0, 0, 1, 1], [], []>} : vector<10x16xbf16>, vector<16x8xbf16>, vector<10x8xf32> -> vector<10x8xf32>
    %76 = arith.addf %69, %75 : vector<10x8xf32>
    %77 = vector.shape_cast %76 : vector<10x8xf32> to vector<2x5x8xf32>
    %c0_72 = arith.constant 0 : index
    %c0_73 = arith.constant 0 : index
    %c0_74 = arith.constant 0 : index
    %c0_75 = arith.constant 0 : index
    %78 = vector.load %arg5[%c0_72, %c0_73, %c0_74, %c0_75] : memref<1x2x5x8xf32, #tpu.memory_space<vmem>>, vector<1x2x5x8xf32>
    %79 = vector.shape_cast %78 : vector<1x2x5x8xf32> to vector<2x5x8xf32>
    %80 = vector.shape_cast %77 : vector<2x5x8xf32> to vector<1x2x5x8xf32>
    tpu.vector_store %arg5[%c0_72, %c0_73, %c0_74, %c0_75], %80 {strides = array<i32>} : memref<1x2x5x8xf32, #tpu.memory_space<vmem>>, vector<1x2x5x8xf32>,
    return
  }
  func.func @transform_0(%arg0: i32) -> (i32, i32, i32, i32) {
    %c0_i32 = arith.constant 0 : i32
    %c0_i32_0 = arith.constant 0 : i32
    %c0_i32_1 = arith.constant 0 : i32
    %c0_i32_2 = arith.constant 0 : i32
    return %arg0, %c0_i32, %c0_i32_0, %c0_i32_1 : i32, i32, i32, i32
  }
  func.func @transform_1(%arg0: i32) -> (i32, i32, i32) {
    %c0_i32 = arith.constant 0 : i32
    %c0_i32_0 = arith.constant 0 : i32
    %c0_i32_1 = arith.constant 0 : i32
    %c0_i32_2 = arith.constant 0 : i32
    return %c0_i32, %c0_i32_0, %c0_i32_1 : i32, i32, i32
  }
  func.func @transform_2(%arg0: i32) -> (i32, i32, i32) {
    %c0_i32 = arith.constant 0 : i32
    %c0_i32_0 = arith.constant 0 : i32
    %c0_i32_1 = arith.constant 0 : i32
    %c0_i32_2 = arith.constant 0 : i32
    return %c0_i32, %c0_i32_0, %c0_i32_1 : i32, i32, i32
  }
  func.func @transform_3(%arg0: i32) -> (i32, i32, i32) {
    %c0_i32 = arith.constant 0 : i32
    %c0_i32_0 = arith.constant 0 : i32
    %c0_i32_1 = arith.constant 0 : i32
    %c0_i32_2 = arith.constant 0 : i32
    return %c0_i32, %c0_i32_0, %c0_i32_1 : i32, i32, i32
  }
  func.func @transform_4(%arg0: i32) -> (i32, i32, i32, i32) {
    %c0_i32 = arith.constant 0 : i32
    %c0_i32_0 = arith.constant 0 : i32
    %c0_i32_1 = arith.constant 0 : i32
    %c0_i32_2 = arith.constant 0 : i32
    return %arg0, %c0_i32, %c0_i32_0, %c0_i32_1 : i32, i32, i32, i32
  }
}

module attributes {stable_mosaic.version = 11 : i64} {
  func.func @_bn_relu_kernel(%arg0: i32, %arg1: i32, %arg2: memref<24x128xf32, #tpu.memory_space<vmem>>, %arg3: memref<1x128xf32, #tpu.memory_space<vmem>>, %arg4: memref<1x128xf32, #tpu.memory_space<vmem>>, %arg5: memref<24x128xf32, #tpu.memory_space<vmem>>) attributes {dimension_semantics = [#tpu.dimension_semantics<parallel>, #tpu.dimension_semantics<parallel>], iteration_bounds = array<i64: 1, 1>, scalar_prefetch = 0 : i64, scratch_operands = 0 : i64, tpu.core_type = #tpu.core_type<tc>, window_params = [{transform_indices = @transform_0, window_bounds = array<i64: 24, 128>}, {transform_indices = @transform_1, window_bounds = array<i64: 1, 128>}, {transform_indices = @transform_2, window_bounds = array<i64: 1, 128>}, {transform_indices = @transform_3, window_bounds = array<i64: 24, 128>}]} {
    %c0 = arith.constant 0 : index
    %c0_0 = arith.constant 0 : index
    %0 = vector.load %arg2[%c0, %c0_0] : memref<24x128xf32, #tpu.memory_space<vmem>>, vector<24x128xf32>
    %c0_1 = arith.constant 0 : index
    %c0_2 = arith.constant 0 : index
    %1 = vector.load %arg3[%c0_1, %c0_2] : memref<1x128xf32, #tpu.memory_space<vmem>>, vector<1x128xf32>
    %2 = vector.broadcast %1 : vector<1x128xf32> to vector<24x128xf32>
    %3 = arith.mulf %0, %2 : vector<24x128xf32>
    %c0_3 = arith.constant 0 : index
    %c0_4 = arith.constant 0 : index
    %4 = vector.load %arg4[%c0_3, %c0_4] : memref<1x128xf32, #tpu.memory_space<vmem>>, vector<1x128xf32>
    %5 = vector.broadcast %4 : vector<1x128xf32> to vector<24x128xf32>
    %6 = arith.addf %3, %5 : vector<24x128xf32>
    %cst = arith.constant 0.000000e+00 : f32
    %7 = vector.broadcast %cst : f32 to vector<24x128xf32>
    %8 = arith.maximumf %6, %7 : vector<24x128xf32>
    %c0_5 = arith.constant 0 : index
    %c0_6 = arith.constant 0 : index
    %9 = vector.load %arg5[%c0_5, %c0_6] : memref<24x128xf32, #tpu.memory_space<vmem>>, vector<24x128xf32>
    tpu.vector_store %arg5[%c0_5, %c0_6], %8 {strides = array<i32>} : memref<24x128xf32, #tpu.memory_space<vmem>>, vector<24x128xf32>,
    return
  }
  func.func @transform_0(%arg0: i32, %arg1: i32) -> (i32, i32) {
    %c0_i32 = arith.constant 0 : i32
    return %arg0, %arg1 : i32, i32
  }
  func.func @transform_1(%arg0: i32, %arg1: i32) -> (i32, i32) {
    %c0_i32 = arith.constant 0 : i32
    %c0_i32_0 = arith.constant 0 : i32
    return %c0_i32, %arg1 : i32, i32
  }
  func.func @transform_2(%arg0: i32, %arg1: i32) -> (i32, i32) {
    %c0_i32 = arith.constant 0 : i32
    %c0_i32_0 = arith.constant 0 : i32
    return %c0_i32, %arg1 : i32, i32
  }
  func.func @transform_3(%arg0: i32, %arg1: i32) -> (i32, i32) {
    %c0_i32 = arith.constant 0 : i32
    return %arg0, %arg1 : i32, i32
  }
}

</mosaic_0001>

<bundles_post_ra>
// kernel: densenet_forward.25
= control target key start
LH: loop header
LB: loop body
LE: loop exit
PB: predicated region body
PF: predicated region fallthrough
CT: control target
= control target key end

     0   :  { %vm92_vm0 = vcmask 130048   ;;  %s271_s0 = inlined_call_operand.vmem [shape: f32[128,16], index: 0, kind: input, shape index: {}]   ;;  %s272_s1 = inlined_call_operand.vmem [shape: f32[1,16], index: 1, kind: input, shape index: {}]   ;;  %s273_s2 = inlined_call_operand.vmem [shape: f32[1,16], index: 2, kind: input, shape index: {}]   ;;  %s274_s3 = inlined_call_operand.vmem [shape: f32[128,16], index: 3, kind: output, shape index: {}]  }
   0x1   :  { %v14_v0 = vld [vmem:[%s271_s0] sm:$0xff]  ;;  %v15_v4 = vld [vmem:[%s271_s0 + $0x8] sm:$0xff]  ;;  %v16_v5 = vld [vmem:[%s271_s0 + $0x10] sm:$0xff] }
   0x2   :  { %v113_v1 = vld [vmem:[%s272_s1] ss:$0 sm:$0xff]  ;;  %v17_v6 = vld [vmem:[%s271_s0 + $0x18] sm:$0xff]  ;;  %v19_v11 = vld [vmem:[%s271_s0 + $0x28] sm:$0xff] }
   0x3   :  { %v144_v2 = vld [vmem:[%s273_s2] ss:$0 sm:$0xff]  ;;  %v37_v3 = vmul.f32 %v113_v1, %v14_v0  ;;  %v38_v7 = vmul.f32 %v113_v1, %v15_v4  ;;  %v39_v8 = vmul.f32 %v113_v1, %v16_v5  ;;  %v40_v9 = vmul.f32 %v113_v1, %v17_v6  ;;  %v20_v12 = vld [vmem:[%s271_s0 + $0x30] sm:$0xff]  ;;  %v21_v17 = vld [vmem:[%s271_s0 + $0x38] sm:$0xff] }
   0x4   :  { %v18_v10 = vld [vmem:[%s271_s0 + $0x20] sm:$0xff]  ;;  %v42_v15 = vmul.f32 %v113_v1, %v19_v11  ;;  %v43_v16 = vmul.f32 %v113_v1, %v20_v12  ;;  %v44_v21 = vmul.f32 %v113_v1, %v21_v17  ;;  %v23_v27 = vld [vmem:[%s271_s0 + $0x48] sm:$0xff]  ;;  %v24_v28 = vld [vmem:[%s271_s0 + $0x50] sm:$0xff] }
   0x5   :  { %v60_v13 = vadd.f32 %v144_v2, %v37_v3  ;;  %v41_v14 = vmul.f32 %v113_v1, %v18_v10  ;;  %v61_v18 = vadd.f32 %v144_v2, %v38_v7  ;;  %v62_v19 = vadd.f32 %v144_v2, %v39_v8  ;;  %v22_v22 = vld [vmem:[%s271_s0 + $0x40] sm:$0xff]  ;;  %v25_v29 = vld [vmem:[%s271_s0 + $0x58] sm:$0xff]  ;;  %v27_v35 = vld [vmem:[%s271_s0 + $0x68] sm:$0xff] }
   0x6   :  { %v63_v20 = vadd.f32 %v144_v2, %v40_v9  ;;  %v65_v25 = vadd.f32 %v144_v2, %v42_v15  ;;  %v66_v26 = vadd.f32 %v144_v2, %v43_v16  ;;  %v67_v33 = vadd.f32 %v144_v2, %v44_v21  ;;  %v26_v34 = vld [vmem:[%s271_s0 + $0x60] sm:$0xff]  ;;  %v28_v36 = vld [vmem:[%s271_s0 + $0x70] sm:$0xff]  ;;  %v29_v41 = vld [vmem:[%s271_s0 + $0x78] sm:$0xff] }
   0x7   :  { %v76_v23 = vmax.f32 %v60_v13, 0.0  ;;  %v64_v24 = vadd.f32 %v144_v2, %v41_v14  ;;  %v77_v30 = vmax.f32 %v61_v18, 0.0  ;;  %v78_v31 = vmax.f32 %v62_v19, 0.0 }
   0x8   :  { %v79_v32 = vmax.f32 %v63_v20, 0.0  ;;  %v81_v38 = vmax.f32 %v65_v25, 0.0  ;;  %v82_v39 = vmax.f32 %v66_v26, 0.0  ;;  %v45_v40 = vmul.f32 %v113_v1, %v22_v22 }
   0x9   :  { %93 = vst.msk [vmem:[%s274_s3] sm:$0xff] %vm92_vm0, %v76_v23  ;;  %v80_v37 = vmax.f32 %v64_v24, 0.0  ;;  %94 = vst.msk [vmem:[%s274_s3 + $0x8] sm:$0xff] %vm92_vm0, %v77_v30  ;;  %v83_v42 = vmax.f32 %v67_v33, 0.0  ;;  %v46_v43 = vmul.f32 %v113_v1, %v23_v27  ;;  %v47_v44 = vmul.f32 %v113_v1, %v24_v28 }
   0xa   :  { %95 = vst.msk [vmem:[%s274_s3 + $0x10] sm:$0xff] %vm92_vm0, %v78_v31  ;;  %96 = vst.msk [vmem:[%s274_s3 + $0x18] sm:$0xff] %vm92_vm0, %v79_v32  ;;  %v48_v45 = vmul.f32 %v113_v1, %v25_v29  ;;  %v68_v46 = vadd.f32 %v144_v2, %v45_v40  ;;  %v49_v47 = vmul.f32 %v113_v1, %v26_v34 }
   0xb   :  { %97 = vst.msk [vmem:[%s274_s3 + $0x20] sm:$0xff] %vm92_vm0, %v80_v37  ;;  %98 = vst.msk [vmem:[%s274_s3 + $0x28] sm:$0xff] %vm92_vm0, %v81_v38  ;;  %v50_v48 = vmul.f32 %v113_v1, %v27_v35  ;;  %v51_v49 = vmul.f32 %v113_v1, %v28_v36  ;;  %v69_v50 = vadd.f32 %v144_v2, %v46_v43 }
   0xc   :  { %99 = vst.msk [vmem:[%s274_s3 + $0x30] sm:$0xff] %vm92_vm0, %v82_v39  ;;  %100 = vst.msk [vmem:[%s274_s3 + $0x38] sm:$0xff] %vm92_vm0, %v83_v42  ;;  %v70_v51 = vadd.f32 %v144_v2, %v47_v44  ;;  %v71_v52 = vadd.f32 %v144_v2, %v48_v45  ;;  %v52_v53 = vmul.f32 %v113_v1, %v29_v41  ;;  %v84_v54 = vmax.f32 %v68_v46, 0.0 }
   0xd   :  { %v72_v55 = vadd.f32 %v144_v2, %v49_v47  ;;  %v73_v56 = vadd.f32 %v144_v2, %v50_v48  ;;  %v74_v57 = vadd.f32 %v144_v2, %v51_v49  ;;  %v85_v58 = vmax.f32 %v69_v50, 0.0 }
   0xe   :  { %v86_v59 = vmax.f32 %v70_v51, 0.0  ;;  %v87_v60 = vmax.f32 %v71_v52, 0.0  ;;  %v75_v61 = vadd.f32 %v144_v2, %v52_v53  ;;  %101 = vst.msk [vmem:[%s274_s3 + $0x40] sm:$0xff] %vm92_vm0, %v84_v54 }
   0xf   :  { %v88_v62 = vmax.f32 %v72_v55, 0.0  ;;  %v89_v63 = vmax.f32 %v73_v56, 0.0  ;;  %v90_v0 = vmax.f32 %v74_v57, 0.0  ;;  %102 = vst.msk [vmem:[%s274_s3 + $0x48] sm:$0xff] %vm92_vm0, %v85_v58 }
  0x10   :  { %103 = vst.msk [vmem:[%s274_s3 + $0x50] sm:$0xff] %vm92_vm0, %v86_v59  ;;  %104 = vst.msk [vmem:[%s274_s3 + $0x58] sm:$0xff] %vm92_vm0, %v87_v60  ;;  %v91_v1 = vmax.f32 %v75_v61, 0.0 }
  0x11   :  { %105 = vst.msk [vmem:[%s274_s3 + $0x60] sm:$0xff] %vm92_vm0, %v88_v62  ;;  %106 = vst.msk [vmem:[%s274_s3 + $0x68] sm:$0xff] %vm92_vm0, %v89_v63 }
  0x12   :  { %107 = vst.msk [vmem:[%s274_s3 + $0x70] sm:$0xff] %vm92_vm0, %v90_v0  ;;  %108 = vst.msk [vmem:[%s274_s3 + $0x78] sm:$0xff] %vm92_vm0, %v91_v1 }

// kernel: densenet_forward.24
= control target key start
LH: loop header
LB: loop body
LE: loop exit
PB: predicated region body
PF: predicated region fallthrough
CT: control target
= control target key end

     0   :  { %vm14_vm0 = vcmask 122880   ;;  %vm86_vm1 = vcmask 130048   ;;  %v192_v0 = vmov 0.0   ;;  %s310_s0 = inlined_call_operand.vmem [shape: f32[128,16], index: 0, kind: input, shape index: {}]   ;;  %s311_s1 = inlined_call_operand.vmem [shape: f32[1,16], index: 1, kind: output, shape index: {0}]   ;;  %s312_s2 = inlined_call_operand.vmem [shape: f32[1,16], index: 2, kind: output, shape index: {1}]  }
   0x1   :  { %15 = vst.msk [vmem:[%s311_s1] sm:$0x1] %vm14_vm0, %v192_v0  ;;  %v53_v1 = vld [vmem:[%s310_s0] sm:$0xff]  ;;  %v54_v2 = vld [vmem:[%s310_s0 + $0x8] sm:$0xff]  ;;  %v55_v3 = vld [vmem:[%s310_s0 + $0x10] sm:$0xff] }
   0x2   :  { %16 = vst.msk [vmem:[%s312_s2] sm:$0x1] %vm14_vm0, %v192_v0  ;;  %v87_v4 = vsel %vm86_vm1, %v53_v1, 0.0  ;;  %v88_v5 = vsel %vm86_vm1, %v54_v2, 0.0  ;;  %v90_v6 = vsel %vm86_vm1, %v55_v3, 0.0  ;;  %v56_v7 = vld [vmem:[%s310_s0 + $0x18] sm:$0xff]  ;;  %v128_v15 = vmul.f32 %v53_v1, %v53_v1 }
   0x3   :  { %v89_v8 = vadd.f32 %v88_v5, %v87_v4  ;;  %v92_v9 = vsel %vm86_vm1, %v56_v7, 0.0  ;;  %v57_v10 = vld [vmem:[%s310_s0 + $0x20] sm:$0xff]  ;;  %v58_v13 = vld [vmem:[%s310_s0 + $0x28] sm:$0xff]  ;;  %v129_v16 = vmul.f32 %v54_v2, %v54_v2  ;;  %v130_v17 = vmul.f32 %v55_v3, %v55_v3  ;;  %v59_v19 = vld [vmem:[%s310_s0 + $0x30] sm:$0xff] }
   0x4   :  { %v94_v12 = vsel %vm86_vm1, %v57_v10, 0.0  ;;  %v96_v18 = vsel %vm86_vm1, %v58_v13, 0.0  ;;  %v131_v21 = vmul.f32 %v56_v7, %v56_v7  ;;  %v98_v22 = vsel %vm86_vm1, %v59_v19, 0.0  ;;  %v60_v24 = vld [vmem:[%s310_s0 + $0x38] sm:$0xff]  ;;  %v61_v31 = vld [vmem:[%s310_s0 + $0x40] sm:$0xff]  ;;  %v62_v37 = vld [vmem:[%s310_s0 + $0x48] sm:$0xff] }
   0x5   :  { %v91_v11 = vadd.f32 %v90_v6, %v89_v8  ;;  %v132_v23 = vmul.f32 %v57_v10, %v57_v10  ;;  %v144_v26 = vsel %vm86_vm1, %v128_v15, 0.0  ;;  %v145_v27 = vsel %vm86_vm1, %v129_v16, 0.0  ;;  %v63_v43 = vld [vmem:[%s310_s0 + $0x50] sm:$0xff]  ;;  %v64_v49 = vld [vmem:[%s310_s0 + $0x58] sm:$0xff]  ;;  %v65_v55 = vld [vmem:[%s310_s0 + $0x60] sm:$0xff] }
   0x6   :  { %v147_v28 = vsel %vm86_vm1, %v130_v17, 0.0  ;;  %v100_v29 = vsel %vm86_vm1, %v60_v24, 0.0  ;;  %v146_v30 = vadd.f32 %v145_v27, %v144_v26  ;;  %v133_v33 = vmul.f32 %v58_v13, %v58_v13  ;;  %v66_v61 = vld [vmem:[%s310_s0 + $0x68] sm:$0xff]  ;;  %v67_v3 = vld [vmem:[%s310_s0 + $0x70] sm:$0xff] }
   0x7   :  { %v93_v14 = vadd.f32 %v92_v9, %v91_v11  ;;  %v149_v34 = vsel %vm86_vm1, %v131_v21, 0.0  ;;  %v102_v35 = vsel %vm86_vm1, %v61_v31, 0.0  ;;  %v134_v39 = vmul.f32 %v59_v19, %v59_v19  ;;  %v68_v9 = vld [vmem:[%s310_s0 + $0x78] sm:$0xff] }
   0x8   :  { %v148_v36 = vadd.f32 %v147_v28, %v146_v30  ;;  %v151_v40 = vsel %vm86_vm1, %v132_v23, 0.0  ;;  %v104_v41 = vsel %vm86_vm1, %v62_v37, 0.0  ;;  %v135_v45 = vmul.f32 %v60_v24, %v60_v24 }
   0x9   :  { %v95_v20 = vadd.f32 %v94_v12, %v93_v14  ;;  %v153_v46 = vsel %vm86_vm1, %v133_v33, 0.0  ;;  %v106_v47 = vsel %vm86_vm1, %v63_v43, 0.0  ;;  %v136_v51 = vmul.f32 %v61_v31, %v61_v31 }
   0xa   :  { %v150_v42 = vadd.f32 %v149_v34, %v148_v36  ;;  %v155_v52 = vsel %vm86_vm1, %v134_v39, 0.0  ;;  %v108_v53 = vsel %vm86_vm1, %v64_v49, 0.0  ;;  %v137_v57 = vmul.f32 %v62_v37, %v62_v37  ;;  %v85_v36 = vld [vmem:[%s311_s1] sm:$0x1] }
   0xb   :  { %v97_v25 = vadd.f32 %v96_v18, %v95_v20  ;;  %v157_v58 = vsel %vm86_vm1, %v135_v45, 0.0  ;;  %v110_v59 = vsel %vm86_vm1, %v65_v55, 0.0  ;;  %v138_v63 = vmul.f32 %v63_v43, %v63_v43 }
   0xc   :  { %v152_v48 = vadd.f32 %v151_v40, %v150_v42  ;;  %v159_v0 = vsel %vm86_vm1, %v136_v51, 0.0  ;;  %v112_v1 = vsel %vm86_vm1, %v66_v61, 0.0  ;;  %v139_v5 = vmul.f32 %v64_v49, %v64_v49 }
   0xd   :  { %v99_v32 = vadd.f32 %v98_v22, %v97_v25  ;;  %v161_v6 = vsel %vm86_vm1, %v137_v57, 0.0  ;;  %v114_v7 = vsel %vm86_vm1, %v67_v3, 0.0  ;;  %v140_v11 = vmul.f32 %v65_v55, %v65_v55 }
   0xe   :  { %v154_v54 = vadd.f32 %v153_v46, %v152_v48  ;;  %v163_v12 = vsel %vm86_vm1, %v138_v63, 0.0  ;;  %v116_v13 = vsel %vm86_vm1, %v68_v9, 0.0  ;;  %v141_v16 = vmul.f32 %v66_v61, %v66_v61 }
   0xf   :  { %v101_v38 = vadd.f32 %v100_v29, %v99_v32  ;;  %v165_v17 = vsel %vm86_vm1, %v139_v5, 0.0  ;;  %v142_v20 = vmul.f32 %v67_v3, %v67_v3  ;;  %v167_v21 = vsel %vm86_vm1, %v140_v11, 0.0 }
  0x10   :  { %v156_v60 = vadd.f32 %v155_v52, %v154_v54  ;;  %v143_v24 = vmul.f32 %v68_v9, %v68_v9  ;;  %v169_v25 = vsel %vm86_vm1, %v141_v16, 0.0 }
  0x11   :  { %v103_v44 = vadd.f32 %v102_v35, %v101_v38  ;;  %v171_v28 = vsel %vm86_vm1, %v142_v20, 0.0 }
  0x12   :  { %v158_v2 = vadd.f32 %v157_v58, %v156_v60  ;;  %v173_v31 = vsel %vm86_vm1, %v143_v24, 0.0 }
  0x13   :  { %v105_v50 = vadd.f32 %v104_v41, %v103_v44  ;;  %v127_v44 = vld [vmem:[%s312_s2] sm:$0x1] }
  0x14   :  { %v160_v8 = vadd.f32 %v159_v0, %v158_v2 }
  0x15   :  { %v107_v56 = vadd.f32 %v106_v47, %v105_v50 }
  0x16   :  { %v162_v14 = vadd.f32 %v161_v6, %v160_v8 }
  0x17   :  { %v109_v62 = vadd.f32 %v108_v53, %v107_v56 }
  0x18   :  { %v164_v18 = vadd.f32 %v163_v12, %v162_v14 }
  0x19   :  { %v111_v4 = vadd.f32 %v110_v59, %v109_v62 }
  0x1a   :  { %v166_v22 = vadd.f32 %v165_v17, %v164_v18 }
  0x1b   :  { %v113_v10 = vadd.f32 %v112_v1, %v111_v4 }
  0x1c   :  { %v168_v26 = vadd.f32 %v167_v21, %v166_v22 }
  0x1d   :  { %v115_v15 = vadd.f32 %v114_v7, %v113_v10 }
  0x1e   :  { %v170_v29 = vadd.f32 %v169_v25, %v168_v26 }
  0x1f   :  { %v117_v19 = vadd.f32 %v116_v13, %v115_v15 }
  0x20   :  { %v172_v32 = vadd.f32 %v171_v28, %v170_v29 }
  0x21   :  { %v118_v23 = vrot.slane %v117_v19, 4 }
  0x22   :  { %v174_v34 = vadd.f32 %v173_v31, %v172_v32 }
  0x23   :  { %v119_v27 = vadd.f32 %v118_v23, %v117_v19 }
  0x24   :  { %v175_v37 = vrot.slane %v174_v34, 4 }
  0x25   :  { %v120_v30 = vrot.slane %v119_v27, 2 }
  0x26   :  { %v176_v39 = vadd.f32 %v175_v37, %v174_v34 }
  0x27   :  { %v121_v33 = vadd.f32 %v120_v30, %v119_v27 }
  0x28   :  { %v177_v41 = vrot.slane %v176_v39, 2 }
  0x29   :  { %v122_v35 = vrot.slane %v121_v33, 1 }
  0x2a   :  { %v178_v42 = vadd.f32 %v177_v41, %v176_v39 }
  0x2b   :  { %v123_v38 = vadd.f32 %v122_v35, %v121_v33 }
  0x2c   :  { %v179_v43 = vrot.slane %v178_v42, 1 }
  0x2d   :  { %v124_v40 = vadd.f32 %v123_v38, %v85_v36 }
  0x2e   :  { %v180_v45 = vadd.f32 %v179_v43, %v178_v42 }
  0x2f   :  { %126 = vst.msk [vmem:[%s311_s1] sm:$0x1] %vm14_vm0, %v124_v40 }
  0x30   :  { %v181_v46 = vadd.f32 %v180_v45, %v127_v44 }
  0x32   :  { %182 = vst.msk [vmem:[%s312_s2] sm:$0x1] %vm14_vm0, %v181_v46 }

// kernel: densenet_forward.23
= control target key start
LH: loop header
LB: loop body
LE: loop exit
PB: predicated region body
PF: predicated region fallthrough
CT: control target
= control target key end

     0   :  { %vm118_vm0 = vcmask 1041408   ;;  %vm16_vm1 = vcmask 130048   ;;  %v347_v2 = vmov 0.0   ;;  %vm93_vm2 = vcmask 293888   ;;  %s527_s1 = inlined_call_operand.vmem [shape: bf16[36,16], index: 1, kind: input, shape index: {}]   ;;  %s528_s0 = inlined_call_operand.vmem [shape: f32[128,36], index: 0, kind: input, shape index: {}]   ;;  %s529_s2 = inlined_call_operand.vmem [shape: f32[128,16], index: 2, kind: output, shape index: {}]  }
   0x1   :  { %v344_v0 = vld [vmem:[%s527_s1 + $0x10] ss:$0 sps:$4 sm:$0x33]   ;;  %v345_v1 = vld [vmem:[%s527_s1 + $0x8] sm:$0xff]   ;;  %19 = vst.msk [vmem:[#allocation2 + $0x10] sm:$0xff] %vm16_vm1, %v347_v2  ;;  %17 = vst.msk [vmem:[#allocation2] sm:$0xff] %vm16_vm1, %v347_v2 }
   0x2   :  { %18 = vst.msk [vmem:[#allocation2 + $0x8] sm:$0xff] %vm16_vm1, %v347_v2  ;;  %20 = vst.msk [vmem:[#allocation2 + $0x18] sm:$0xff] %vm16_vm1, %v347_v2  ;;  %341 = vmatprep.subr.msk.bf16.mxu0 %vm118_vm0, %v344_v0  ;;  %342 = vmatprep.subr.msk.bf16.mxu1 %vm118_vm0, %v344_v0  ;;  %v120_v3 = vsel %vm118_vm0, %v344_v0, 0  ;;  %v49_v4 = vld [vmem:[%s528_s0] sm:$0xff]  ;;  %v50_v5 = vld [vmem:[%s528_s0 + $0x8] sm:$0xff] }
   0x3   :  { %21 = vst.msk [vmem:[#allocation2 + $0x20] sm:$0xff] %vm16_vm1, %v347_v2  ;;  %22 = vst.msk [vmem:[#allocation2 + $0x28] sm:$0xff] %vm16_vm1, %v347_v2  ;;  %314 = vmatpush3.bf16.msra.mxu0 %v120_v3  ;;  %338 = vmatpush3.bf16.msra.mxu1 %v120_v3  ;;  %v57_v6 = vld [vmem:[%s528_s0 + $0x40] sm:$0xff]  ;;  %v58_v7 = vld [vmem:[%s528_s0 + $0x48] sm:$0xff]  ;;  %v65_v9 = vpack.c.bf16 %v50_v5, %v49_v4 }
   0x4   :  { %23 = vst.msk [vmem:[#allocation2 + $0x30] sm:$0xff] %vm16_vm1, %v347_v2  ;;  %24 = vst.msk [vmem:[#allocation2 + $0x38] sm:$0xff] %vm16_vm1, %v347_v2  ;;  %315 = vmatprep.subr.bf16.mxu0 %v345_v1  ;;  %336 = vmatprep.subr.bf16.mxu1 %v345_v1  ;;  %v346_v8 = vld [vmem:[%s527_s1] sm:$0xff]   ;;  %v69_v10 = vpack.c.bf16 %v58_v7, %v57_v6  ;;  %v51_v11 = vld [vmem:[%s528_s0 + $0x10] sm:$0xff] }
   0x5   :  { %25 = vst.msk [vmem:[#allocation2 + $0x40] sm:$0xff] %vm16_vm1, %v347_v2  ;;  %26 = vst.msk [vmem:[#allocation2 + $0x48] sm:$0xff] %vm16_vm1, %v347_v2  ;;  %319 = vmatprep.mubr.msk.bf16.mxu0 %vm93_vm2, %v65_v9  ;;  %v52_v12 = vld [vmem:[%s528_s0 + $0x18] sm:$0xff]  ;;  %v59_v13 = vld [vmem:[%s528_s0 + $0x50] sm:$0xff] }
   0x6   :  { %27 = vst.msk [vmem:[#allocation2 + $0x50] sm:$0xff] %vm16_vm1, %v347_v2  ;;  %28 = vst.msk [vmem:[#allocation2 + $0x58] sm:$0xff] %vm16_vm1, %v347_v2  ;;  %327 = vmatprep.mubr.msk.bf16.mxu1 %vm93_vm2, %v69_v10  ;;  %v60_v14 = vld [vmem:[%s528_s0 + $0x58] sm:$0xff]  ;;  %v53_v15 = vld [vmem:[%s528_s0 + $0x20] sm:$0xff]  ;;  %v66_v19 = vpack.c.bf16 %v52_v12, %v51_v11 }
   0x7   :  { %29 = vst.msk [vmem:[#allocation2 + $0x60] sm:$0xff] %vm16_vm1, %v347_v2  ;;  %30 = vst.msk [vmem:[#allocation2 + $0x68] sm:$0xff] %vm16_vm1, %v347_v2  ;;  %316 = vmatpush3.bf16.msra.mxu0 %v345_v1  ;;  %339 = vmatpush3.bf16.msra.mxu1 %v345_v1  ;;  %v54_v16 = vld [vmem:[%s528_s0 + $0x28] sm:$0xff]  ;;  %v61_v17 = vld [vmem:[%s528_s0 + $0x60] sm:$0xff]  ;;  %v70_v20 = vpack.c.bf16 %v60_v14, %v59_v13 }
   0x8   :  { %31 = vst.msk [vmem:[#allocation2 + $0x70] sm:$0xff] %vm16_vm1, %v347_v2  ;;  %32 = vst.msk [vmem:[#allocation2 + $0x78] sm:$0xff] %vm16_vm1, %v347_v2  ;;  %317 = vmatprep.subr.bf16.mxu0 %v346_v8  ;;  %337 = vmatprep.subr.bf16.mxu1 %v346_v8  ;;  %v62_v18 = vld [vmem:[%s528_s0 + $0x68] sm:$0xff]  ;;  %v67_v21 = vpack.c.bf16 %v54_v16, %v53_v15  ;;  %v55_v23 = vld [vmem:[%s528_s0 + $0x30] sm:$0xff] }
   0x9   :  { %v71_v22 = vpack.c.bf16 %v62_v18, %v61_v17  ;;  %v56_v24 = vld [vmem:[%s528_s0 + $0x38] sm:$0xff]  ;;  %v63_v25 = vld [vmem:[%s528_s0 + $0x70] sm:$0xff]  ;;  %v33_v33 = vld [vmem:[#allocation2] sm:$0xff] }
   0xa   :  { %v64_v26 = vld [vmem:[%s528_s0 + $0x78] sm:$0xff]  ;;  %v68_v27 = vpack.c.bf16 %v56_v24, %v55_v23  ;;  %v35_v29 = vld [vmem:[#allocation2 + $0x10] sm:$0xff]  ;;  %v34_v45 = vld [vmem:[#allocation2 + $0x8] sm:$0xff] }
   0xb   :  { %318 = vmatpush3.bf16.msra.mxu0 %v346_v8  ;;  %340 = vmatpush3.bf16.msra.mxu1 %v346_v8  ;;  %v72_v28 = vpack.c.bf16 %v64_v26, %v63_v25  ;;  %v36_v39 = vld [vmem:[#allocation2 + $0x18] sm:$0xff]  ;;  %v39_v51 = vld [vmem:[#allocation2 + $0x30] sm:$0xff]  ;;  %v37_v57 = vld [vmem:[#allocation2 + $0x20] sm:$0xff] }
   0xc   :  { %v41_v34 = vld [vmem:[#allocation2 + $0x40] sm:$0xff]  ;;  %v42_v46 = vld [vmem:[#allocation2 + $0x48] sm:$0xff]  ;;  %v40_v61 = vld [vmem:[#allocation2 + $0x38] sm:$0xff] }
   0xd   :  { %v43_v30 = vld [vmem:[#allocation2 + $0x50] sm:$0xff]  ;;  %v44_v40 = vld [vmem:[#allocation2 + $0x58] sm:$0xff]  ;;  %v38_v5 = vld [vmem:[#allocation2 + $0x28] sm:$0xff] }
   0xe   :  { %320 = vmatmul.mubr.msk.bf16.vlgmr.msra.gmra.mxu0 %vm93_vm2, %v66_v19  ;;  %328 = vmatmul.mubr.msk.bf16.vlgmr.msra.gmra.mxu1 %vm93_vm2, %v70_v20  ;;  %v45_v58 = vld [vmem:[#allocation2 + $0x60] sm:$0xff]  ;;  %v46_v10 = vld [vmem:[#allocation2 + $0x68] sm:$0xff] }
   0xf   :  { %323 = vmatprep.mubr.msk.bf16.mxu0 %vm93_vm2, %v67_v21  ;;  %331 = vmatprep.mubr.msk.bf16.mxu1 %vm93_vm2, %v71_v22  ;;  %v47_v52 = vld [vmem:[#allocation2 + $0x70] sm:$0xff]  ;;  %v48_v2 = vld [vmem:[#allocation2 + $0x78] sm:$0xff] }
  0x16   :  { %324 = vmatmul.mubr.msk.bf16.gmra.mxu0 %vm93_vm2, %v68_v27  ;;  %332 = vmatmul.mubr.msk.bf16.gmra.mxu1 %vm93_vm2, %v72_v28 }
  0xce   :  { %v321_v31 = vpop.f32.mrf.mxu0  ;;  %v329_v32 = vpop.f32.mrf.mxu1 }
  0xcf   :  { %v221_v35 = vadd.f32 %v321_v31, %v35_v29  ;;  %v229_v36 = vadd.f32 %v329_v32, %v43_v30 }
  0xd0   :  { %v156_v37 = vpop.f32.mrf.mxu0  ;;  %v188_v38 = vpop.f32.mrf.mxu1 }
  0xd1   :  { %238 = vst.msk [vmem:[#allocation2 + $0x10] sm:$0xff] %vm16_vm1, %v221_v35  ;;  %246 = vst.msk [vmem:[#allocation2 + $0x50] sm:$0xff] %vm16_vm1, %v229_v36  ;;  %v219_v41 = vadd.f32 %v156_v37, %v33_v33  ;;  %v227_v42 = vadd.f32 %v188_v38, %v41_v34 }
  0xd2   :  { %v322_v43 = vpop.f32.mrf.mxu0  ;;  %v330_v44 = vpop.f32.mrf.mxu1 }
  0xd3   :  { %236 = vst.msk [vmem:[#allocation2] sm:$0xff] %vm16_vm1, %v219_v41  ;;  %244 = vst.msk [vmem:[#allocation2 + $0x40] sm:$0xff] %vm16_vm1, %v227_v42  ;;  %v222_v47 = vadd.f32 %v322_v43, %v36_v39  ;;  %v230_v48 = vadd.f32 %v330_v44, %v44_v40 }
  0xd4   :  { %v159_v49 = vpop.f32.mrf.mxu0  ;;  %v191_v50 = vpop.f32.mrf.mxu1 }
  0xd5   :  { %239 = vst.msk [vmem:[#allocation2 + $0x18] sm:$0xff] %vm16_vm1, %v222_v47  ;;  %247 = vst.msk [vmem:[#allocation2 + $0x58] sm:$0xff] %vm16_vm1, %v230_v48  ;;  %v220_v53 = vadd.f32 %v159_v49, %v34_v45  ;;  %v228_v54 = vadd.f32 %v191_v50, %v42_v46 }
  0xd6   :  { %v325_v55 = vpop.f32.mrf.mxu0  ;;  %v333_v56 = vpop.f32.mrf.mxu1 }
  0xd7   :  { %237 = vst.msk [vmem:[#allocation2 + $0x8] sm:$0xff] %vm16_vm1, %v220_v53  ;;  %245 = vst.msk [vmem:[#allocation2 + $0x48] sm:$0xff] %vm16_vm1, %v228_v54  ;;  %v225_v59 = vadd.f32 %v325_v55, %v39_v51  ;;  %v233_v60 = vadd.f32 %v333_v56, %v47_v52 }
  0xd8   :  { %v257_v62 = vld [vmem:[#allocation2 + $0x10] sm:$0xff]  ;;  %v172_v0 = vpop.f32.mrf.mxu0  ;;  %v204_v1 = vpop.f32.mrf.mxu1 }
  0xd9   :  { %v265_v63 = vld [vmem:[#allocation2 + $0x50] sm:$0xff]  ;;  %273 = vst.msk [vmem:[%s529_s2 + $0x10] sm:$0xff] %vm16_vm1, %v257_v62  ;;  %242 = vst.msk [vmem:[#allocation2 + $0x30] sm:$0xff] %vm16_vm1, %v225_v59  ;;  %v223_v3 = vadd.f32 %v172_v0, %v37_v57  ;;  %v231_v4 = vadd.f32 %v204_v1, %v45_v58 }
  0xda   :  { %281 = vst.msk [vmem:[%s529_s2 + $0x50] sm:$0xff] %vm16_vm1, %v265_v63  ;;  %250 = vst.msk [vmem:[#allocation2 + $0x70] sm:$0xff] %vm16_vm1, %v233_v60  ;;  %v255_v6 = vld [vmem:[#allocation2] sm:$0xff]  ;;  %v326_v8 = vpop.f32.mrf.mxu0  ;;  %v334_v9 = vpop.f32.mrf.mxu1 }
  0xdb   :  { %v263_v7 = vld [vmem:[#allocation2 + $0x40] sm:$0xff]  ;;  %271 = vst.msk [vmem:[%s529_s2] sm:$0xff] %vm16_vm1, %v255_v6  ;;  %240 = vst.msk [vmem:[#allocation2 + $0x20] sm:$0xff] %vm16_vm1, %v223_v3  ;;  %v226_v11 = vadd.f32 %v326_v8, %v40_v61  ;;  %v234_v12 = vadd.f32 %v334_v9, %v48_v2 }
  0xdc   :  { %279 = vst.msk [vmem:[%s529_s2 + $0x40] sm:$0xff] %vm16_vm1, %v263_v7  ;;  %248 = vst.msk [vmem:[#allocation2 + $0x60] sm:$0xff] %vm16_vm1, %v231_v4  ;;  %v258_v13 = vld [vmem:[#allocation2 + $0x18] sm:$0xff]  ;;  %v175_v15 = vpop.f32.mrf.mxu0  ;;  %v207_v16 = vpop.f32.mrf.mxu1 }
  0xdd   :  { %v266_v14 = vld [vmem:[#allocation2 + $0x58] sm:$0xff]  ;;  %274 = vst.msk [vmem:[%s529_s2 + $0x18] sm:$0xff] %vm16_vm1, %v258_v13  ;;  %243 = vst.msk [vmem:[#allocation2 + $0x38] sm:$0xff] %vm16_vm1, %v226_v11  ;;  %v224_v17 = vadd.f32 %v175_v15, %v38_v5  ;;  %v232_v18 = vadd.f32 %v207_v16, %v46_v10 }
  0xde   :  { %282 = vst.msk [vmem:[%s529_s2 + $0x58] sm:$0xff] %vm16_vm1, %v266_v14  ;;  %251 = vst.msk [vmem:[#allocation2 + $0x78] sm:$0xff] %vm16_vm1, %v234_v12  ;;  %v256_v19 = vld [vmem:[#allocation2 + $0x8] sm:$0xff] }
  0xdf   :  { %v264_v20 = vld [vmem:[#allocation2 + $0x48] sm:$0xff]  ;;  %272 = vst.msk [vmem:[%s529_s2 + $0x8] sm:$0xff] %vm16_vm1, %v256_v19  ;;  %241 = vst.msk [vmem:[#allocation2 + $0x28] sm:$0xff] %vm16_vm1, %v224_v17 }
  0xe0   :  { %280 = vst.msk [vmem:[%s529_s2 + $0x48] sm:$0xff] %vm16_vm1, %v264_v20  ;;  %249 = vst.msk [vmem:[#allocation2 + $0x68] sm:$0xff] %vm16_vm1, %v232_v18  ;;  %v261_v21 = vld [vmem:[#allocation2 + $0x30] sm:$0xff] }
  0xe1   :  { %v269_v22 = vld [vmem:[#allocation2 + $0x70] sm:$0xff]  ;;  %277 = vst.msk [vmem:[%s529_s2 + $0x30] sm:$0xff] %vm16_vm1, %v261_v21 }
  0xe2   :  { %285 = vst.msk [vmem:[%s529_s2 + $0x70] sm:$0xff] %vm16_vm1, %v269_v22  ;;  %v259_v23 = vld [vmem:[#allocation2 + $0x20] sm:$0xff] }
  0xe3   :  { %v267_v24 = vld [vmem:[#allocation2 + $0x60] sm:$0xff]  ;;  %275 = vst.msk [vmem:[%s529_s2 + $0x20] sm:$0xff] %vm16_vm1, %v259_v23 }
  0xe4   :  { %283 = vst.msk [vmem:[%s529_s2 + $0x60] sm:$0xff] %vm16_vm1, %v267_v24  ;;  %v262_v25 = vld [vmem:[#allocation2 + $0x38] sm:$0xff] }
  0xe5   :  { %v270_v26 = vld [vmem:[#allocation2 + $0x78] sm:$0xff]  ;;  %278 = vst.msk [vmem:[%s529_s2 + $0x38] sm:$0xff] %vm16_vm1, %v262_v25 }
  0xe6   :  { %286 = vst.msk [vmem:[%s529_s2 + $0x78] sm:$0xff] %vm16_vm1, %v270_v26  ;;  %v260_v27 = vld [vmem:[#allocation2 + $0x28] sm:$0xff] }
  0xe7   :  { %v268_v28 = vld [vmem:[#allocation2 + $0x68] sm:$0xff]  ;;  %276 = vst.msk [vmem:[%s529_s2 + $0x28] sm:$0xff] %vm16_vm1, %v260_v27 }
  0xe8   :  { %284 = vst.msk [vmem:[%s529_s2 + $0x68] sm:$0xff] %vm16_vm1, %v268_v28 }

// kernel: densenet_forward.26
= control target key start
LH: loop header
LB: loop body
LE: loop exit
PB: predicated region body
PF: predicated region fallthrough
CT: control target
= control target key end

     0   :  { %v73_v0 = vmov 0.0   ;;  %s119_s1 = inlined_call_operand.vmem [shape: f32[1,128], index: 1, kind: output, shape index: {0}]   ;;  %s120_s2 = inlined_call_operand.vmem [shape: f32[1,128], index: 2, kind: output, shape index: {1}]   ;;  %s121_s0 = inlined_call_operand.vmem [shape: f32[32,128], index: 0, kind: input, shape index: {}]  }
   0x1   :  { %14 = vst [vmem:[%s119_s1] sm:$0x1] %v73_v0  ;;  %15 = vst [vmem:[%s120_s2] sm:$0x1] %v73_v0  ;;  %v28_v1 = vld [vmem:[%s121_s0] sm:$0xff]  ;;  %v29_v2 = vld [vmem:[%s121_s0 + $0x8] sm:$0xff] }
   0x2   :  { %v30_v3 = vld [vmem:[%s121_s0 + $0x10] sm:$0xff]  ;;  %v31_v4 = vld [vmem:[%s121_s0 + $0x18] sm:$0xff]  ;;  %v37_v5 = vadd.f32 %v29_v2, %v28_v1  ;;  %v49_v6 = vmul.f32 %v28_v1, %v28_v1  ;;  %v50_v7 = vmul.f32 %v29_v2, %v29_v2 }
   0x3   :  { %v51_v8 = vmul.f32 %v30_v3, %v30_v3  ;;  %v52_v10 = vmul.f32 %v31_v4, %v31_v4 }
   0x4   :  { %v38_v9 = vadd.f32 %v37_v5, %v30_v3  ;;  %v53_v11 = vadd.f32 %v50_v7, %v49_v6 }
   0x6   :  { %v39_v12 = vadd.f32 %v38_v9, %v31_v4  ;;  %v54_v13 = vadd.f32 %v53_v11, %v51_v8 }
   0x8   :  { %v40_v14 = vrot.slane %v39_v12, 4  ;;  %v55_v15 = vadd.f32 %v54_v13, %v52_v10  ;;  %v36_v24 = vld [vmem:[%s119_s1] sm:$0x1] }
   0x9   :  { %v48_v27 = vld [vmem:[%s120_s2] sm:$0x1] }
   0xa   :  { %v41_v16 = vadd.f32 %v40_v14, %v39_v12  ;;  %v56_v17 = vrot.slane %v55_v15, 4 }
   0xc   :  { %v42_v18 = vrot.slane %v41_v16, 2  ;;  %v57_v19 = vadd.f32 %v56_v17, %v55_v15 }
   0xe   :  { %v43_v20 = vadd.f32 %v42_v18, %v41_v16  ;;  %v58_v21 = vrot.slane %v57_v19, 2 }
  0x10   :  { %v44_v22 = vrot.slane %v43_v20, 1  ;;  %v59_v23 = vadd.f32 %v58_v21, %v57_v19 }
  0x12   :  { %v45_v25 = vadd.f32 %v44_v22, %v43_v20  ;;  %v60_v26 = vrot.slane %v59_v23, 1 }
  0x14   :  { %v46_v28 = vadd.f32 %v45_v25, %v36_v24  ;;  %v61_v29 = vadd.f32 %v60_v26, %v59_v23 }
  0x16   :  { %47 = vst [vmem:[%s119_s1] sm:$0x1] %v46_v28  ;;  %v62_v30 = vadd.f32 %v61_v29, %v48_v27 }
  0x18   :  { %63 = vst [vmem:[%s120_s2] sm:$0x1] %v62_v30 }

// kernel: densenet_forward.28
= control target key start
LH: loop header
LB: loop body
LE: loop exit
PB: predicated region body
PF: predicated region fallthrough
CT: control target
= control target key end

     0   :  { %vm14_vm0 = vcmask 122880   ;;  %vm38_vm1 = vcmask 130048   ;;  %v84_v0 = vmov 0.0   ;;  %s142_s0 = inlined_call_operand.vmem [shape: f32[32,16], index: 0, kind: input, shape index: {}]   ;;  %s143_s1 = inlined_call_operand.vmem [shape: f32[1,16], index: 1, kind: output, shape index: {0}]   ;;  %s144_s2 = inlined_call_operand.vmem [shape: f32[1,16], index: 2, kind: output, shape index: {1}]  }
   0x1   :  { %15 = vst.msk [vmem:[%s143_s1] sm:$0x1] %vm14_vm0, %v84_v0  ;;  %v29_v1 = vld [vmem:[%s142_s0] sm:$0xff]  ;;  %v30_v2 = vld [vmem:[%s142_s0 + $0x8] sm:$0xff]  ;;  %v31_v3 = vld [vmem:[%s142_s0 + $0x10] sm:$0xff] }
   0x2   :  { %16 = vst.msk [vmem:[%s144_s2] sm:$0x1] %vm14_vm0, %v84_v0  ;;  %v32_v4 = vld [vmem:[%s142_s0 + $0x18] sm:$0xff]  ;;  %v39_v5 = vsel %vm38_vm1, %v29_v1, 0.0  ;;  %v40_v6 = vsel %vm38_vm1, %v30_v2, 0.0  ;;  %v42_v7 = vsel %vm38_vm1, %v31_v3, 0.0  ;;  %v56_v8 = vmul.f32 %v29_v1, %v29_v1 }
   0x3   :  { %v41_v9 = vadd.f32 %v40_v6, %v39_v5  ;;  %v57_v10 = vmul.f32 %v30_v2, %v30_v2  ;;  %v58_v11 = vmul.f32 %v31_v3, %v31_v3  ;;  %v44_v12 = vsel %vm38_vm1, %v32_v4, 0.0 }
   0x4   :  { %v59_v13 = vmul.f32 %v32_v4, %v32_v4  ;;  %v60_v14 = vsel %vm38_vm1, %v56_v8, 0.0 }
   0x5   :  { %v43_v15 = vadd.f32 %v42_v7, %v41_v9  ;;  %v61_v16 = vsel %vm38_vm1, %v57_v10, 0.0  ;;  %v63_v17 = vsel %vm38_vm1, %v58_v11, 0.0 }
   0x6   :  { %v62_v18 = vadd.f32 %v61_v16, %v60_v14  ;;  %v65_v20 = vsel %vm38_vm1, %v59_v13, 0.0 }
   0x7   :  { %v45_v19 = vadd.f32 %v44_v12, %v43_v15 }
   0x8   :  { %v64_v21 = vadd.f32 %v63_v17, %v62_v18  ;;  %v37_v31 = vld [vmem:[%s143_s1] sm:$0x1] }
   0x9   :  { %v46_v22 = vrot.slane %v45_v19, 4  ;;  %v55_v36 = vld [vmem:[%s144_s2] sm:$0x1] }
   0xa   :  { %v66_v23 = vadd.f32 %v65_v20, %v64_v21 }
   0xb   :  { %v47_v24 = vadd.f32 %v46_v22, %v45_v19 }
   0xc   :  { %v67_v25 = vrot.slane %v66_v23, 4 }
   0xd   :  { %v48_v26 = vrot.slane %v47_v24, 2 }
   0xe   :  { %v68_v27 = vadd.f32 %v67_v25, %v66_v23 }
   0xf   :  { %v49_v28 = vadd.f32 %v48_v26, %v47_v24 }
  0x10   :  { %v69_v29 = vrot.slane %v68_v27, 2 }
  0x11   :  { %v50_v30 = vrot.slane %v49_v28, 1 }
  0x12   :  { %v70_v32 = vadd.f32 %v69_v29, %v68_v27 }
  0x13   :  { %v51_v33 = vadd.f32 %v50_v30, %v49_v28 }
  0x14   :  { %v71_v34 = vrot.slane %v70_v32, 1 }
  0x15   :  { %v52_v35 = vadd.f32 %v51_v33, %v37_v31 }
  0x16   :  { %v72_v37 = vadd.f32 %v71_v34, %v70_v32 }
  0x17   :  { %54 = vst.msk [vmem:[%s143_s1] sm:$0x1] %vm14_vm0, %v52_v35 }
  0x18   :  { %v73_v38 = vadd.f32 %v72_v37, %v55_v36 }
  0x1a   :  { %74 = vst.msk [vmem:[%s144_s2] sm:$0x1] %vm14_vm0, %v73_v38 }

// kernel: densenet_forward.27
= control target key start
LH: loop header
LB: loop body
LE: loop exit
PB: predicated region body
PF: predicated region fallthrough
CT: control target
= control target key end

     0   :  { %vm22_vm0 = vcmask 130048   ;;  %v249_v1 = vmov 0.0   ;;  %s341_s3 = inlined_call_operand.vmem [shape: bf16[128,16], index: 3, kind: input, shape index: {}]   ;;  %s342_s0 = inlined_call_operand.vmem [shape: f32[32,128], index: 0, kind: input, shape index: {}]   ;;  %s343_s1 = inlined_call_operand.vmem [shape: f32[1,128], index: 1, kind: input, shape index: {}]   ;;  %s344_s2 = inlined_call_operand.vmem [shape: f32[1,128], index: 2, kind: input, shape index: {}]   ;;  %s345_s4 = inlined_call_operand.vmem [shape: f32[32,16], index: 4, kind: output, shape index: {}]  }
   0x1   :  { %v241_v0 = vld [vmem:[%s341_s3 + $0x38] sm:$0xff]   ;;  %25 = vst.msk [vmem:[#allocation2 + $0x10] sm:$0xff] %vm22_vm0, %v249_v1  ;;  %23 = vst.msk [vmem:[#allocation2] sm:$0xff] %vm22_vm0, %v249_v1  ;;  %v242_v2 = vld [vmem:[%s341_s3 + $0x30] sm:$0xff]  }
   0x2   :  { %24 = vst.msk [vmem:[#allocation2 + $0x8] sm:$0xff] %vm22_vm0, %v249_v1  ;;  %26 = vst.msk [vmem:[#allocation2 + $0x18] sm:$0xff] %vm22_vm0, %v249_v1  ;;  %220 = vmatprep.subr.bf16.mxu0 %v241_v0  ;;  %v243_v3 = vld [vmem:[%s341_s3 + $0x28] sm:$0xff]   ;;  %v244_v4 = vld [vmem:[%s341_s3 + $0x20] sm:$0xff]  }
   0x3   :  { %221 = vmatpush3.bf16.msra.mxu0 %v241_v0  ;;  %v27_v5 = vld [vmem:[%s342_s0] sm:$0xff]  ;;  %v28_v6 = vld [vmem:[%s342_s0 + $0x8] sm:$0xff]  ;;  %v245_v13 = vld [vmem:[%s341_s3 + $0x18] sm:$0xff]  }
   0x4   :  { %222 = vmatprep.subr.bf16.mxu0 %v242_v2  ;;  %v200_v7 = vld [vmem:[%s343_s1] ss:$0 sm:$0xff]  ;;  %v29_v17 = vld [vmem:[%s342_s0 + $0x10] sm:$0xff]  ;;  %v30_v18 = vld [vmem:[%s342_s0 + $0x18] sm:$0xff] }
   0x5   :  { %v38_v8 = vmul.f32 %v200_v7, %v27_v5  ;;  %v39_v9 = vmul.f32 %v200_v7, %v28_v6  ;;  %v201_v10 = vld [vmem:[%s344_s2] ss:$0 sm:$0xff]  ;;  %v246_v19 = vld [vmem:[%s341_s3 + $0x10] sm:$0xff]   ;;  %v40_v20 = vmul.f32 %v200_v7, %v29_v17  ;;  %v41_v21 = vmul.f32 %v200_v7, %v30_v18  ;;  %v247_v22 = vld [vmem:[%s341_s3 + $0x8] sm:$0xff]  }
   0x6   :  { %v248_v25 = vld [vmem:[%s341_s3] sm:$0xff]  }
   0x7   :  { %223 = vmatpush3.bf16.msra.mxu0 %v242_v2  ;;  %v49_v11 = vadd.f32 %v201_v10, %v38_v8  ;;  %v50_v12 = vadd.f32 %v201_v10, %v39_v9  ;;  %v51_v23 = vadd.f32 %v201_v10, %v40_v20  ;;  %v52_v24 = vadd.f32 %v201_v10, %v41_v21 }
   0x8   :  { %224 = vmatprep.subr.bf16.mxu0 %v243_v3  ;;  %v59_v29 = vld [vmem:[#allocation2 + $0x10] sm:$0xff]  ;;  %v57_v31 = vld [vmem:[#allocation2] sm:$0xff] }
   0x9   :  { %v53_v14 = vmax.f32 %v49_v11, 0.0  ;;  %v54_v15 = vmax.f32 %v50_v12, 0.0  ;;  %v55_v26 = vmax.f32 %v51_v23, 0.0  ;;  %v56_v27 = vmax.f32 %v52_v24, 0.0  ;;  %v60_v34 = vld [vmem:[#allocation2 + $0x18] sm:$0xff]  ;;  %v58_v37 = vld [vmem:[#allocation2 + $0x8] sm:$0xff] }
   0xb   :  { %225 = vmatpush3.bf16.msra.mxu0 %v243_v3  ;;  %v61_v16 = vpack.c.bf16 %v54_v15, %v53_v14  ;;  %v62_v28 = vpack.c.bf16 %v56_v27, %v55_v26 }
   0xc   :  { %226 = vmatprep.subr.bf16.mxu0 %v244_v4 }
   0xd   :  { %236 = vmatprep.mubr.bf16.mxu0 %v61_v16 }
   0xf   :  { %227 = vmatpush3.bf16.msra.mxu0 %v244_v4 }
  0x10   :  { %228 = vmatprep.subr.bf16.mxu0 %v245_v13 }
  0x13   :  { %229 = vmatpush3.bf16.msra.mxu0 %v245_v13 }
  0x14   :  { %230 = vmatprep.subr.bf16.mxu0 %v246_v19 }
  0x17   :  { %231 = vmatpush3.bf16.msra.mxu0 %v246_v19 }
  0x18   :  { %232 = vmatprep.subr.bf16.mxu0 %v247_v22 }
  0x1b   :  { %233 = vmatpush3.bf16.msra.mxu0 %v247_v22 }
  0x1c   :  { %234 = vmatprep.subr.bf16.mxu0 %v248_v25 }
  0x1f   :  { %235 = vmatpush3.bf16.msra.mxu0 %v248_v25 }
  0x22   :  { %237 = vmatmul.mubr.bf16.vlgmr.msra.gmra.mxu0 %v62_v28 }
  0xe2   :  { %v238_v30 = vpop.f32.mrf.mxu0 }
  0xe3   :  { %v178_v32 = vadd.f32 %v238_v30, %v59_v29 }
  0xe4   :  { %v161_v33 = vpop.f32.mrf.mxu0 }
  0xe5   :  { %183 = vst.msk [vmem:[#allocation2 + $0x10] sm:$0xff] %vm22_vm0, %v178_v32  ;;  %v176_v35 = vadd.f32 %v161_v33, %v57_v31 }
  0xe6   :  { %v239_v36 = vpop.f32.mrf.mxu0 }
  0xe7   :  { %181 = vst.msk [vmem:[#allocation2] sm:$0xff] %vm22_vm0, %v176_v35  ;;  %v179_v38 = vadd.f32 %v239_v36, %v60_v34 }
  0xe8   :  { %v164_v39 = vpop.f32.mrf.mxu0 }
  0xe9   :  { %184 = vst.msk [vmem:[#allocation2 + $0x18] sm:$0xff] %vm22_vm0, %v179_v38  ;;  %v177_v40 = vadd.f32 %v164_v39, %v58_v37 }
  0xeb   :  { %182 = vst.msk [vmem:[#allocation2 + $0x8] sm:$0xff] %vm22_vm0, %v177_v40 }
  0xec   :  { %v190_v41 = vld [vmem:[#allocation2 + $0x10] sm:$0xff] }
  0xed   :  { %194 = vst.msk [vmem:[%s345_s4 + $0x10] sm:$0xff] %vm22_vm0, %v190_v41 }
  0xee   :  { %v188_v42 = vld [vmem:[#allocation2] sm:$0xff] }
  0xef   :  { %192 = vst.msk [vmem:[%s345_s4] sm:$0xff] %vm22_vm0, %v188_v42 }
  0xf0   :  { %v191_v43 = vld [vmem:[#allocation2 + $0x18] sm:$0xff] }
  0xf1   :  { %195 = vst.msk [vmem:[%s345_s4 + $0x18] sm:$0xff] %vm22_vm0, %v191_v43 }
  0xf2   :  { %v189_v44 = vld [vmem:[#allocation2 + $0x8] sm:$0xff] }
  0xf3   :  { %193 = vst.msk [vmem:[%s345_s4 + $0x8] sm:$0xff] %vm22_vm0, %v189_v44 }

// kernel: densenet_forward.29
= control target key start
LH: loop header
LB: loop body
LE: loop exit
PB: predicated region body
PF: predicated region fallthrough
CT: control target
= control target key end

     0   :  { %s1110_s15 = smov 0   ;;  %s1209_s0 = inlined_call_operand.vmem [shape: f32[2,4,4,16], index: 0, kind: input, shape index: {}]   ;;  %s1210_s1 = inlined_call_operand.vmem [shape: f32[1,1,16], index: 1, kind: input, shape index: {}]   ;;  %s1211_s2 = inlined_call_operand.vmem [shape: f32[1,1,16], index: 2, kind: input, shape index: {}]   ;;  %s1212_s3 = inlined_call_operand.vmem [shape: bf16[9,16,8], index: 3, kind: input, shape index: {}]   ;;  %s1213_s4 = inlined_call_operand.vmem [shape: f32[2,4,4,8], index: 4, kind: output, shape index: {}]  }
   0x1 LB: > { %s917_s16 = sadd.s32 4294967295, %s1081_s15   ;;  %p921_p0 = scmp.ge.s32.totalorder %s1081_s15, 1  ;;  %s1081_s15 = sphi %s1110_s15, %s14_s15  }
   0x2   : > { %p162_p1 = scmp.lt.s32.totalorder %s1081_s15, 3 }
   0x4   : > { %p163_p2 = pnand %p921_p0, %p162_p1 }
   0x5   : > { %p188_p3 = scmp.lt.s32.totalorder (!%p163_p2), %s917_s16, 1 }
   0x6   : > { %166 = sbr.rel (%p163_p2) target bundleno = 267 (0x10b), region = 36 }
   0xb   : > { %v1048_v0 = vld [vmem:[%s1212_s3 + $0x8] sm:$0xff]   ;;  %v1083_v1 = vmov 0.0   ;;  %v1049_v2 = vld [vmem:[%s1212_s3] sm:$0xff]   ;;  %vm1084_vm0 = vmmov 0   ;;  %vm229_vm1 = vcmask 128000   ;;  %s1215_s16 = smov (!%p188_p3, %s917_s16), 1 }
   0xc   : > { %984 = vmatprep.subr.bf16.mxu0 %v1083_v1  ;;  %990 = vmatprep.subr.bf16.mxu1 %v1083_v1  ;;  %230 = vst.msk [vmem:[#allocation2] sm:$0x3f] %vm229_vm1, %v1083_v1  ;;  %231 = vst.msk [vmem:[#allocation2 + $0x8] sm:$0x3f] %vm229_vm1, %v1083_v1  ;;  %v926_v3 = vld [vmem:[%s1210_s1] ss:$0 sm:$0xff] }
   0xd   : > { %985 = vmatpush3.bf16.msra.mxu0 %v1048_v0  ;;  %986 = vmatprep.mubr.msk.bf16.mxu0 %vm1084_vm0, %v1083_v1  ;;  %232 = vst.msk [vmem:[#allocation2 + $0x10] sm:$0x3f] %vm229_vm1, %v1083_v1  ;;  %233 = vst.msk [vmem:[#allocation2 + $0x18] sm:$0x3f] %vm229_vm1, %v1083_v1  ;;  %s964_s23 = sshll.u32 %s1215_s16, 4  ;;  %vm237_vm2 = vcmask 125952  }
   0xe   : > { %991 = vmatpush3.bf16.msra.mxu1 %v1049_v2  ;;  %992 = vmatprep.mubr.msk.bf16.mxu1 %vm1084_vm0, %v1083_v1  ;;  %234 = vst.msk [vmem:[#allocation2 + $0x20] sm:$0x3f] %vm229_vm1, %v1083_v1  ;;  %235 = vst.msk [vmem:[#allocation2 + $0x28] sm:$0x3f] %vm229_vm1, %v1083_v1  ;;  %s192_s26 = scalar_lea.vmem %s1209_s0, %s964_s23  ;;  %v927_v4 = vld [vmem:[%s1211_s2] ss:$0 sm:$0xff]  ;;  %s197_s21 = scalar_lea.vmem %s1213_s4, %s964_s23 }
   0xf   : > { %996 = vmatprep.subr.bf16.mxu0 %v1083_v1  ;;  %1002 = vmatprep.subr.bf16.mxu1 %v1083_v1  ;;  %v199_v5 = vld [vmem:[%s192_s26] sm:$0xf]  ;;  %v200_v6 = vld [vmem:[%s192_s26 + $0x4] sm:$0xf]  ;;  %v201_v7 = vld [vmem:[%s192_s26 + $0x8] sm:$0xf] }
  0x10   : > { %v210_v8 = vmul.f32 %v926_v3, %v199_v5  ;;  %v211_v9 = vmul.f32 %v926_v3, %v200_v6  ;;  %v212_v10 = vmul.f32 %v926_v3, %v201_v7  ;;  %v202_v11 = vld [vmem:[%s192_s26 + $0xc] sm:$0xf]  ;;  %vm279_vm3 = vcmask 130048   ;;  %v1054_v21 = vld [vmem:[%s1212_s3 + $0x10] sm:$0xff]   ;;  %v1055_v25 = vld [vmem:[%s1212_s3 + $0x18] sm:$0xff]  }
  0x11   : > { %v213_v12 = vmul.f32 %v926_v3, %v202_v11  ;;  %v1060_v34 = vld [vmem:[%s1212_s3 + $0x20] sm:$0xff]   ;;  %v1061_v36 = vld [vmem:[%s1212_s3 + $0x28] sm:$0xff]   ;;  %v1066_v42 = vld [vmem:[%s1212_s3 + $0x30] sm:$0xff]   ;;  %vm857_vm4 = vcmask 60416  }
  0x12   : > { %v221_v13 = vadd.f32 %v927_v4, %v210_v8  ;;  %v222_v14 = vadd.f32 %v927_v4, %v211_v9  ;;  %v223_v15 = vadd.f32 %v927_v4, %v212_v10  ;;  %v1067_v44 = vld [vmem:[%s1212_s3 + $0x38] sm:$0xff]   ;;  %v1072_v50 = vld [vmem:[%s1212_s3 + $0x40] sm:$0xff]  }
  0x13   : > { %v224_v16 = vadd.f32 %v927_v4, %v213_v12 }
  0x14   : > { %v225_v17 = vmax.f32 %v221_v13, 0.0  ;;  %v226_v18 = vmax.f32 %v222_v14, 0.0  ;;  %v227_v19 = vmax.f32 %v223_v15, 0.0 }
  0x15   : > { %v228_v20 = vmax.f32 %v224_v16, 0.0 }
  0x16   : > { %238 = vst.msk [vmem:[#allocation2 + $0x9] sm:$0xf] %vm237_vm2, %v225_v17  ;;  %239 = vst.msk [vmem:[#allocation2 + $0x11] sm:$0xf] %vm237_vm2, %v226_v18 }
  0x17   : > { %240 = vst.msk [vmem:[#allocation2 + $0x19] sm:$0xf] %vm237_vm2, %v227_v19  ;;  %241 = vst.msk [vmem:[#allocation2 + $0x21] sm:$0xf] %vm237_vm2, %v228_v20 }
  0x1d   : > { %v1050_v22 = vld [vmem:[#allocation2 + $0x1] ss:$8 sps:$4 sm:$0xff]  }
  0x1e   : > { %v1051_v23 = vld [vmem:[#allocation2 + $0x11] ss:$8 sps:$4 sm:$0xff]   ;;  %v1052_v24 = vld [vmem:[#allocation2] ss:$8 sps:$4 sm:$0xff]  }
  0x1f   : > { %v269_v26 = vpack.c.bf16 %v1051_v23, %v1050_v22  ;;  %v1053_v27 = vld [vmem:[#allocation2 + $0x10] ss:$8 sps:$4 sm:$0xff]   ;;  %v1056_v28 = vld [vmem:[#allocation2 + $0x2] ss:$8 sps:$4 sm:$0xff]  }
  0x20   : > { %v1057_v29 = vld [vmem:[#allocation2 + $0x12] ss:$8 sps:$4 sm:$0xff]   ;;  %v254_v30 = vpack.c.bf16 %v1053_v27, %v1052_v24  ;;  %v1069_v46 = vld [vmem:[#allocation2 + $0x20] ss:$8 sps:$4 sm:$0xff]  }
  0x21   : > { %987 = vmatmul.mubr.msk.bf16.vlgmr.msra.gmra.mxu0 %vm279_vm3, %v269_v26  ;;  %v1058_v31 = vld [vmem:[#allocation2 + $0x8] ss:$8 sps:$4 sm:$0xff]   ;;  %v1059_v32 = vld [vmem:[#allocation2 + $0x18] ss:$8 sps:$4 sm:$0xff]   ;;  %v386_v33 = vpack.c.bf16 %v1057_v29, %v1056_v28 }
  0x22   : > { %997 = vmatpush3.bf16.msra.mxu0 %v1054_v21  ;;  %998 = vmatprep.mubr.msk.bf16.mxu0 %vm1084_vm0, %v1083_v1  ;;  %v454_v35 = vpack.c.bf16 %v1059_v32, %v1058_v31  ;;  %v1062_v37 = vld [vmem:[#allocation2 + $0x9] ss:$8 sps:$4 sm:$0xff]   ;;  %v1063_v38 = vld [vmem:[#allocation2 + $0x19] ss:$8 sps:$4 sm:$0xff]  }
  0x23   : > { %993 = vmatmul.mubr.msk.bf16.vlgmr.msra.gmra.mxu1 %vm279_vm3, %v254_v30  ;;  %1008 = vmatprep.subr.bf16.mxu0 %v1083_v1  ;;  %v1064_v39 = vld [vmem:[#allocation2 + $0xa] ss:$8 sps:$4 sm:$0xff]   ;;  %v1065_v40 = vld [vmem:[#allocation2 + $0x1a] ss:$8 sps:$4 sm:$0xff]   ;;  %v522_v41 = vpack.c.bf16 %v1063_v38, %v1062_v37 }
  0x24   : > { %1003 = vmatpush3.bf16.msra.mxu1 %v1055_v25  ;;  %1004 = vmatprep.mubr.msk.bf16.mxu1 %vm1084_vm0, %v1083_v1  ;;  %v590_v43 = vpack.c.bf16 %v1065_v40, %v1064_v39  ;;  %v1068_v45 = vld [vmem:[#allocation2 + $0x10] ss:$8 sps:$4 sm:$0xff]   ;;  %v1071_v48 = vld [vmem:[#allocation2 + $0x21] ss:$8 sps:$4 sm:$0xff]  }
  0x25   : > { %1014 = vmatprep.subr.bf16.mxu1 %v1083_v1  ;;  %v1070_v47 = vld [vmem:[#allocation2 + $0x11] ss:$8 sps:$4 sm:$0xff]   ;;  %v659_v49 = vpack.c.bf16 %v1069_v46, %v1068_v45  ;;  %v1074_v53 = vld [vmem:[#allocation2 + $0x22] ss:$8 sps:$4 sm:$0xff]  }
  0x26   : > { %v727_v51 = vpack.c.bf16 %v1071_v48, %v1070_v47  ;;  %v1073_v52 = vld [vmem:[#allocation2 + $0x12] ss:$8 sps:$4 sm:$0xff]  }
  0x27   : > { %v795_v54 = vpack.c.bf16 %v1074_v53, %v1073_v52 }
  0x29   : > { %999 = vmatmul.mubr.msk.bf16.vlgmr.msra.gmra.mxu0 %vm279_vm3, %v386_v33 }
  0x2a   : > { %1009 = vmatpush3.bf16.msra.mxu0 %v1060_v34  ;;  %1010 = vmatprep.mubr.msk.bf16.mxu0 %vm1084_vm0, %v1083_v1 }
  0x2b   : > { %1005 = vmatmul.mubr.msk.bf16.vlgmr.msra.gmra.mxu1 %vm279_vm3, %v454_v35  ;;  %1020 = vmatprep.subr.bf16.mxu0 %v1083_v1 }
  0x2c   : > { %1015 = vmatpush3.bf16.msra.mxu1 %v1061_v36  ;;  %1016 = vmatprep.mubr.msk.bf16.mxu1 %vm1084_vm0, %v1083_v1 }
  0x2d   : > { %1026 = vmatprep.subr.bf16.mxu1 %v1083_v1 }
  0x31   : > { %1011 = vmatmul.mubr.msk.bf16.vlgmr.msra.gmra.mxu0 %vm279_vm3, %v522_v41 }
  0x32   : > { %1021 = vmatpush3.bf16.msra.mxu0 %v1066_v42  ;;  %1022 = vmatprep.mubr.msk.bf16.mxu0 %vm1084_vm0, %v1083_v1 }
  0x33   : > { %1017 = vmatmul.mubr.msk.bf16.vlgmr.msra.gmra.mxu1 %vm279_vm3, %v590_v43  ;;  %1032 = vmatprep.subr.bf16.mxu0 %v1083_v1 }
  0x34   : > { %1027 = vmatpush3.bf16.msra.mxu1 %v1067_v44  ;;  %1028 = vmatprep.mubr.msk.bf16.mxu1 %vm1084_vm0, %v1083_v1 }
  0x39   : > { %1023 = vmatmul.mubr.msk.bf16.vlgmr.msra.gmra.mxu0 %vm279_vm3, %v659_v49 }
  0x3a   : > { %1033 = vmatpush3.bf16.msra.mxu0 %v1072_v50  ;;  %1034 = vmatprep.mubr.msk.bf16.mxu0 %vm1084_vm0, %v1083_v1 }
  0x3b   : > { %1029 = vmatmul.mubr.msk.bf16.vlgmr.msra.gmra.mxu1 %vm279_vm3, %v727_v51 }
  0x41   : > { %1035 = vmatmul.mubr.msk.bf16.vlgmr.msra.gmra.mxu0 %vm279_vm3, %v795_v54 }
  0xe1   : > { %v317_v55 = vpop.f32.mrf.mxu0 }
  0xe3   : > { %v367_v56 = vpop.f32.mrf.mxu1  ;;  %v988_v57 = vpop.f32.mrf.mxu0 }
  0xe4   : > { %v368_v5 = vadd.f32 %v367_v56, %v317_v55 }
  0xe5   : > { %v994_v58 = vpop.f32.mrf.mxu1  ;;  %v320_v59 = vpop.f32.mrf.mxu0 }
  0xe7   : > { %v370_v60 = vpop.f32.mrf.mxu1  ;;  %v989_v61 = vpop.f32.mrf.mxu0 }
  0xe8   : > { %v371_v10 = vadd.f32 %v370_v60, %v320_v59 }
  0xe9   : > { %v995_v62 = vpop.f32.mrf.mxu1  ;;  %v433_v63 = vpop.f32.mrf.mxu0 }
  0xea   : > { %v440_v7 = vadd.f32 %v433_v63, %v368_v5 }
  0xeb   : > { %v501_v0 = vpop.f32.mrf.mxu1  ;;  %v1000_v2 = vpop.f32.mrf.mxu0 }
  0xec   : > { %v508_v13 = vadd.f32 %v501_v0, %v440_v7 }
  0xed   : > { %v1006_v3 = vpop.f32.mrf.mxu1  ;;  %v436_v4 = vpop.f32.mrf.mxu0 }
  0xee   : > { %v441_v14 = vadd.f32 %v436_v4, %v371_v10 }
  0xef   : > { %v504_v1 = vpop.f32.mrf.mxu1  ;;  %v1001_v6 = vpop.f32.mrf.mxu0 }
  0xf0   : > { %v509_v20 = vadd.f32 %v504_v1, %v441_v14 }
  0xf1   : > { %v1007_v8 = vpop.f32.mrf.mxu1  ;;  %v569_v9 = vpop.f32.mrf.mxu0 }
  0xf2   : > { %v576_v17 = vadd.f32 %v569_v9, %v508_v13 }
  0xf3   : > { %v637_v11 = vpop.f32.mrf.mxu1  ;;  %v1012_v12 = vpop.f32.mrf.mxu0 }
  0xf4   : > { %v644_v23 = vadd.f32 %v637_v11, %v576_v17 }
  0xf5   : > { %v1018_v15 = vpop.f32.mrf.mxu1  ;;  %v572_v16 = vpop.f32.mrf.mxu0 }
  0xf6   : > { %v577_v24 = vadd.f32 %v572_v16, %v509_v20 }
  0xf7   : > { %v640_v18 = vpop.f32.mrf.mxu1  ;;  %v1013_v19 = vpop.f32.mrf.mxu0 }
  0xf8   : > { %v645_v30 = vadd.f32 %v640_v18, %v577_v24 }
  0xf9   : > { %v1019_v21 = vpop.f32.mrf.mxu1  ;;  %v706_v22 = vpop.f32.mrf.mxu0 }
  0xfa   : > { %v713_v27 = vadd.f32 %v706_v22, %v644_v23 }
  0xfb   : > { %v774_v25 = vpop.f32.mrf.mxu1  ;;  %v1024_v26 = vpop.f32.mrf.mxu0 }
  0xfc   : > { %v781_v33 = vadd.f32 %v774_v25, %v713_v27 }
  0xfd   : > { %v1030_v28 = vpop.f32.mrf.mxu1  ;;  %v709_v29 = vpop.f32.mrf.mxu0 }
  0xfe   : > { %v714_v34 = vadd.f32 %v709_v29, %v645_v30 }
  0xff   : > { %v777_v31 = vpop.f32.mrf.mxu1  ;;  %v1025_v32 = vpop.f32.mrf.mxu0 }
 0x100   : > { %v782_v39 = vadd.f32 %v777_v31, %v714_v34 }
 0x101   : > { %v1031_v35 = vpop.f32.mrf.mxu1  ;;  %v842_v36 = vpop.f32.mrf.mxu0 }
 0x102   : > { %v849_v37 = vadd.f32 %v842_v36, %v781_v33 }
 0x103   : > { %v1036_v38 = vpop.f32.mrf.mxu0 }
 0x104   : > { %v853_v40 = vcombine.high %v849_v37, %v849_v37  ;;  %858 = vst.msk [vmem:[%s197_s21] sm:$0xf] %vm857_vm4, %v849_v37 }
 0x105   : > { %v845_v41 = vpop.f32.mrf.mxu0 }
 0x106   : > { %859 = vst.msk [vmem:[%s197_s21 + $0x4] sm:$0xf] %vm857_vm4, %v853_v40  ;;  %v850_v42 = vadd.f32 %v845_v41, %v782_v39 }
 0x107   : > { %v1037_v43 = vpop.f32.mrf.mxu0 }
 0x108   : > { %v854_v44 = vcombine.high %v850_v42, %v850_v42  ;;  %860 = vst.msk [vmem:[%s197_s21 + $0x8] sm:$0xf] %vm857_vm4, %v850_v42 }
 0x10a   : > { %861 = vst.msk [vmem:[%s197_s21 + $0xc] sm:$0xf] %vm857_vm4, %v854_v44 }
 0x10b PF: > { %s14_s15 = sadd.s32 1, %s1081_s15  }
 0x10c   : > { %p11_p4 = scmp.ge.s32.totalorder %s14_s15, 4  }
 0x10e   :  { %13 = sbr.rel (!%p11_p4) target bundleno = 1 (0x1), region = 76 }

// kernel: densenet_forward.36
= control target key start
LH: loop header
LB: loop body
LE: loop exit
PB: predicated region body
PF: predicated region fallthrough
CT: control target
= control target key end

     0   :  { %v16_v0 = vlaneseq  ;;  %v66_v1 = vmov 0.0   ;;  %s109_s1 = inlined_call_operand.vmem [shape: f32[1,128], index: 1, kind: output, shape index: {0}]   ;;  %s110_s2 = inlined_call_operand.vmem [shape: f32[1,128], index: 2, kind: output, shape index: {1}]   ;;  %s111_s0 = inlined_call_operand.vmem [shape: f32[20,128], index: 0, kind: input, shape index: {}]  }
   0x1   :  { %14 = vst [vmem:[%s109_s1] sm:$0x1] %v66_v1  ;;  %15 = vst [vmem:[%s110_s2] sm:$0x1] %v66_v1  ;;  %v26_v2 = vld [vmem:[%s111_s0] sm:$0xff]  ;;  %v27_v3 = vld [vmem:[%s111_s0 + $0x8] sm:$0xff] }
   0x2   :  { %v17_v4 = vshrl.u32 %v16_v0, 7  ;;  %v44_v5 = vmul.f32 %v26_v2, %v26_v2  ;;  %v45_v6 = vmul.f32 %v27_v3, %v27_v3  ;;  %v28_v8 = vld [vmem:[%s111_s0 + $0x10] sm:$0xff]  ;;  %v33_v9 = vadd.f32 %v27_v3, %v26_v2 }
   0x4   :  { %v19_v7 = vadd.s32 16, %v17_v4  ;;  %v47_v10 = vadd.f32 %v45_v6, %v44_v5 }
   0x6   :  { %vm25_vm0 = vcmp.lt.s32.totalorder %v19_v7, 20 }
   0x7   :  { %v31_v11 = vsel %vm25_vm0, %v28_v8, 0.0 }
   0x8   :  { %v34_v12 = vadd.f32 %v33_v9, %v31_v11  ;;  %v46_v13 = vmul.f32 %v31_v11, %v31_v11  ;;  %v32_v24 = vld [vmem:[%s109_s1] sm:$0x1] }
   0x9   :  { %v43_v27 = vld [vmem:[%s110_s2] sm:$0x1] }
   0xa   :  { %v35_v14 = vrot.slane %v34_v12, 4  ;;  %v48_v15 = vadd.f32 %v47_v10, %v46_v13 }
   0xc   :  { %v36_v16 = vadd.f32 %v35_v14, %v34_v12  ;;  %v49_v17 = vrot.slane %v48_v15, 4 }
   0xe   :  { %v37_v18 = vrot.slane %v36_v16, 2  ;;  %v50_v19 = vadd.f32 %v49_v17, %v48_v15 }
  0x10   :  { %v38_v20 = vadd.f32 %v37_v18, %v36_v16  ;;  %v51_v21 = vrot.slane %v50_v19, 2 }
  0x12   :  { %v39_v22 = vrot.slane %v38_v20, 1  ;;  %v52_v23 = vadd.f32 %v51_v21, %v50_v19 }
  0x14   :  { %v40_v25 = vadd.f32 %v39_v22, %v38_v20  ;;  %v53_v26 = vrot.slane %v52_v23, 1 }
  0x16   :  { %v41_v28 = vadd.f32 %v40_v25, %v32_v24  ;;  %v54_v29 = vadd.f32 %v53_v26, %v52_v23 }
  0x18   :  { %42 = vst [vmem:[%s109_s1] sm:$0x1] %v41_v28  ;;  %v55_v30 = vadd.f32 %v54_v29, %v43_v27 }
  0x1a   :  { %56 = vst [vmem:[%s110_s2] sm:$0x1] %v55_v30 }

// kernel: densenet_forward.38
= control target key start
LH: loop header
LB: loop body
LE: loop exit
PB: predicated region body
PF: predicated region fallthrough
CT: control target
= control target key end

     0   :  { %vm14_vm0 = vcmask 122880   ;;  %v17_v0 = vlaneseq  ;;  %vm34_vm1 = vcmask 130048   ;;  %v75_v1 = vmov 0.0   ;;  %s128_s0 = inlined_call_operand.vmem [shape: f32[20,16], index: 0, kind: input, shape index: {}]   ;;  %s129_s1 = inlined_call_operand.vmem [shape: f32[1,16], index: 1, kind: output, shape index: {0}]   ;;  %s130_s2 = inlined_call_operand.vmem [shape: f32[1,16], index: 2, kind: output, shape index: {1}]  }
   0x1   :  { %15 = vst.msk [vmem:[%s129_s1] sm:$0x1] %vm14_vm0, %v75_v1  ;;  %v27_v2 = vld [vmem:[%s128_s0] sm:$0xff]  ;;  %v28_v3 = vld [vmem:[%s128_s0 + $0x8] sm:$0xff]  ;;  %16 = vst.msk [vmem:[%s130_s2] sm:$0x1] %vm14_vm0, %v75_v1 }
   0x2   :  { %v18_v4 = vshrl.u32 %v17_v0, 7  ;;  %v35_v5 = vsel %vm34_vm1, %v27_v2, 0.0  ;;  %v36_v6 = vsel %vm34_vm1, %v28_v3, 0.0  ;;  %v50_v7 = vmul.f32 %v27_v2, %v27_v2  ;;  %v29_v10 = vld [vmem:[%s128_s0 + $0x10] sm:$0xff] }
   0x3   :  { %v51_v8 = vmul.f32 %v28_v3, %v28_v3  ;;  %v37_v12 = vadd.f32 %v36_v6, %v35_v5 }
   0x4   :  { %v20_v9 = vadd.s32 16, %v18_v4  ;;  %v53_v11 = vsel %vm34_vm1, %v50_v7, 0.0 }
   0x5   :  { %v54_v13 = vsel %vm34_vm1, %v51_v8, 0.0 }
   0x6   :  { %vm26_vm2 = vcmp.lt.s32.totalorder %v20_v9, 20  ;;  %v55_v15 = vadd.f32 %v54_v13, %v53_v11 }
   0x7   :  { %v32_v14 = vsel %vm26_vm2, %v29_v10, 0.0 }
   0x8   :  { %v38_v16 = vsel %vm34_vm1, %v32_v14, 0.0  ;;  %v52_v17 = vmul.f32 %v32_v14, %v32_v14  ;;  %v33_v30 = vld [vmem:[%s129_s1] sm:$0x1] }
   0x9   :  { %v39_v18 = vadd.f32 %v38_v16, %v37_v12  ;;  %v49_v33 = vld [vmem:[%s130_s2] sm:$0x1] }
   0xa   :  { %v56_v19 = vsel %vm34_vm1, %v52_v17, 0.0 }
   0xb   :  { %v40_v20 = vrot.slane %v39_v18, 4  ;;  %v57_v21 = vadd.f32 %v56_v19, %v55_v15 }
   0xd   :  { %v41_v22 = vadd.f32 %v40_v20, %v39_v18  ;;  %v58_v23 = vrot.slane %v57_v21, 4 }
   0xf   :  { %v42_v24 = vrot.slane %v41_v22, 2  ;;  %v59_v25 = vadd.f32 %v58_v23, %v57_v21 }
  0x11   :  { %v43_v26 = vadd.f32 %v42_v24, %v41_v22  ;;  %v60_v27 = vrot.slane %v59_v25, 2 }
  0x13   :  { %v44_v28 = vrot.slane %v43_v26, 1  ;;  %v61_v29 = vadd.f32 %v60_v27, %v59_v25 }
  0x15   :  { %v45_v31 = vadd.f32 %v44_v28, %v43_v26  ;;  %v62_v32 = vrot.slane %v61_v29, 1 }
  0x17   :  { %v46_v34 = vadd.f32 %v45_v31, %v33_v30  ;;  %v63_v35 = vadd.f32 %v62_v32, %v61_v29 }
  0x19   :  { %48 = vst.msk [vmem:[%s129_s1] sm:$0x1] %vm14_vm0, %v46_v34  ;;  %v64_v36 = vadd.f32 %v63_v35, %v49_v33 }
  0x1b   :  { %65 = vst.msk [vmem:[%s130_s2] sm:$0x1] %vm14_vm0, %v64_v36 }

// kernel: densenet_forward.37
= control target key start
LH: loop header
LB: loop body
LE: loop exit
PB: predicated region body
PF: predicated region fallthrough
CT: control target
= control target key end

     0   :  { %vm22_vm0 = vcmask 130048   ;;  %v238_v1 = vmov 0.0   ;;  %s321_s3 = inlined_call_operand.vmem [shape: bf16[128,16], index: 3, kind: input, shape index: {}]   ;;  %s322_s0 = inlined_call_operand.vmem [shape: f32[20,128], index: 0, kind: input, shape index: {}]   ;;  %s323_s1 = inlined_call_operand.vmem [shape: f32[1,128], index: 1, kind: input, shape index: {}]   ;;  %s324_s2 = inlined_call_operand.vmem [shape: f32[1,128], index: 2, kind: input, shape index: {}]   ;;  %s325_s4 = inlined_call_operand.vmem [shape: f32[20,16], index: 4, kind: output, shape index: {}]  }
   0x1   :  { %v230_v0 = vld [vmem:[%s321_s3 + $0x38] sm:$0xff]   ;;  %25 = vst.msk [vmem:[#allocation2 + $0x10] sm:$0xff] %vm22_vm0, %v238_v1  ;;  %23 = vst.msk [vmem:[#allocation2] sm:$0xff] %vm22_vm0, %v238_v1  ;;  %v231_v2 = vld [vmem:[%s321_s3 + $0x30] sm:$0xff]  }
   0x2   :  { %24 = vst.msk [vmem:[#allocation2 + $0x8] sm:$0xff] %vm22_vm0, %v238_v1  ;;  %209 = vmatprep.subr.bf16.mxu0 %v230_v0  ;;  %v232_v3 = vld [vmem:[%s321_s3 + $0x28] sm:$0xff]   ;;  %v233_v4 = vld [vmem:[%s321_s3 + $0x20] sm:$0xff]   ;;  %v234_v13 = vld [vmem:[%s321_s3 + $0x18] sm:$0xff]  }
   0x3   :  { %210 = vmatpush3.bf16.msra.mxu0 %v230_v0  ;;  %v26_v5 = vld [vmem:[%s322_s0] sm:$0xff]  ;;  %v27_v6 = vld [vmem:[%s322_s0 + $0x8] sm:$0xff]  ;;  %v28_v17 = vld [vmem:[%s322_s0 + $0x10] sm:$0xff] }
   0x4   :  { %211 = vmatprep.subr.bf16.mxu0 %v231_v2  ;;  %v189_v7 = vld [vmem:[%s323_s1] ss:$0 sm:$0xff]  ;;  %v235_v18 = vld [vmem:[%s321_s3 + $0x10] sm:$0xff]   ;;  %v236_v20 = vld [vmem:[%s321_s3 + $0x8] sm:$0xff]  }
   0x5   :  { %v36_v8 = vmul.f32 %v189_v7, %v26_v5  ;;  %v37_v9 = vmul.f32 %v189_v7, %v27_v6  ;;  %v190_v10 = vld [vmem:[%s324_s2] ss:$0 sm:$0xff]  ;;  %v38_v19 = vmul.f32 %v189_v7, %v28_v17 }
   0x6   :  { %v237_v22 = vld [vmem:[%s321_s3] sm:$0xff]  }
   0x7   :  { %212 = vmatpush3.bf16.msra.mxu0 %v231_v2  ;;  %v46_v11 = vadd.f32 %v190_v10, %v36_v8  ;;  %v47_v12 = vadd.f32 %v190_v10, %v37_v9  ;;  %v48_v21 = vadd.f32 %v190_v10, %v38_v19 }
   0x8   :  { %213 = vmatprep.subr.bf16.mxu0 %v232_v3  ;;  %v54_v25 = vld [vmem:[#allocation2 + $0x10] sm:$0xff]  ;;  %v52_v27 = vld [vmem:[#allocation2] sm:$0xff] }
   0x9   :  { %v49_v14 = vmax.f32 %v46_v11, 0.0  ;;  %v50_v15 = vmax.f32 %v47_v12, 0.0  ;;  %v51_v23 = vmax.f32 %v48_v21, 0.0  ;;  %v53_v32 = vld [vmem:[#allocation2 + $0x8] sm:$0xff] }
   0xb   :  { %214 = vmatpush3.bf16.msra.mxu0 %v232_v3  ;;  %v55_v16 = vpack.c.bf16 %v50_v15, %v49_v14  ;;  %v56_v24 = vpack.c.bf16 %v51_v23, %v51_v23 }
   0xc   :  { %215 = vmatprep.subr.bf16.mxu0 %v233_v4 }
   0xd   :  { %225 = vmatprep.mubr.bf16.mxu0 %v55_v16 }
   0xf   :  { %216 = vmatpush3.bf16.msra.mxu0 %v233_v4 }
  0x10   :  { %217 = vmatprep.subr.bf16.mxu0 %v234_v13 }
  0x13   :  { %218 = vmatpush3.bf16.msra.mxu0 %v234_v13 }
  0x14   :  { %219 = vmatprep.subr.bf16.mxu0 %v235_v18 }
  0x17   :  { %220 = vmatpush3.bf16.msra.mxu0 %v235_v18 }
  0x18   :  { %221 = vmatprep.subr.bf16.mxu0 %v236_v20 }
  0x1b   :  { %222 = vmatpush3.bf16.msra.mxu0 %v236_v20 }
  0x1c   :  { %223 = vmatprep.subr.bf16.mxu0 %v237_v22 }
  0x1f   :  { %224 = vmatpush3.bf16.msra.mxu0 %v237_v22 }
  0x22   :  { %226 = vmatmul.mubr.bf16.vlgmr.msra.gmra.mxu0 %v56_v24 }
  0xe2   :  { %v227_v26 = vpop.f32.mrf.mxu0 }
  0xe3   :  { %v171_v28 = vadd.f32 %v227_v26, %v54_v25 }
  0xe4   :  { %v155_v29 = vpop.f32.mrf.mxu0 }
  0xe5   :  { %175 = vst.msk [vmem:[#allocation2 + $0x10] sm:$0xff] %vm22_vm0, %v171_v28  ;;  %v169_v30 = vadd.f32 %v155_v29, %v52_v27 }
  0xe6   :  { %v228_v31 = vpop.f32.mrf.mxu0 }
  0xe7   :  { %173 = vst.msk [vmem:[#allocation2] sm:$0xff] %vm22_vm0, %v169_v30 }
  0xe8   :  { %v158_v33 = vpop.f32.mrf.mxu0 }
  0xe9   :  { %v170_v34 = vadd.f32 %v158_v33, %v53_v32 }
  0xeb   :  { %174 = vst.msk [vmem:[#allocation2 + $0x8] sm:$0xff] %vm22_vm0, %v170_v34 }
  0xec   :  { %v181_v35 = vld [vmem:[#allocation2 + $0x10] sm:$0xff] }
  0xed   :  { %184 = vst.msk [vmem:[%s325_s4 + $0x10] sm:$0xff] %vm22_vm0, %v181_v35 }
  0xee   :  { %v179_v36 = vld [vmem:[#allocation2] sm:$0xff] }
  0xef   :  { %182 = vst.msk [vmem:[%s325_s4] sm:$0xff] %vm22_vm0, %v179_v36 }
  0xf2   :  { %v180_v37 = vld [vmem:[#allocation2 + $0x8] sm:$0xff] }
  0xf3   :  { %183 = vst.msk [vmem:[%s325_s4 + $0x8] sm:$0xff] %vm22_vm0, %v180_v37 }

// kernel: densenet_forward.45
= control target key start
LH: loop header
LB: loop body
LE: loop exit
PB: predicated region body
PF: predicated region fallthrough
CT: control target
= control target key end

     0   :  { %s93_s0 = inlined_call_operand.vmem [shape: f32[20,128], index: 0, kind: input, shape index: {}]   ;;  %s94_s1 = inlined_call_operand.vmem [shape: f32[1,128], index: 1, kind: input, shape index: {}]   ;;  %s95_s2 = inlined_call_operand.vmem [shape: f32[1,128], index: 2, kind: input, shape index: {}]   ;;  %s96_s3 = inlined_call_operand.vmem [shape: f32[20,128], index: 3, kind: output, shape index: {}]  }
   0x1   :  { %v14_v0 = vld [vmem:[%s93_s0] sm:$0xff]  ;;  %v15_v4 = vld [vmem:[%s93_s0 + $0x8] sm:$0xff]  ;;  %v16_v5 = vld [vmem:[%s93_s0 + $0x10] sm:$0xff] }
   0x2   :  { %v47_v1 = vld [vmem:[%s94_s1] ss:$0 sm:$0xff] }
   0x3   :  { %v48_v2 = vld [vmem:[%s95_s2] ss:$0 sm:$0xff]  ;;  %v24_v3 = vmul.f32 %v47_v1, %v14_v0  ;;  %v25_v6 = vmul.f32 %v47_v1, %v15_v4  ;;  %v26_v7 = vmul.f32 %v47_v1, %v16_v5 }
   0x5   :  { %v34_v8 = vadd.f32 %v48_v2, %v24_v3  ;;  %v35_v9 = vadd.f32 %v48_v2, %v25_v6  ;;  %v36_v10 = vadd.f32 %v48_v2, %v26_v7 }
   0x7   :  { %v37_v11 = vmax.f32 %v34_v8, 0.0  ;;  %v38_v12 = vmax.f32 %v35_v9, 0.0  ;;  %v39_v13 = vmax.f32 %v36_v10, 0.0 }
   0x9   :  { %40 = vst [vmem:[%s96_s3] sm:$0xff] %v37_v11  ;;  %41 = vst [vmem:[%s96_s3 + $0x8] sm:$0xff] %v38_v12 }
   0xa   :  { %42 = vst [vmem:[%s96_s3 + $0x10] sm:$0xff] %v39_v13 }

// kernel: densenet_forward.39
= control target key start
LH: loop header
LB: loop body
LE: loop exit
PB: predicated region body
PF: predicated region fallthrough
CT: control target
= control target key end

     0   :  { %s2479_s15 = smov 0   ;;  %s2800_s0 = inlined_call_operand.vmem [shape: f32[2,2,5,16], index: 0, kind: input, shape index: {}]   ;;  %s2801_s1 = inlined_call_operand.vmem [shape: f32[1,1,16], index: 1, kind: input, shape index: {}]   ;;  %s2802_s2 = inlined_call_operand.vmem [shape: f32[1,1,16], index: 2, kind: input, shape index: {}]   ;;  %s2803_s3 = inlined_call_operand.vmem [shape: bf16[9,16,8], index: 3, kind: input, shape index: {}]   ;;  %s2804_s4 = inlined_call_operand.vmem [shape: f32[2,2,5,8], index: 4, kind: output, shape index: {}]  }
   0x1 LB: > { %s2274_s16 = sadd.s32 4294967295, %s2449_s15   ;;  %p2278_p0 = scmp.ge.s32.totalorder %s2449_s15, 1  ;;  %s2449_s15 = sphi %s2479_s15, %s14_s15  }
   0x2   : > { %p162_p1 = scmp.lt.s32.totalorder %s2449_s15, 3 }
   0x4   : > { %p163_p2 = pnand %p2278_p0, %p162_p1 }
   0x5   : > { %p188_p3 = scmp.lt.s32.totalorder (!%p163_p2), %s2274_s16, 1 }
   0x6   : > { %166 = sbr.rel (%p163_p2) target bundleno = 323 (0x143), region = 36 }
   0xb   : > { %v2416_v0 = vld [vmem:[%s2803_s3 + $0x8] sm:$0xff]   ;;  %v238_v1 = vlaneseq  ;;  %v2451_v2 = vmov 0.0   ;;  %v2417_v3 = vld [vmem:[%s2803_s3] sm:$0xff]   ;;  %vm2452_vm0 = vmmov 0   ;;  %vm221_vm1 = vcmask 129024   ;;  %s2806_s16 = smov (!%p188_p3, %s2274_s16), 1 }
   0xc   : > { %2351 = vmatprep.subr.bf16.mxu0 %v2451_v2  ;;  %2357 = vmatprep.subr.bf16.mxu1 %v2451_v2  ;;  %222 = vst.msk [vmem:[#allocation2] sm:$0x7f] %vm221_vm1, %v2451_v2  ;;  %223 = vst.msk [vmem:[#allocation2 + $0x8] sm:$0x7f] %vm221_vm1, %v2451_v2  ;;  %v2283_v4 = vld [vmem:[%s2801_s1] ss:$0 sm:$0xff] }
   0xd   : > { %2352 = vmatpush3.bf16.msra.mxu0 %v2416_v0  ;;  %2353 = vmatprep.mubr.msk.bf16.mxu0 %vm2452_vm0, %v2451_v2  ;;  %224 = vst.msk [vmem:[#allocation2 + $0x10] sm:$0x7f] %vm221_vm1, %v2451_v2  ;;  %225 = vst.msk [vmem:[#allocation2 + $0x18] sm:$0x7f] %vm221_vm1, %v2451_v2  ;;  %v2453_v5 = vmov 1966171168  }
   0xe   : > { %2358 = vmatpush3.bf16.msra.mxu1 %v2417_v3  ;;  %2359 = vmatprep.mubr.msk.bf16.mxu1 %vm2452_vm0, %v2451_v2  ;;  %v236_v6 = vunpack.c.l.s4 %v2453_v5  ;;  %v239_v7 = vshrl.u32 %v238_v1, 7  ;;  %s2331_s23 = sshll.u32 %s2806_s16, 4  ;;  %v2284_v9 = vld [vmem:[%s2802_s2] ss:$0 sm:$0xff]  ;;  %vm227_vm2 = vcmask 126976   ;;  %vm539_vm3 = vcmask 130048  }
   0xf   : > { %2363 = vmatprep.subr.bf16.mxu0 %v2451_v2  ;;  %2369 = vmatprep.subr.bf16.mxu1 %v2451_v2  ;;  %s192_s26 = scalar_lea.vmem %s2800_s0, %s2331_s23  ;;  %s197_s21 = scalar_lea.vmem %s2804_s4, %s2331_s23  ;;  %vm2216_vm4 = vcmask 61440  }
  0x10   : > { %v237_v8 = vunpack.c.0.s8 %v236_v6  ;;  %v199_v10 = vld [vmem:[%s192_s26] sm:$0x1f]  ;;  %v200_v11 = vld [vmem:[%s192_s26 + $0x8] sm:$0x1f] }
  0x11   : > { %v208_v13 = vmul.f32 %v2283_v4, %v199_v10  ;;  %v209_v14 = vmul.f32 %v2283_v4, %v200_v11 }
  0x12   : > { %v2519_v12 = vsub.s32 %v237_v8, %v239_v7 }
  0x13   : > { %v381_v15 = vld [vmem:[#allocation2 + $0x1] sm:$0x1f]  ;;  %v217_v18 = vadd.f32 %v2284_v9, %v208_v13  ;;  %v218_v19 = vadd.f32 %v2284_v9, %v209_v14 }
  0x14   : > { %v230_v16 = vld [vmem:[#allocation2] sm:$0x1f]  ;;  %v385_v20 = vcombine.high %v381_v15, %v381_v15  ;;  %v392_v21 = vrot.slane %v381_v15, %v2519_v12  ;;  %v1452_v38 = vld [vmem:[#allocation2 + $0x18] sm:$0x1f] }
  0x15   : > { %v634_v17 = vld [vmem:[#allocation2 + $0x2] sm:$0x1f]  ;;  %v234_v22 = vcombine.high %v230_v16, %v230_v16  ;;  %v241_v23 = vrot.slane %v230_v16, %v2519_v12  ;;  %v219_v26 = vmax.f32 %v217_v18, 0.0  ;;  %v220_v27 = vmax.f32 %v218_v19, 0.0  ;;  %v2562_v63 = vld [vmem:[#allocation2 + $0x19] sm:$0x1f] }
  0x16   : > { %v638_v24 = vcombine.high %v634_v17, %v634_v17  ;;  %v645_v25 = vrot.slane %v634_v17, %v2519_v12  ;;  %v2525_v28 = vrot.slane %v385_v20, %v2519_v12  ;;  %v400_v29 = vcombine.high %v392_v21, %v392_v21 }
  0x17   : > { %v407_v30 = vrot.slane %v392_v21, %v2519_v12  ;;  %v2529_v31 = vrot.slane %v234_v22, %v2519_v12  ;;  %v249_v32 = vcombine.high %v241_v23, %v241_v23  ;;  %v256_v33 = vrot.slane %v241_v23, %v2519_v12  ;;  %228 = vst.msk [vmem:[#allocation2 + $0x9] sm:$0x1f] %vm227_vm2, %v219_v26 }
  0x18   : > { %v414_v34 = vrot.slane %v2525_v28, %v2519_v12  ;;  %v421_v35 = vrot.slane %v400_v29, %v2519_v12  ;;  %229 = vst.msk [vmem:[#allocation2 + $0x11] sm:$0x1f] %vm227_vm2, %v220_v27  ;;  %v2538_v36 = vrot.slane %v638_v24, %v2519_v12  ;;  %v653_v37 = vcombine.high %v645_v25, %v645_v25 }
  0x19   : > { %v263_v39 = vrot.slane %v2529_v31, %v2519_v12  ;;  %v270_v40 = vrot.slane %v249_v32, %v2519_v12  ;;  %v660_v41 = vrot.slane %v645_v25, %v2519_v12  ;;  %v1494_v42 = vcombine.high %v1452_v38, %v1452_v38 }
  0x1a   : > { %v463_v43 = vcombine.low %v407_v30, %v421_v35  ;;  %v2286_v44 = vcombine.high %v407_v30, %v421_v35  ;;  %v667_v45 = vrot.slane %v2538_v36, %v2519_v12  ;;  %v674_v46 = vrot.slane %v653_v37, %v2519_v12 }
  0x1b   : > { %v312_v47 = vcombine.low %v256_v33, %v270_v40  ;;  %v2285_v48 = vcombine.high %v256_v33, %v270_v40  ;;  %v1501_v49 = vrot.slane %v1452_v38, %v2519_v12  ;;  %v2549_v50 = vrot.slane %v1494_v42, %v2519_v12 }
  0x1c   : > { %v473_v51 = vrot.slane %v463_v43, %v2519_v12  ;;  %v480_v52 = vrot.slane %v2286_v44, %v2519_v12  ;;  %v716_v53 = vcombine.low %v660_v41, %v674_v46  ;;  %v2293_v54 = vcombine.high %v660_v41, %v674_v46 }
  0x1d   : > { %v322_v55 = vrot.slane %v312_v47, %v2519_v12  ;;  %v329_v56 = vrot.slane %v2285_v48, %v2519_v12  ;;  %v1509_v57 = vcombine.high %v1501_v49, %v1501_v49  ;;  %v2556_v58 = vrot.slane %v1501_v49, %v2519_v12 }
  0x1e   : > { %v495_v59 = vcombine.low %v473_v51, %v480_v52  ;;  %v726_v60 = vrot.slane %v716_v53, %v2519_v12  ;;  %v733_v61 = vrot.slane %v2293_v54, %v2519_v12  ;;  %v1523_v62 = vrot.slane %v2549_v50, %v2519_v12  ;;  %v382_v0 = vld [vmem:[#allocation2 + $0x9] sm:$0x1f] }
  0x1f   : > { %v231_v1 = vld [vmem:[#allocation2 + $0x8] sm:$0x1f]  ;;  %v344_v3 = vcombine.low %v322_v55, %v329_v56  ;;  %v2565_v5 = vrot.slane %v1509_v57, %v2519_v12  ;;  %v1531_v6 = vcombine.high %v2556_v58, %v2556_v58  ;;  %v1698_v7 = vcombine.high %v2562_v63, %v2562_v63 }
  0x20   : > { %v635_v4 = vld [vmem:[#allocation2 + $0xa] sm:$0x1f]  ;;  %v424_v8 = vcombine.high %v382_v0, %v382_v0  ;;  %v431_v9 = vrot.slane %v382_v0, %v2519_v12  ;;  %v503_v10 = vrot.slane %v495_v59, %v2519_v12  ;;  %v273_v11 = vcombine.high %v231_v1, %v231_v1 }
  0x21   : > { %v280_v13 = vrot.slane %v231_v1, %v2519_v12  ;;  %v352_v14 = vrot.slane %v344_v3, %v2519_v12  ;;  %v677_v15 = vcombine.high %v635_v4, %v635_v4  ;;  %v684_v16 = vrot.slane %v635_v4, %v2519_v12  ;;  %v838_v56 = vld [vmem:[#allocation2 + $0x8] sm:$0x1f] }
  0x22   : > { %v438_v17 = vrot.slane %v424_v8, %v2519_v12  ;;  %v439_v18 = vcombine.high %v431_v9, %v431_v9  ;;  %v446_v19 = vrot.slane %v431_v9, %v2519_v12  ;;  %v287_v20 = vrot.slane %v273_v11, %v2519_v12  ;;  %v839_v8 = vld [vmem:[#allocation2 + $0x10] sm:$0x1f] }
  0x23   : > { %v288_v21 = vcombine.high %v280_v13, %v280_v13  ;;  %v295_v22 = vrot.slane %v280_v13, %v2519_v12  ;;  %v691_v23 = vrot.slane %v677_v15, %v2519_v12  ;;  %v692_v24 = vcombine.high %v684_v16, %v684_v16 }
  0x24   : > { %v453_v25 = vrot.slane %v438_v17, %v2519_v12  ;;  %v460_v26 = vrot.slane %v439_v18, %v2519_v12  ;;  %v461_v27 = vcombine.high %v446_v19, %v446_v19  ;;  %v465_v28 = vcombine.low %v414_v34, %v446_v19  ;;  %v2422_v19 = vld [vmem:[%s2803_s3 + $0x10] sm:$0xff]  }
  0x25   : > { %v302_v29 = vrot.slane %v287_v20, %v2519_v12  ;;  %v309_v30 = vrot.slane %v288_v21, %v2519_v12  ;;  %v310_v31 = vcombine.high %v295_v22, %v295_v22  ;;  %v314_v32 = vcombine.low %v263_v39, %v295_v22 }
  0x26   : > { %v462_v33 = vcombine.high %v460_v26, %v460_v26  ;;  %v466_v35 = vcombine.low %v460_v26, %v461_v27  ;;  %v487_v37 = vrot.slane %v465_v28, %v2519_v12  ;;  %v699_v38 = vrot.slane %v684_v16, %v2519_v12 }
  0x27   : > { %v311_v40 = vcombine.high %v309_v30, %v309_v30  ;;  %v315_v41 = vcombine.low %v309_v30, %v310_v31  ;;  %v336_v42 = vrot.slane %v314_v32, %v2519_v12  ;;  %v706_v43 = vrot.slane %v691_v23, %v2519_v12  ;;  %v1042_v23 = vld [vmem:[#allocation2 + $0x9] sm:$0x1f] }
  0x28   : > { %v494_v34 = vrot.slane %v466_v35, %v2519_v12  ;;  %v512_v44 = vcombine.low %v462_v33, %v453_v25  ;;  %v713_v46 = vrot.slane %v692_v24, %v2519_v12  ;;  %v714_v47 = vcombine.high %v699_v38, %v699_v38 }
  0x29   : > { %v343_v39 = vrot.slane %v315_v41, %v2519_v12  ;;  %v361_v48 = vcombine.low %v311_v40, %v302_v29  ;;  %v718_v49 = vcombine.low %v667_v45, %v699_v38  ;;  %v748_v51 = vcombine.low %v726_v60, %v733_v61 }
  0x2a   : > { %v496_v52 = vcombine.low %v487_v37, %v494_v34  ;;  %v519_v53 = vrot.slane %v512_v44, %v2519_v12  ;;  %v715_v54 = vcombine.high %v713_v46, %v713_v46  ;;  %v719_v55 = vcombine.low %v713_v46, %v714_v47  ;;  %v1043_v34 = vld [vmem:[#allocation2 + $0x11] sm:$0x1f] }
  0x2b   : > { %v345_v57 = vcombine.low %v336_v42, %v343_v39  ;;  %v368_v59 = vrot.slane %v361_v48, %v2519_v12  ;;  %v740_v0 = vrot.slane %v718_v49, %v2519_v12  ;;  %v756_v1 = vrot.slane %v748_v51, %v2519_v12 }
  0x2c   : > { %v510_v3 = vrot.slane %v496_v52, %v2519_v12  ;;  %v526_v4 = vrot.slane %v519_v53, %v2519_v12  ;;  %v747_v36 = vrot.slane %v719_v55, %v2519_v12  ;;  %v765_v45 = vcombine.low %v715_v54, %v706_v43  ;;  %v2428_v54 = vld [vmem:[%s2803_s3 + $0x20] sm:$0xff]  }
  0x2d   : > { %v359_v60 = vrot.slane %v345_v57, %v2519_v12  ;;  %v375_v61 = vrot.slane %v368_v59, %v2519_v12  ;;  %v842_v9 = vcombine.high %v838_v56, %v838_v56  ;;  %v849_v11 = vrot.slane %v838_v56, %v2519_v12 }
  0x2e   : > { %v511_v13 = vcombine.low %v503_v10, %v510_v3  ;;  %v749_v15 = vcombine.low %v740_v0, %v747_v36  ;;  %v772_v16 = vrot.slane %v765_v45, %v2519_v12  ;;  %v881_v17 = vcombine.high %v839_v8, %v839_v8  ;;  %v2423_v10 = vld [vmem:[%s2803_s3 + $0x18] sm:$0xff]   ;;  %v1246_v3 = vld [vmem:[#allocation2 + $0xa] sm:$0x1f] }
  0x2f   : > { %v360_v18 = vcombine.low %v352_v14, %v359_v60  ;;  %v856_v20 = vrot.slane %v842_v9, %v2519_v12  ;;  %v857_v21 = vcombine.high %v849_v11, %v849_v11  ;;  %v864_v22 = vrot.slane %v849_v11, %v2519_v12 }
  0x30   : > { %v529_v24 = vpack.c.bf16 %v526_v4, %v511_v13  ;;  %v763_v25 = vrot.slane %v749_v15, %v2519_v12  ;;  %v779_v26 = vrot.slane %v772_v16, %v2519_v12  ;;  %v888_v14 = vrot.slane %v839_v8, %v2519_v12 }
  0x31   : > { %v378_v27 = vpack.c.bf16 %v375_v61, %v360_v18  ;;  %v871_v28 = vrot.slane %v856_v20, %v2519_v12  ;;  %v878_v29 = vrot.slane %v857_v21, %v2519_v12  ;;  %v895_v30 = vrot.slane %v881_v17, %v2519_v12 }
  0x32   : > { %2354 = vmatmul.mubr.msk.bf16.vlgmr.msra.gmra.mxu0 %vm539_vm3, %v529_v24  ;;  %v764_v31 = vcombine.low %v756_v1, %v763_v25  ;;  %v896_v32 = vcombine.high %v888_v14, %v888_v14  ;;  %v903_v33 = vrot.slane %v888_v14, %v2519_v12  ;;  %v1046_v35 = vcombine.high %v1042_v23, %v1042_v23 }
  0x33   : > { %2360 = vmatmul.mubr.msk.bf16.vlgmr.msra.gmra.mxu1 %vm539_vm3, %v378_v27  ;;  %2364 = vmatpush3.bf16.msra.mxu0 %v2422_v19  ;;  %v910_v37 = vrot.slane %v895_v30, %v2519_v12  ;;  %v920_v38 = vcombine.low %v864_v22, %v878_v29  ;;  %v2298_v40 = vcombine.high %v864_v22, %v878_v29  ;;  %v2429_v27 = vld [vmem:[%s2803_s3 + $0x28] sm:$0xff]  }
  0x34   : > { %2370 = vmatpush3.bf16.msra.mxu1 %v2423_v10  ;;  %2365 = vmatprep.mubr.msk.bf16.mxu0 %vm2452_vm0, %v2451_v2  ;;  %v782_v41 = vpack.c.bf16 %v779_v26, %v764_v31  ;;  %v917_v42 = vrot.slane %v896_v32, %v2519_v12  ;;  %v918_v43 = vcombine.high %v903_v33, %v903_v33  ;;  %v1247_v31 = vld [vmem:[#allocation2 + $0x12] sm:$0x1f] }
  0x35   : > { %2371 = vmatprep.mubr.msk.bf16.mxu1 %vm2452_vm0, %v2451_v2  ;;  %2375 = vmatprep.subr.bf16.mxu0 %v2451_v2  ;;  %v922_v44 = vcombine.low %v871_v28, %v903_v33  ;;  %v930_v46 = vrot.slane %v920_v38, %v2519_v12  ;;  %v937_v47 = vrot.slane %v2298_v40, %v2519_v12  ;;  %v1451_v33 = vld [vmem:[#allocation2 + $0x10] sm:$0x1f] }
  0x36   : > { %v919_v39 = vcombine.high %v917_v42, %v917_v42  ;;  %v923_v48 = vcombine.low %v917_v42, %v918_v43  ;;  %2381 = vmatprep.subr.bf16.mxu1 %v2451_v2  ;;  %v1053_v49 = vrot.slane %v1042_v23, %v2519_v12  ;;  %v1060_v51 = vrot.slane %v1046_v35, %v2519_v12 }
  0x37   : > { %v944_v52 = vrot.slane %v922_v44, %v2519_v12  ;;  %v952_v53 = vcombine.low %v930_v46, %v937_v47  ;;  %v1085_v55 = vcombine.high %v1043_v34, %v1043_v34  ;;  %v1092_v56 = vrot.slane %v1043_v34, %v2519_v12 }
  0x38   : > { %v951_v57 = vrot.slane %v923_v48, %v2519_v12  ;;  %v969_v59 = vcombine.low %v919_v39, %v910_v37  ;;  %v1061_v0 = vcombine.high %v1053_v49, %v1053_v49  ;;  %v1068_v1 = vrot.slane %v1053_v49, %v2519_v12 }
  0x39   : > { %v960_v4 = vrot.slane %v952_v53, %v2519_v12  ;;  %v1075_v36 = vrot.slane %v1060_v51, %v2519_v12  ;;  %v1099_v45 = vrot.slane %v1085_v55, %v2519_v12  ;;  %v1100_v60 = vcombine.high %v1092_v56, %v1092_v56 }
  0x3a   : > { %2366 = vmatmul.mubr.msk.bf16.vlgmr.msra.gmra.mxu0 %vm539_vm3, %v782_v41  ;;  %v953_v61 = vcombine.low %v944_v52, %v951_v57  ;;  %v976_v8 = vrot.slane %v969_v59, %v2519_v12  ;;  %v1082_v9 = vrot.slane %v1061_v0, %v2519_v12  ;;  %v1107_v11 = vrot.slane %v1092_v56, %v2519_v12 }
  0x3b   : > { %2376 = vmatpush3.bf16.msra.mxu0 %v2428_v54  ;;  %2377 = vmatprep.mubr.msk.bf16.mxu0 %vm2452_vm0, %v2451_v2  ;;  %v1114_v13 = vrot.slane %v1099_v45, %v2519_v12  ;;  %v1121_v15 = vrot.slane %v1100_v60, %v2519_v12  ;;  %v1250_v16 = vcombine.high %v1246_v3, %v1246_v3 }
  0x3c   : > { %v967_v17 = vrot.slane %v953_v61, %v2519_v12  ;;  %v983_v18 = vrot.slane %v976_v8, %v2519_v12  ;;  %2387 = vmatprep.subr.bf16.mxu0 %v2451_v2  ;;  %v1122_v19 = vcombine.high %v1107_v11, %v1107_v11  ;;  %v1124_v20 = vcombine.low %v1068_v1, %v1082_v9  ;;  %v2434_v61 = vld [vmem:[%s2803_s3 + $0x30] sm:$0xff]  }
  0x3d   : > { %v1123_v21 = vcombine.high %v1121_v15, %v1121_v15  ;;  %v2303_v22 = vcombine.high %v1068_v1, %v1082_v9  ;;  %v1126_v23 = vcombine.low %v1075_v36, %v1107_v11  ;;  %v1257_v24 = vrot.slane %v1246_v3, %v2519_v12  ;;  %v1655_v11 = vld [vmem:[#allocation2 + $0x11] sm:$0x1f] }
  0x3e   : > { %v968_v10 = vcombine.low %v960_v4, %v967_v17  ;;  %v1127_v25 = vcombine.low %v1121_v15, %v1122_v19  ;;  %v1134_v26 = vrot.slane %v1124_v20, %v2519_v12  ;;  %v1264_v14 = vrot.slane %v1250_v16, %v2519_v12 }
  0x3f   : > { %v1141_v28 = vrot.slane %v2303_v22, %v2519_v12  ;;  %v1148_v29 = vrot.slane %v1126_v23, %v2519_v12  ;;  %v1173_v30 = vcombine.low %v1123_v21, %v1114_v13  ;;  %v1265_v32 = vcombine.high %v1257_v24, %v1257_v24 }
  0x40   : > { %v986_v35 = vpack.c.bf16 %v983_v18, %v968_v10  ;;  %v1155_v37 = vrot.slane %v1127_v25, %v2519_v12  ;;  %v1272_v38 = vrot.slane %v1257_v24, %v2519_v12  ;;  %v1279_v40 = vrot.slane %v1264_v14, %v2519_v12 }
  0x41   : > { %v1156_v41 = vcombine.low %v1134_v26, %v1141_v28  ;;  %v1180_v42 = vrot.slane %v1173_v30, %v2519_v12  ;;  %v1286_v43 = vrot.slane %v1265_v32, %v2519_v12  ;;  %v1289_v34 = vcombine.high %v1247_v31, %v1247_v31 }
  0x42   : > { %2372 = vmatmul.mubr.msk.bf16.vlgmr.msra.gmra.mxu1 %vm539_vm3, %v986_v35  ;;  %v1157_v44 = vcombine.low %v1148_v29, %v1155_v37  ;;  %v1296_v46 = vrot.slane %v1247_v31, %v2519_v12  ;;  %v1455_v47 = vcombine.high %v1451_v33, %v1451_v33  ;;  %v1462_v39 = vrot.slane %v1451_v33, %v2519_v12 }
  0x43   : > { %2382 = vmatpush3.bf16.msra.mxu1 %v2429_v27  ;;  %2383 = vmatprep.mubr.msk.bf16.mxu1 %vm2452_vm0, %v2451_v2  ;;  %v1164_v48 = vrot.slane %v1156_v41, %v2519_v12  ;;  %v1187_v49 = vrot.slane %v1180_v42, %v2519_v12  ;;  %v1303_v51 = vrot.slane %v1289_v34, %v2519_v12 }
  0x44   : > { %v1171_v52 = vrot.slane %v1157_v44, %v2519_v12  ;;  %v1304_v53 = vcombine.high %v1296_v46, %v1296_v46  ;;  %v1311_v54 = vrot.slane %v1296_v46, %v2519_v12  ;;  %v1328_v55 = vcombine.low %v1272_v38, %v1286_v43  ;;  %2393 = vmatprep.subr.bf16.mxu1 %v2451_v2  ;;  %v2435_v46 = vld [vmem:[%s2803_s3 + $0x38] sm:$0xff]  }
  0x45   : > { %v1318_v56 = vrot.slane %v1303_v51, %v2519_v12  ;;  %v2308_v57 = vcombine.high %v1272_v38, %v1286_v43  ;;  %v1469_v59 = vrot.slane %v1455_v47, %v2519_v12  ;;  %v1470_v0 = vcombine.high %v1462_v39, %v1462_v39  ;;  %v1859_v43 = vld [vmem:[#allocation2 + $0x12] sm:$0x1f] }
  0x46   : > { %v1172_v1 = vcombine.low %v1164_v48, %v1171_v52  ;;  %v1325_v3 = vrot.slane %v1304_v53, %v2519_v12  ;;  %v1326_v4 = vcombine.high %v1311_v54, %v1311_v54  ;;  %v1330_v36 = vcombine.low %v1279_v40, %v1311_v54 }
  0x47   : > { %v1338_v45 = vrot.slane %v1328_v55, %v2519_v12  ;;  %v1345_v60 = vrot.slane %v2308_v57, %v2519_v12  ;;  %v1477_v8 = vrot.slane %v1462_v39, %v2519_v12  ;;  %v1484_v9 = vrot.slane %v1469_v59, %v2519_v12 }
  0x48   : > { %v1190_v13 = vpack.c.bf16 %v1187_v49, %v1172_v1  ;;  %v1327_v15 = vcombine.high %v1325_v3, %v1325_v3  ;;  %v1331_v16 = vcombine.low %v1325_v3, %v1326_v4  ;;  %v1352_v17 = vrot.slane %v1330_v36, %v2519_v12 }
  0x49   : > { %v1360_v18 = vcombine.low %v1338_v45, %v1345_v60  ;;  %v1491_v19 = vrot.slane %v1470_v0, %v2519_v12  ;;  %v1532_v20 = vcombine.high %v2565_v5, %v2565_v5  ;;  %v1535_v21 = vcombine.low %v1484_v9, %v2556_v58  ;;  %v1860_v9 = vld [vmem:[#allocation2 + $0x1a] sm:$0x1f] }
  0x4a   : > { %2378 = vmatmul.mubr.msk.bf16.vlgmr.msra.gmra.mxu0 %vm539_vm3, %v1190_v13  ;;  %v1359_v22 = vrot.slane %v1331_v16, %v2519_v12  ;;  %v1377_v23 = vcombine.low %v1327_v15, %v1318_v56  ;;  %v1536_v24 = vcombine.low %v2565_v5, %v1531_v6  ;;  %v1659_v10 = vcombine.high %v1655_v11, %v1655_v11 }
  0x4b   : > { %v1368_v25 = vrot.slane %v1360_v18, %v2519_v12  ;;  %2388 = vmatpush3.bf16.msra.mxu0 %v2434_v61  ;;  %2389 = vmatprep.mubr.msk.bf16.mxu0 %vm2452_vm0, %v2451_v2  ;;  %v1533_v26 = vcombine.low %v1477_v8, %v1491_v19  ;;  %v2313_v14 = vcombine.high %v1477_v8, %v1491_v19 }
  0x4c   : > { %v1361_v27 = vcombine.low %v1352_v17, %v1359_v22  ;;  %v1384_v28 = vrot.slane %v1377_v23, %v2519_v12  ;;  %2399 = vmatprep.subr.bf16.mxu0 %v2451_v2  ;;  %v1557_v29 = vrot.slane %v1535_v21, %v2519_v12  ;;  %v1564_v58 = vrot.slane %v1536_v24, %v2519_v12 }
  0x4d   : > { %v1543_v5 = vrot.slane %v1533_v26, %v2519_v12  ;;  %v1550_v6 = vrot.slane %v2313_v14, %v2519_v12  ;;  %v1582_v30 = vcombine.low %v1532_v20, %v1523_v62  ;;  %v1666_v31 = vrot.slane %v1655_v11, %v2519_v12 }
  0x4e   : > { %v1375_v32 = vrot.slane %v1361_v27, %v2519_v12  ;;  %v1391_v33 = vrot.slane %v1384_v28, %v2519_v12  ;;  %v1566_v35 = vcombine.low %v1557_v29, %v1564_v58  ;;  %v1673_v37 = vrot.slane %v1659_v10, %v2519_v12 }
  0x4f   : > { %v1565_v38 = vcombine.low %v1543_v5, %v1550_v6  ;;  %v1589_v40 = vrot.slane %v1582_v30, %v2519_v12  ;;  %v1674_v41 = vcombine.high %v1666_v31, %v1666_v31  ;;  %v1681_v42 = vrot.slane %v1666_v31, %v2519_v12 }
  0x50   : > { %v1376_v34 = vcombine.low %v1368_v25, %v1375_v32  ;;  %v1580_v50 = vrot.slane %v1566_v35, %v2519_v12  ;;  %v1688_v62 = vrot.slane %v1673_v37, %v2519_v12  ;;  %v1705_v44 = vrot.slane %v2562_v63, %v2519_v12  ;;  %v2440_v63 = vld [vmem:[%s2803_s3 + $0x40] sm:$0xff]  }
  0x51   : > { %v1573_v47 = vrot.slane %v1565_v38, %v2519_v12  ;;  %v1596_v39 = vrot.slane %v1589_v40, %v2519_v12  ;;  %v1695_v48 = vrot.slane %v1674_v41, %v2519_v12  ;;  %v1712_v49 = vrot.slane %v1698_v7, %v2519_v12 }
  0x52   : > { %v1394_v51 = vpack.c.bf16 %v1391_v33, %v1376_v34  ;;  %v1713_v52 = vcombine.high %v1705_v44, %v1705_v44  ;;  %v1720_v53 = vrot.slane %v1705_v44, %v2519_v12  ;;  %v1863_v54 = vcombine.high %v1859_v43, %v1859_v43 }
  0x53   : > { %v1581_v55 = vcombine.low %v1573_v47, %v1580_v50  ;;  %v1727_v56 = vrot.slane %v1712_v49, %v2519_v12  ;;  %v1737_v57 = vcombine.low %v1681_v42, %v1695_v48  ;;  %v2318_v59 = vcombine.high %v1681_v42, %v1695_v48 }
  0x54   : > { %2384 = vmatmul.mubr.msk.bf16.vlgmr.msra.gmra.mxu1 %vm539_vm3, %v1394_v51  ;;  %v1734_v0 = vrot.slane %v1713_v52, %v2519_v12  ;;  %v1735_v1 = vcombine.high %v1720_v53, %v1720_v53  ;;  %v1739_v3 = vcombine.low %v1688_v62, %v1720_v53  ;;  %v1870_v7 = vrot.slane %v1859_v43, %v2519_v12 }
  0x55   : > { %2394 = vmatpush3.bf16.msra.mxu1 %v2435_v46  ;;  %2395 = vmatprep.mubr.msk.bf16.mxu1 %vm2452_vm0, %v2451_v2  ;;  %v1599_v4 = vpack.c.bf16 %v1596_v39, %v1581_v55  ;;  %v1747_v36 = vrot.slane %v1737_v57, %v2519_v12  ;;  %v1754_v45 = vrot.slane %v2318_v59, %v2519_v12 }
  0x56   : > { %v1736_v60 = vcombine.high %v1734_v0, %v1734_v0  ;;  %v1740_v61 = vcombine.low %v1734_v0, %v1735_v1  ;;  %v1761_v8 = vrot.slane %v1739_v3, %v2519_v12  ;;  %v1877_v11 = vrot.slane %v1863_v54, %v2519_v12 }
  0x57   : > { %2390 = vmatmul.mubr.msk.bf16.vlgmr.msra.gmra.mxu0 %vm539_vm3, %v1599_v4  ;;  %v1769_v13 = vcombine.low %v1747_v36, %v1754_v45  ;;  %v1878_v15 = vcombine.high %v1870_v7, %v1870_v7  ;;  %v1885_v16 = vrot.slane %v1870_v7, %v2519_v12  ;;  %v1902_v17 = vcombine.high %v1860_v9, %v1860_v9 }
  0x58   : > { %v1768_v18 = vrot.slane %v1740_v61, %v2519_v12  ;;  %v1786_v19 = vcombine.low %v1736_v60, %v1727_v56  ;;  %2400 = vmatpush3.bf16.msra.mxu0 %v2440_v63  ;;  %2401 = vmatprep.mubr.msk.bf16.mxu0 %vm2452_vm0, %v2451_v2  ;;  %v1892_v20 = vrot.slane %v1877_v11, %v2519_v12 }
  0x59   : > { %v1899_v21 = vrot.slane %v1878_v15, %v2519_v12  ;;  %v1909_v22 = vrot.slane %v1860_v9, %v2519_v12  ;;  %v1916_v23 = vrot.slane %v1902_v17, %v2519_v12  ;;  %v1777_v10 = vrot.slane %v1769_v13, %v2519_v12 }
  0x5a   : > { %v1770_v24 = vcombine.low %v1761_v8, %v1768_v18  ;;  %v1793_v25 = vrot.slane %v1786_v19, %v2519_v12 }
  0x5b   : > { %v1917_v26 = vcombine.high %v1909_v22, %v1909_v22  ;;  %v1924_v14 = vrot.slane %v1909_v22, %v2519_v12  ;;  %v1941_v27 = vcombine.low %v1885_v16, %v1899_v21  ;;  %v1931_v29 = vrot.slane %v1916_v23, %v2519_v12 }
  0x5c   : > { %v1784_v28 = vrot.slane %v1770_v24, %v2519_v12  ;;  %v1800_v2 = vrot.slane %v1793_v25, %v2519_v12  ;;  %v2323_v58 = vcombine.high %v1885_v16, %v1899_v21 }
  0x5d   : > { %v1938_v5 = vrot.slane %v1917_v26, %v2519_v12  ;;  %v1939_v6 = vcombine.high %v1924_v14, %v1924_v14  ;;  %v1943_v30 = vcombine.low %v1892_v20, %v1924_v14  ;;  %v1951_v31 = vrot.slane %v1941_v27, %v2519_v12 }
  0x5e   : > { %v1785_v32 = vcombine.low %v1777_v10, %v1784_v28  ;;  %v1958_v33 = vrot.slane %v2323_v58, %v2519_v12 }
  0x5f   : > { %v1940_v35 = vcombine.high %v1938_v5, %v1938_v5  ;;  %v1944_v37 = vcombine.low %v1938_v5, %v1939_v6  ;;  %v1965_v38 = vrot.slane %v1943_v30, %v2519_v12 }
  0x60   : > { %v1803_v40 = vpack.c.bf16 %v1800_v2, %v1785_v32  ;;  %v1973_v41 = vcombine.low %v1951_v31, %v1958_v33 }
  0x61   : > { %v1972_v42 = vrot.slane %v1944_v37, %v2519_v12  ;;  %v1990_v43 = vcombine.low %v1940_v35, %v1931_v29 }
  0x62   : > { %2396 = vmatmul.mubr.msk.bf16.vlgmr.msra.gmra.mxu1 %vm539_vm3, %v1803_v40  ;;  %v1981_v50 = vrot.slane %v1973_v41, %v2519_v12 }
  0x63   : > { %v1974_v34 = vcombine.low %v1965_v38, %v1972_v42  ;;  %v1997_v62 = vrot.slane %v1990_v43, %v2519_v12 }
  0x65   : > { %v1988_v44 = vrot.slane %v1974_v34, %v2519_v12  ;;  %v2004_v46 = vrot.slane %v1997_v62, %v2519_v12 }
  0x67   : > { %v1989_v47 = vcombine.low %v1981_v50, %v1988_v44 }
  0x69   : > { %v2007_v39 = vpack.c.bf16 %v2004_v46, %v1989_v47 }
  0x6b   : > { %2402 = vmatmul.mubr.msk.bf16.vlgmr.msra.gmra.mxu0 %vm539_vm3, %v2007_v39 }
  0xf2   : > { %v577_v48 = vpop.f32.mrf.mxu0 }
  0xf3   : > { %v627_v49 = vpop.f32.mrf.mxu1 }
  0xf4   : > { %v2355_v51 = vpop.f32.mrf.mxu0  ;;  %v628_v13 = vadd.f32 %v627_v49, %v577_v48 }
  0xf5   : > { %v2361_v52 = vpop.f32.mrf.mxu1 }
  0xf6   : > { %v580_v53 = vpop.f32.mrf.mxu0 }
  0xf7   : > { %v630_v54 = vpop.f32.mrf.mxu1 }
  0xf8   : > { %v2356_v55 = vpop.f32.mrf.mxu0  ;;  %v631_v20 = vadd.f32 %v630_v54, %v580_v53 }
  0xf9   : > { %v2362_v56 = vpop.f32.mrf.mxu1 }
  0xfa   : > { %v829_v57 = vpop.f32.mrf.mxu0 }
  0xfb   : > { %v836_v17 = vadd.f32 %v829_v57, %v628_v13 }
  0xfc   : > { %v2367_v59 = vpop.f32.mrf.mxu0 }
  0xfe   : > { %v832_v0 = vpop.f32.mrf.mxu0 }
  0xff   : > { %v837_v23 = vadd.f32 %v832_v0, %v631_v20 }
 0x100   : > { %v2368_v1 = vpop.f32.mrf.mxu0 }
 0x102   : > { %v1033_v3 = vpop.f32.mrf.mxu1 }
 0x103   : > { %v1040_v22 = vadd.f32 %v1033_v3, %v836_v17 }
 0x104   : > { %v2373_v63 = vpop.f32.mrf.mxu1 }
 0x106   : > { %v1036_v7 = vpop.f32.mrf.mxu1 }
 0x107   : > { %v1041_v10 = vadd.f32 %v1036_v7, %v837_v23 }
 0x108   : > { %v2374_v4 = vpop.f32.mrf.mxu1 }
 0x10a   : > { %v1237_v36 = vpop.f32.mrf.mxu0 }
 0x10b   : > { %v1244_v24 = vadd.f32 %v1237_v36, %v1040_v22 }
 0x10c   : > { %v2379_v45 = vpop.f32.mrf.mxu0 }
 0x10e   : > { %v1240_v60 = vpop.f32.mrf.mxu0 }
 0x10f   : > { %v1245_v14 = vadd.f32 %v1240_v60, %v1041_v10 }
 0x110   : > { %v2380_v61 = vpop.f32.mrf.mxu0 }
 0x114   : > { %v1441_v8 = vpop.f32.mrf.mxu1 }
 0x115   : > { %v1448_v26 = vadd.f32 %v1441_v8, %v1244_v24 }
 0x116   : > { %v2385_v9 = vpop.f32.mrf.mxu1 }
 0x117   : > { %v1646_v11 = vpop.f32.mrf.mxu0 }
 0x118   : > { %v1444_v15 = vpop.f32.mrf.mxu1  ;;  %v1653_v28 = vadd.f32 %v1646_v11, %v1448_v26 }
 0x119   : > { %v2391_v16 = vpop.f32.mrf.mxu0  ;;  %v1449_v29 = vadd.f32 %v1444_v15, %v1245_v14 }
 0x11a   : > { %v2386_v18 = vpop.f32.mrf.mxu1 }
 0x11b   : > { %v1649_v19 = vpop.f32.mrf.mxu0 }
 0x11c   : > { %v1654_v6 = vadd.f32 %v1649_v19, %v1449_v29 }
 0x11d   : > { %v2392_v21 = vpop.f32.mrf.mxu0 }
 0x122   : > { %v1850_v25 = vpop.f32.mrf.mxu1 }
 0x123   : > { %v1857_v5 = vadd.f32 %v1850_v25, %v1653_v28 }
 0x124   : > { %v2397_v27 = vpop.f32.mrf.mxu1 }
 0x126   : > { %v1853_v2 = vpop.f32.mrf.mxu1 }
 0x127   : > { %v1858_v33 = vadd.f32 %v1853_v2, %v1654_v6 }
 0x128   : > { %v2398_v58 = vpop.f32.mrf.mxu1 }
 0x12b   : > { %v2054_v30 = vpop.f32.mrf.mxu0 }
 0x12c   : > { %v2061_v31 = vadd.f32 %v2054_v30, %v1857_v5 }
 0x12d   : > { %v2403_v32 = vpop.f32.mrf.mxu0 }
 0x12e   : > { %v2065_v35 = vcombine.high %v2061_v31, %v2061_v31  ;;  %v2072_v37 = vrot.slane %v2061_v31, %v2519_v12 }
 0x12f   : > { %v2057_v38 = vpop.f32.mrf.mxu0 }
 0x130   : > { %v2079_v40 = vrot.slane %v2065_v35, %v2519_v12  ;;  %v2080_v41 = vcombine.high %v2072_v37, %v2072_v37  ;;  %v2062_v42 = vadd.f32 %v2057_v38, %v1858_v33  ;;  %v2088_v43 = vrot.slane %v2072_v37, %v2519_v12 }
 0x131   : > { %v2404_v34 = vpop.f32.mrf.mxu0 }
 0x132   : > { %v2081_v50 = vcombine.high %v2079_v40, %v2079_v40  ;;  %v2095_v62 = vrot.slane %v2079_v40, %v2519_v12  ;;  %v2102_v44 = vrot.slane %v2080_v41, %v2519_v12  ;;  %v2120_v46 = vrot.slane %v2062_v42, %v2519_v12 }
 0x134   : > { %v2109_v47 = vrot.slane %v2081_v50, %v2519_v12  ;;  %v2111_v39 = vcombine.high %v2095_v62, %v2095_v62  ;;  %v2136_v48 = vcombine.low %v2088_v43, %v2102_v44  ;;  %v2328_v49 = vcombine.high %v2088_v43, %v2102_v44 }
 0x135   : > { %v2158_v51 = vrot.slane %v2095_v62, %v2519_v12  ;;  %v2121_v52 = vcombine.high %v2120_v46, %v2120_v46  ;;  %v2128_v53 = vrot.slane %v2120_v46, %v2519_v12 }
 0x136   : > { %v2144_v54 = vrot.slane %v2136_v48, %v2519_v12  ;;  %v2151_v55 = vrot.slane %v2328_v49, %v2519_v12  ;;  %v2175_v56 = vcombine.low %v2109_v47, %v2111_v39  ;;  %v2113_v57 = vcombine.high %v2109_v47, %v2109_v47 }
 0x137   : > { %v2135_v59 = vrot.slane %v2121_v52, %v2519_v12  ;;  %v2173_v3 = vrot.slane %v2158_v51, %v2519_v12 }
 0x138   : > { %v2159_v0 = vcombine.low %v2144_v54, %v2151_v55  ;;  %v2176_v1 = vcombine.low %v2113_v57, %v2128_v53  ;;  %v2183_v7 = vrot.slane %v2175_v56, %v2519_v12 }
 0x139   : > { %v2197_v36 = vrot.slane %v2135_v59, %v2519_v12 }
 0x13a   : > { %v2166_v63 = vrot.slane %v2159_v0, %v2519_v12  ;;  %v2190_v4 = vrot.slane %v2176_v1, %v2519_v12 }
 0x13b   : > { %v2212_v8 = vrot.slane %v2197_v36, %v2519_v12 }
 0x13c   : > { %v2174_v45 = vcombine.low %v2166_v63, %v2173_v3  ;;  %v2198_v60 = vcombine.low %v2183_v7, %v2190_v4 }
 0x13e   : > { %2217 = vst.msk [vmem:[%s197_s21] sm:$0x1f] %vm2216_vm4, %v2174_v45  ;;  %v2205_v61 = vrot.slane %v2198_v60, %v2519_v12 }
 0x140   : > { %v2213_v9 = vcombine.low %v2205_v61, %v2212_v8 }
 0x142   : > { %2218 = vst.msk [vmem:[%s197_s21 + $0x8] sm:$0x1f] %vm2216_vm4, %v2213_v9 }
 0x143 PF: > { %s14_s15 = sadd.s32 1, %s2449_s15  }
 0x144   : > { %p11_p4 = scmp.ge.s32.totalorder %s14_s15, 4  }
 0x146   :  { %13 = sbr.rel (!%p11_p4) target bundleno = 1 (0x1), region = 76 }

</bundles_post_ra>
